<compile_context>
chip_gen: v6e
topology: v6e:2x2x1
jax: 0.10.0
libtpu: 0.0.40
codegen_flags: <defaults>
</compile_context>

<pallas_src>
import jax
import jax.numpy as jnp
from jax.experimental import pallas as pl
from jax.experimental.pallas import tpu as pltpu

HIDDEN = 64
SEQ = 4
IN_FEAT = 2

# weight-slab row offsets (128-row blocks start on 8-aligned rows)
R_WIH0 = 0     # rows 0..1    : W_ih0^T (2 input features), gate-striped LOW lanes
R_B0   = 2     # row 2        : b_ih0 + b_hh0, gate-striped LOW lanes
R_B1   = 3     # row 3        : b_ih1 + b_hh1, gate-striped HIGH lanes
R_MLPB = 4     # row 4        : [fc1b | fc2b | fc3b | 0] at lane offsets 0/128/256
R_HH0  = 8     # rows 8..135  : W_hh0^T (rows 0..63 valid), gate-striped LOW lanes
R_W1   = 136   # rows 136..263: rows 0..63 = W_ih1^T, rows 64..127 = W_hh1^T,
               #                gate-striped HIGH lanes (layer 1 lives in lanes 64..127)
W_ROWS = 264

# (src col in PyTorch [i|f|g|o] layout, dst 128-lane stripe) -> stripe order (i,f,o,g)
_GATE_MAP = ((0, 0), (64, 128), (192, 256), (128, 384))


# ---------------------------------------------------------------------------
# Kernel
# ---------------------------------------------------------------------------
def actor_kernel(x_ref, w_ref, mlp_hbm, out_ref, mlp_vmem, dma_sem):
    # x_ref   : SMEM (16,) f32 -- x[0:8] LSTM input seq, x[8:13] MLP extras
    # w_ref   : VMEM (264, 512) packed LSTM weight+bias slab (offsets above)
    # mlp_hbm : ANY/HBM (128, 512) MLP weight slab, copied manually
    # out_ref : VMEM (1, 128) log-softmax in lanes 0..3
    # mlp_vmem: VMEM (128, 512) scratch destination for the MLP slab
    # dma_sem : DMA completion semaphore

    # Kick off the MLP weight copy; it lands under the 4-step recurrence.
    mlp_cp = pltpu.make_async_copy(mlp_hbm, mlp_vmem, dma_sem)
    mlp_cp.start()

    b0 = w_ref[R_B0:R_B0 + 1, :]                    # (1, 512) low-lane striped
    b1 = w_ref[R_B1:R_B1 + 1, :]                    # (1, 512) high-lane striped
    w0r0 = w_ref[R_WIH0:R_WIH0 + 1, :]              # W_ih0^T feature-0 row
    w0r1 = w_ref[R_WIH0 + 1:R_WIH0 + 2, :]          # W_ih0^T feature-1 row

    # Hoisted layer-0 input projection (+ bias): pure VPU scalar-broadcast FMAs.
    xproj = [x_ref[2 * t] * w0r0 + x_ref[2 * t + 1] * w0r1 + b0
             for t in range(SEQ)]
    # Read the 5 MLP-extras scalars before the DMA .wait() (sst->sld forwarding).
    extras = [x_ref[8 + i] for i in range(5)]

    h0 = jnp.zeros((1, 128), jnp.float32)
    c0 = jnp.zeros((1, 128), jnp.float32)
    h1 = jnp.zeros((1, 128), jnp.float32)
    c1 = jnp.zeros((1, 128), jnp.float32)

    def gate_combine(gates, c):
        # gates: (1, 512), stripes [i | f | o | g]; a layer's 64 valid lanes per
        # stripe are 0..63 (layer 0) or 64..127 (layer 1).  Padded pre-activation
        # lanes are exactly 0, so c/h provably stay 0 there (no masking needed).
        sig = jax.nn.sigmoid(gates[:, 0:384])       # i, f, o in one wide EUP pass
        i_g = sig[:, 0:128]
        f_g = sig[:, 128:256]
        o_g = sig[:, 256:384]
        g_g = jnp.tanh(gates[:, 384:512])
        c_new = f_g * c + i_g * g_g
        h_new = o_g * jnp.tanh(c_new)
        return h_new, c_new

    # Static trip count of 4 -> fully unrolled; state stays in vregs.
    for t in range(SEQ):
        if t == 0:
            g1_rec = None                           # h0 == h1 == 0: skip zero matvecs
            g0 = xproj[0]
        else:
            # Layer-1 recurrent half FIRST: depends only on last step's h1 (its
            # valid lanes 64..127 hit the W_hh1 rows of the shared block), so it
            # overlaps the h0 @ W_hh0 matmul below on the MXU.
            g1_rec = jnp.dot(h1, w_ref[R_W1:R_W1 + 128, :],
                             preferred_element_type=jnp.float32)
            g0 = xproj[t] + jnp.dot(h0, w_ref[R_HH0:R_HH0 + 128, :],
                                    preferred_element_type=jnp.float32)
        h0, c0 = gate_combine(g0, c0)

        # Layer-1 input half: h0's valid lanes 0..63 hit the W_ih1 rows of the
        # same 128-row block; its zero lanes 64..127 hit the W_hh1 rows.
        g1 = jnp.dot(h0, w_ref[R_W1:R_W1 + 128, :],
                     preferred_element_type=jnp.float32) + b1
        if g1_rec is not None:
            g1 = g1 + g1_rec
        h1, c1 = gate_combine(g1, c1)

    # ---- MLP head (h1's 64 features live in lanes 64..127; fc1 rows packed so) ----
    mlp_cp.wait()                                   # transfer hid under the recurrence

    fc1b = w_ref[R_MLPB:R_MLPB + 1, 0:128]
    fc2b = w_ref[R_MLPB:R_MLPB + 1, 128:256]
    fc3b = w_ref[R_MLPB:R_MLPB + 1, 256:384]

    out = jnp.dot(h1, mlp_vmem[:, 0:128],
                  preferred_element_type=jnp.float32) + fc1b
    for i in range(5):                              # 5 extras: scalar-broadcast FMAs
        out = out + extras[i] * mlp_vmem[i:i + 1, 128:256]
    out = jnp.maximum(out, 0.0)
    out = jnp.maximum(
        jnp.dot(out, mlp_vmem[:, 256:384],
                preferred_element_type=jnp.float32) + fc2b, 0.0)
    out = jnp.dot(out, mlp_vmem[:, 384:512],
                  preferred_element_type=jnp.float32) + fc3b      # lanes 0..3 valid

    # log_softmax over the 4 valid class lanes only.
    lane = jax.lax.broadcasted_iota(jnp.int32, (1, 128), 1)
    logits = jnp.where(lane < 4, out, jnp.full_like(out, -1e30))
    m = jnp.max(logits, axis=-1, keepdims=True)
    shifted = logits - m
    lse = jnp.log(jnp.sum(jnp.exp(shifted), axis=-1, keepdims=True))
    out_ref[...] = shifted - lse


# ---------------------------------------------------------------------------
# Wrapper
# ---------------------------------------------------------------------------
def actor_forward(x, params):
    """x: (13,) float32 raw sensor vector (matches the PyTorch forward indexing)."""
    x_pad = jnp.zeros((16,), jnp.float32).at[0:13].set(x)

    vmem = pl.BlockSpec(memory_space=pltpu.MemorySpace.VMEM)
    smem = pl.BlockSpec(memory_space=pltpu.MemorySpace.SMEM)
    hbm = pl.BlockSpec(memory_space=pl.ANY)

    out = pl.pallas_call(
        actor_kernel,
        out_shape=jax.ShapeDtypeStruct((1, 128), jnp.float32),
        in_specs=[smem, vmem, hbm],
        out_specs=vmem,
        scratch_shapes=[pltpu.VMEM((128, 512), jnp.float32),
                        pltpu.SemaphoreType.DMA(())],
    )(x_pad, params["w_slab"], params["mlp_slab"])
    return out[:, :4]


# ---------------------------------------------------------------------------
# Parameter construction (raw PyTorch-shaped + packed lane-dense slabs)
# ---------------------------------------------------------------------------
def _stripe_gates(w_t, rows_out, lane_off):
    """w_t: (in, 4H) in PyTorch column order [i|f|g|o] -> (rows_out, 512),
    gate-striped, each gate's 64 outputs placed at lanes [lane_off, lane_off+64)
    of its 128-lane stripe (stripe order i,f,o,g)."""
    in_dim = w_t.shape[0]
    out = jnp.zeros((rows_out, 512), jnp.float32)
    for src, dst in _GATE_MAP:
        out = out.at[:in_dim, dst + lane_off:dst + lane_off + HIDDEN].set(
            w_t[:, src:src + HIDDEN])
    return out


def _stripe_bias(b, lane_off):
    """b: (4H,) in [i|f|g|o] order -> (1, 512) gate-striped at lane_off."""
    out = jnp.zeros((1, 512), jnp.float32)
    for src, dst in _GATE_MAP:
        out = out.at[0, dst + lane_off:dst + lane_off + HIDDEN].set(
            b[src:src + HIDDEN])
    return out


def make_params(key):
    """Deterministic synthetic parameters with PyTorch shapes, plus packed slabs."""
    ks = jax.random.split(key, 14)

    def unif(k, shape, fan):
        bound = 1.0 / jnp.sqrt(fan)
        return jax.random.uniform(k, shape, jnp.float32, -bound, bound)

    w_ih0 = unif(ks[0], (4 * HIDDEN, IN_FEAT), HIDDEN)
    w_hh0 = unif(ks[1], (4 * HIDDEN, HIDDEN), HIDDEN)
    b_ih0 = unif(ks[2], (4 * HIDDEN,), HIDDEN)
    b_hh0 = unif(ks[3], (4 * HIDDEN,), HIDDEN)
    w_ih1 = unif(ks[4], (4 * HIDDEN, HIDDEN), HIDDEN)
    w_hh1 = unif(ks[5], (4 * HIDDEN, HIDDEN), HIDDEN)
    b_ih1 = unif(ks[6], (4 * HIDDEN,), HIDDEN)
    b_hh1 = unif(ks[7], (4 * HIDDEN,), HIDDEN)

    fc1_w = unif(ks[8], (30, 69), 69)
    fc1_b = unif(ks[9], (30,), 69)
    fc2_w = unif(ks[10], (10, 30), 30)
    fc2_b = unif(ks[11], (10,), 30)
    fc3_w = unif(ks[12], (4, 10), 10)
    fc3_b = unif(ks[13], (4,), 10)

    raw = dict(w_ih0=w_ih0, w_hh0=w_hh0, b_ih0=b_ih0, b_hh0=b_hh0,
               w_ih1=w_ih1, w_hh1=w_hh1, b_ih1=b_ih1, b_hh1=b_hh1,
               fc1_w=fc1_w, fc1_b=fc1_b, fc2_w=fc2_w, fc2_b=fc2_b,
               fc3_w=fc3_w, fc3_b=fc3_b)

    # --- compacted, lane-dense LSTM weight slab (264, 512) ---
    header = jnp.zeros((8, 512), jnp.float32)
    header = header.at[0:2, :].set(_stripe_gates(w_ih0.T, 2, 0))        # rows 0..1
    header = header.at[R_B0:R_B0 + 1, :].set(_stripe_bias(b_ih0 + b_hh0, 0))
    header = header.at[R_B1:R_B1 + 1, :].set(_stripe_bias(b_ih1 + b_hh1, 64))
    header = header.at[R_MLPB, 0:30].set(fc1_b)
    header = header.at[R_MLPB, 128:138].set(fc2_b)
    header = header.at[R_MLPB, 256:260].set(fc3_b)

    whh0_blk = _stripe_gates(w_hh0.T, 128, 0)                           # rows 0..63 valid

    w1_blk = jnp.zeros((128, 512), jnp.float32)
    w1_blk = w1_blk.at[0:64, :].set(_stripe_gates(w_ih1.T, 64, 64))     # h0 (low lanes)
    w1_blk = w1_blk.at[64:128, :].set(_stripe_gates(w_hh1.T, 64, 64))   # h1 (high lanes)

    w_slab = jnp.concatenate([header, whh0_blk, w1_blk], axis=0)        # (264, 512)
    assert w_slab.shape == (W_ROWS, 512)

    # --- MLP slab (128, 512), DMA'd asynchronously inside the kernel ---
    mlp_slab = jnp.zeros((128, 512), jnp.float32)
    fc1_wt = fc1_w.T                                                    # (69, 30)
    mlp_slab = mlp_slab.at[64:128, 0:30].set(fc1_wt[0:64, :])           # fc1w_h (h1 rows)
    mlp_slab = mlp_slab.at[0:5, 128:158].set(fc1_wt[64:69, :])          # fc1w_e (5 rows)
    mlp_slab = mlp_slab.at[0:30, 256:266].set(fc2_w.T)                  # fc2w
    mlp_slab = mlp_slab.at[0:10, 384:388].set(fc3_w.T)                  # fc3w

    return {"raw": raw, "w_slab": w_slab, "mlp_slab": mlp_slab}


# ---------------------------------------------------------------------------
# Pure-JAX reference replicating the PyTorch forward (for validation)
# ---------------------------------------------------------------------------
def _lstm_cell_ref(x_t, h, c, w_ih, w_hh, b_ih, b_hh):
    gates = x_t @ w_ih.T + h @ w_hh.T + b_ih + b_hh
    i = jax.nn.sigmoid(gates[:, 0:HIDDEN])
    f = jax.nn.sigmoid(gates[:, HIDDEN:2 * HIDDEN])
    g = jnp.tanh(gates[:, 2 * HIDDEN:3 * HIDDEN])
    o = jax.nn.sigmoid(gates[:, 3 * HIDDEN:4 * HIDDEN])
    c_new = f * c + i * g
    h_new = o * jnp.tanh(c_new)
    return h_new, c_new


def reference_forward(x, raw):
    x_seq = x[:8].reshape(SEQ, IN_FEAT)
    extras = x[8:13].reshape(1, 5)
    h0 = c0 = h1 = c1 = jnp.zeros((1, HIDDEN), jnp.float32)
    for t in range(SEQ):
        x_t = x_seq[t:t + 1, :]
        h0, c0 = _lstm_cell_ref(x_t, h0, c0, raw["w_ih0"], raw["w_hh0"],
                                raw["b_ih0"], raw["b_hh0"])
        h1, c1 = _lstm_cell_ref(h0, h1, c1, raw["w_ih1"], raw["w_hh1"],
                                raw["b_ih1"], raw["b_hh1"])
    datain = jnp.concatenate([h1, extras], axis=1)                      # (1, 69)
    out = jnp.maximum(datain @ raw["fc1_w"].T + raw["fc1_b"], 0.0)
    out = jnp.maximum(out @ raw["fc2_w"].T + raw["fc2_b"], 0.0)
    out = out @ raw["fc3_w"].T + raw["fc3_b"]
    return jax.nn.log_softmax(out, axis=-1)


if __name__ == "__main__":
    key = jax.random.PRNGKey(0)
    k_params, k_x = jax.random.split(key)
    params = make_params(k_params)
    x = jax.random.normal(k_x, (13,), jnp.float32)    # 13 raw sensor values

    out = jax.block_until_ready(actor_forward(x, params))
    ref = jax.block_until_ready(reference_forward(x, params["raw"]))

    assert out.shape == (1, 4), out.shape
    assert jnp.allclose(out, ref, atol=1e-5, rtol=1e-5), (out, ref)
    print("KERNEL_OK")
</pallas_src>

<mosaic_0001>
module attributes {stable_mosaic.version = 11 : i64} {
  func.func @actor_kernel(%arg0: memref<16xf32, #tpu.memory_space<smem>>, %arg1: memref<264x512xf32, #tpu.memory_space<vmem>>, %arg2: memref<128x512xf32, #tpu.memory_space<any>>, %arg3: memref<1x128xf32, #tpu.memory_space<vmem>>, %arg4: memref<128x512xf32, #tpu.memory_space<vmem>>, %arg5: memref<!tpu.dma_semaphore, #tpu.memory_space<semaphore_mem>>) attributes {dimension_semantics = [], scalar_prefetch = 0 : i64, scratch_operands = 2 : i64, tpu.core_type = #tpu.core_type<tc>} {
    tpu.enqueue_dma source(%arg2 : memref<128x512xf32, #tpu.memory_space<any>>) target(%arg4 : memref<128x512xf32, #tpu.memory_space<vmem>>) target_semaphore(%arg5 : memref<!tpu.dma_semaphore, #tpu.memory_space<semaphore_mem>>)
    %c2 = arith.constant 2 : index
    %c0 = arith.constant 0 : index
    %0 = vector.load %arg1[%c2, %c0] : memref<264x512xf32, #tpu.memory_space<vmem>>, vector<1x512xf32>
    %c3 = arith.constant 3 : index
    %c0_0 = arith.constant 0 : index
    %1 = vector.load %arg1[%c3, %c0_0] : memref<264x512xf32, #tpu.memory_space<vmem>>, vector<1x512xf32>
    %c0_1 = arith.constant 0 : index
    %c0_2 = arith.constant 0 : index
    %2 = vector.load %arg1[%c0_1, %c0_2] : memref<264x512xf32, #tpu.memory_space<vmem>>, vector<1x512xf32>
    %c1 = arith.constant 1 : index
    %c0_3 = arith.constant 0 : index
    %3 = vector.load %arg1[%c1, %c0_3] : memref<264x512xf32, #tpu.memory_space<vmem>>, vector<1x512xf32>
    %c0_4 = arith.constant 0 : index
    %4 = memref.load %arg0[%c0_4] : memref<16xf32, #tpu.memory_space<smem>>
    %5 = vector.broadcast %4 : f32 to vector<1x512xf32>
    %6 = arith.mulf %5, %2 : vector<1x512xf32>
    %c1_5 = arith.constant 1 : index
    %7 = memref.load %arg0[%c1_5] : memref<16xf32, #tpu.memory_space<smem>>
    %8 = vector.broadcast %7 : f32 to vector<1x512xf32>
    %9 = arith.mulf %8, %3 : vector<1x512xf32>
    %10 = arith.addf %6, %9 : vector<1x512xf32>
    %11 = arith.addf %10, %0 : vector<1x512xf32>
    %c2_6 = arith.constant 2 : index
    %12 = memref.load %arg0[%c2_6] : memref<16xf32, #tpu.memory_space<smem>>
    %13 = vector.broadcast %12 : f32 to vector<1x512xf32>
    %14 = arith.mulf %13, %2 : vector<1x512xf32>
    %c3_7 = arith.constant 3 : index
    %15 = memref.load %arg0[%c3_7] : memref<16xf32, #tpu.memory_space<smem>>
    %16 = vector.broadcast %15 : f32 to vector<1x512xf32>
    %17 = arith.mulf %16, %3 : vector<1x512xf32>
    %18 = arith.addf %14, %17 : vector<1x512xf32>
    %19 = arith.addf %18, %0 : vector<1x512xf32>
    %c4 = arith.constant 4 : index
    %20 = memref.load %arg0[%c4] : memref<16xf32, #tpu.memory_space<smem>>
    %21 = vector.broadcast %20 : f32 to vector<1x512xf32>
    %22 = arith.mulf %21, %2 : vector<1x512xf32>
    %c5 = arith.constant 5 : index
    %23 = memref.load %arg0[%c5] : memref<16xf32, #tpu.memory_space<smem>>
    %24 = vector.broadcast %23 : f32 to vector<1x512xf32>
    %25 = arith.mulf %24, %3 : vector<1x512xf32>
    %26 = arith.addf %22, %25 : vector<1x512xf32>
    %27 = arith.addf %26, %0 : vector<1x512xf32>
    %c6 = arith.constant 6 : index
    %28 = memref.load %arg0[%c6] : memref<16xf32, #tpu.memory_space<smem>>
    %29 = vector.broadcast %28 : f32 to vector<1x512xf32>
    %30 = arith.mulf %29, %2 : vector<1x512xf32>
    %c7 = arith.constant 7 : index
    %31 = memref.load %arg0[%c7] : memref<16xf32, #tpu.memory_space<smem>>
    %32 = vector.broadcast %31 : f32 to vector<1x512xf32>
    %33 = arith.mulf %32, %3 : vector<1x512xf32>
    %34 = arith.addf %30, %33 : vector<1x512xf32>
    %35 = arith.addf %34, %0 : vector<1x512xf32>
    %c8 = arith.constant 8 : index
    %36 = memref.load %arg0[%c8] : memref<16xf32, #tpu.memory_space<smem>>
    %c9 = arith.constant 9 : index
    %37 = memref.load %arg0[%c9] : memref<16xf32, #tpu.memory_space<smem>>
    %c10 = arith.constant 10 : index
    %38 = memref.load %arg0[%c10] : memref<16xf32, #tpu.memory_space<smem>>
    %c11 = arith.constant 11 : index
    %39 = memref.load %arg0[%c11] : memref<16xf32, #tpu.memory_space<smem>>
    %c12 = arith.constant 12 : index
    %40 = memref.load %arg0[%c12] : memref<16xf32, #tpu.memory_space<smem>>
    %cst = arith.constant 0.000000e+00 : f32
    %41 = vector.broadcast %cst : f32 to vector<1x128xf32>
    %cst_8 = arith.constant 0.000000e+00 : f32
    %42 = vector.broadcast %cst_8 : f32 to vector<1x128xf32>
    %43 = vector.extract_strided_slice %11 {offsets = [0, 0], sizes = [1, 384], strides = [1, 1]} : vector<1x512xf32> to vector<1x384xf32>
    %44 = arith.negf %43 : vector<1x384xf32>
    %45 = math.exp %44 : vector<1x384xf32>
    %cst_9 = arith.constant 1.000000e+00 : f32
    %46 = vector.broadcast %cst_9 : f32 to vector<1x384xf32>
    %47 = arith.addf %46, %45 : vector<1x384xf32>
    %48 = arith.divf %46, %47 : vector<1x384xf32>
    %49 = vector.extract_strided_slice %48 {offsets = [0, 0], sizes = [1, 128], strides = [1, 1]} : vector<1x384xf32> to vector<1x128xf32>
    %50 = vector.extract_strided_slice %48 {offsets = [0, 128], sizes = [1, 128], strides = [1, 1]} : vector<1x384xf32> to vector<1x128xf32>
    %51 = vector.extract_strided_slice %48 {offsets = [0, 256], sizes = [1, 128], strides = [1, 1]} : vector<1x384xf32> to vector<1x128xf32>
    %52 = vector.extract_strided_slice %11 {offsets = [0, 384], sizes = [1, 128], strides = [1, 1]} : vector<1x512xf32> to vector<1x128xf32>
    %53 = math.tanh %52 : vector<1x128xf32>
    %54 = arith.mulf %50, %41 : vector<1x128xf32>
    %55 = arith.mulf %49, %53 : vector<1x128xf32>
    %56 = arith.addf %54, %55 : vector<1x128xf32>
    %57 = math.tanh %56 : vector<1x128xf32>
    %58 = arith.mulf %51, %57 : vector<1x128xf32>
    %c136 = arith.constant 136 : index
    %c0_10 = arith.constant 0 : index
    %59 = vector.load %arg1[%c136, %c0_10] : memref<264x512xf32, #tpu.memory_space<vmem>>, vector<128x512xf32>
    %cst_11 = arith.constant dense<0.000000e+00> : vector<1x512xf32>
    %60 = tpu.matmul %58, %59, %cst_11 {dimension_numbers = #tpu.dot_dimension_numbers<[1], [0], [0], [1], [0, 0, 1, 1], [], []>} : vector<1x128xf32>, vector<128x512xf32>, vector<1x512xf32> -> vector<1x512xf32>
    %61 = arith.addf %60, %1 : vector<1x512xf32>
    %62 = vector.extract_strided_slice %61 {offsets = [0, 0], sizes = [1, 384], strides = [1, 1]} : vector<1x512xf32> to vector<1x384xf32>
    %63 = arith.negf %62 : vector<1x384xf32>
    %64 = math.exp %63 : vector<1x384xf32>
    %cst_12 = arith.constant 1.000000e+00 : f32
    %65 = vector.broadcast %cst_12 : f32 to vector<1x384xf32>
    %66 = arith.addf %65, %64 : vector<1x384xf32>
    %67 = arith.divf %65, %66 : vector<1x384xf32>
    %68 = vector.extract_strided_slice %67 {offsets = [0, 0], sizes = [1, 128], strides = [1, 1]} : vector<1x384xf32> to vector<1x128xf32>
    %69 = vector.extract_strided_slice %67 {offsets = [0, 128], sizes = [1, 128], strides = [1, 1]} : vector<1x384xf32> to vector<1x128xf32>
    %70 = vector.extract_strided_slice %67 {offsets = [0, 256], sizes = [1, 128], strides = [1, 1]} : vector<1x384xf32> to vector<1x128xf32>
    %71 = vector.extract_strided_slice %61 {offsets = [0, 384], sizes = [1, 128], strides = [1, 1]} : vector<1x512xf32> to vector<1x128xf32>
    %72 = math.tanh %71 : vector<1x128xf32>
    %73 = arith.mulf %69, %42 : vector<1x128xf32>
    %74 = arith.mulf %68, %72 : vector<1x128xf32>
    %75 = arith.addf %73, %74 : vector<1x128xf32>
    %76 = math.tanh %75 : vector<1x128xf32>
    %77 = arith.mulf %70, %76 : vector<1x128xf32>
    %c136_13 = arith.constant 136 : index
    %c0_14 = arith.constant 0 : index
    %78 = vector.load %arg1[%c136_13, %c0_14] : memref<264x512xf32, #tpu.memory_space<vmem>>, vector<128x512xf32>
    %cst_15 = arith.constant dense<0.000000e+00> : vector<1x512xf32>
    %79 = tpu.matmul %77, %78, %cst_15 {dimension_numbers = #tpu.dot_dimension_numbers<[1], [0], [0], [1], [0, 0, 1, 1], [], []>} : vector<1x128xf32>, vector<128x512xf32>, vector<1x512xf32> -> vector<1x512xf32>
    %c8_16 = arith.constant 8 : index
    %c0_17 = arith.constant 0 : index
    %80 = vector.load %arg1[%c8_16, %c0_17] : memref<264x512xf32, #tpu.memory_space<vmem>>, vector<128x512xf32>
    %cst_18 = arith.constant dense<0.000000e+00> : vector<1x512xf32>
    %81 = tpu.matmul %58, %80, %cst_18 {dimension_numbers = #tpu.dot_dimension_numbers<[1], [0], [0], [1], [0, 0, 1, 1], [], []>} : vector<1x128xf32>, vector<128x512xf32>, vector<1x512xf32> -> vector<1x512xf32>
    %82 = arith.addf %19, %81 : vector<1x512xf32>
    %83 = vector.extract_strided_slice %82 {offsets = [0, 0], sizes = [1, 384], strides = [1, 1]} : vector<1x512xf32> to vector<1x384xf32>
    %84 = arith.negf %83 : vector<1x384xf32>
    %85 = math.exp %84 : vector<1x384xf32>
    %cst_19 = arith.constant 1.000000e+00 : f32
    %86 = vector.broadcast %cst_19 : f32 to vector<1x384xf32>
    %87 = arith.addf %86, %85 : vector<1x384xf32>
    %88 = arith.divf %86, %87 : vector<1x384xf32>
    %89 = vector.extract_strided_slice %88 {offsets = [0, 0], sizes = [1, 128], strides = [1, 1]} : vector<1x384xf32> to vector<1x128xf32>
    %90 = vector.extract_strided_slice %88 {offsets = [0, 128], sizes = [1, 128], strides = [1, 1]} : vector<1x384xf32> to vector<1x128xf32>
    %91 = vector.extract_strided_slice %88 {offsets = [0, 256], sizes = [1, 128], strides = [1, 1]} : vector<1x384xf32> to vector<1x128xf32>
    %92 = vector.extract_strided_slice %82 {offsets = [0, 384], sizes = [1, 128], strides = [1, 1]} : vector<1x512xf32> to vector<1x128xf32>
    %93 = math.tanh %92 : vector<1x128xf32>
    %94 = arith.mulf %90, %56 : vector<1x128xf32>
    %95 = arith.mulf %89, %93 : vector<1x128xf32>
    %96 = arith.addf %94, %95 : vector<1x128xf32>
    %97 = math.tanh %96 : vector<1x128xf32>
    %98 = arith.mulf %91, %97 : vector<1x128xf32>
    %c136_20 = arith.constant 136 : index
    %c0_21 = arith.constant 0 : index
    %99 = vector.load %arg1[%c136_20, %c0_21] : memref<264x512xf32, #tpu.memory_space<vmem>>, vector<128x512xf32>
    %cst_22 = arith.constant dense<0.000000e+00> : vector<1x512xf32>
    %100 = tpu.matmul %98, %99, %cst_22 {dimension_numbers = #tpu.dot_dimension_numbers<[1], [0], [0], [1], [0, 0, 1, 1], [], []>} : vector<1x128xf32>, vector<128x512xf32>, vector<1x512xf32> -> vector<1x512xf32>
    %101 = arith.addf %100, %1 : vector<1x512xf32>
    %102 = arith.addf %101, %79 : vector<1x512xf32>
    %103 = vector.extract_strided_slice %102 {offsets = [0, 0], sizes = [1, 384], strides = [1, 1]} : vector<1x512xf32> to vector<1x384xf32>
    %104 = arith.negf %103 : vector<1x384xf32>
    %105 = math.exp %104 : vector<1x384xf32>
    %cst_23 = arith.constant 1.000000e+00 : f32
    %106 = vector.broadcast %cst_23 : f32 to vector<1x384xf32>
    %107 = arith.addf %106, %105 : vector<1x384xf32>
    %108 = arith.divf %106, %107 : vector<1x384xf32>
    %109 = vector.extract_strided_slice %108 {offsets = [0, 0], sizes = [1, 128], strides = [1, 1]} : vector<1x384xf32> to vector<1x128xf32>
    %110 = vector.extract_strided_slice %108 {offsets = [0, 128], sizes = [1, 128], strides = [1, 1]} : vector<1x384xf32> to vector<1x128xf32>
    %111 = vector.extract_strided_slice %108 {offsets = [0, 256], sizes = [1, 128], strides = [1, 1]} : vector<1x384xf32> to vector<1x128xf32>
    %112 = vector.extract_strided_slice %102 {offsets = [0, 384], sizes = [1, 128], strides = [1, 1]} : vector<1x512xf32> to vector<1x128xf32>
    %113 = math.tanh %112 : vector<1x128xf32>
    %114 = arith.mulf %110, %75 : vector<1x128xf32>
    %115 = arith.mulf %109, %113 : vector<1x128xf32>
    %116 = arith.addf %114, %115 : vector<1x128xf32>
    %117 = math.tanh %116 : vector<1x128xf32>
    %118 = arith.mulf %111, %117 : vector<1x128xf32>
    %c136_24 = arith.constant 136 : index
    %c0_25 = arith.constant 0 : index
    %119 = vector.load %arg1[%c136_24, %c0_25] : memref<264x512xf32, #tpu.memory_space<vmem>>, vector<128x512xf32>
    %cst_26 = arith.constant dense<0.000000e+00> : vector<1x512xf32>
    %120 = tpu.matmul %118, %119, %cst_26 {dimension_numbers = #tpu.dot_dimension_numbers<[1], [0], [0], [1], [0, 0, 1, 1], [], []>} : vector<1x128xf32>, vector<128x512xf32>, vector<1x512xf32> -> vector<1x512xf32>
    %c8_27 = arith.constant 8 : index
    %c0_28 = arith.constant 0 : index
    %121 = vector.load %arg1[%c8_27, %c0_28] : memref<264x512xf32, #tpu.memory_space<vmem>>, vector<128x512xf32>
    %cst_29 = arith.constant dense<0.000000e+00> : vector<1x512xf32>
    %122 = tpu.matmul %98, %121, %cst_29 {dimension_numbers = #tpu.dot_dimension_numbers<[1], [0], [0], [1], [0, 0, 1, 1], [], []>} : vector<1x128xf32>, vector<128x512xf32>, vector<1x512xf32> -> vector<1x512xf32>
    %123 = arith.addf %27, %122 : vector<1x512xf32>
    %124 = vector.extract_strided_slice %123 {offsets = [0, 0], sizes = [1, 384], strides = [1, 1]} : vector<1x512xf32> to vector<1x384xf32>
    %125 = arith.negf %124 : vector<1x384xf32>
    %126 = math.exp %125 : vector<1x384xf32>
    %cst_30 = arith.constant 1.000000e+00 : f32
    %127 = vector.broadcast %cst_30 : f32 to vector<1x384xf32>
    %128 = arith.addf %127, %126 : vector<1x384xf32>
    %129 = arith.divf %127, %128 : vector<1x384xf32>
    %130 = vector.extract_strided_slice %129 {offsets = [0, 0], sizes = [1, 128], strides = [1, 1]} : vector<1x384xf32> to vector<1x128xf32>
    %131 = vector.extract_strided_slice %129 {offsets = [0, 128], sizes = [1, 128], strides = [1, 1]} : vector<1x384xf32> to vector<1x128xf32>
    %132 = vector.extract_strided_slice %129 {offsets = [0, 256], sizes = [1, 128], strides = [1, 1]} : vector<1x384xf32> to vector<1x128xf32>
    %133 = vector.extract_strided_slice %123 {offsets = [0, 384], sizes = [1, 128], strides = [1, 1]} : vector<1x512xf32> to vector<1x128xf32>
    %134 = math.tanh %133 : vector<1x128xf32>
    %135 = arith.mulf %131, %96 : vector<1x128xf32>
    %136 = arith.mulf %130, %134 : vector<1x128xf32>
    %137 = arith.addf %135, %136 : vector<1x128xf32>
    %138 = math.tanh %137 : vector<1x128xf32>
    %139 = arith.mulf %132, %138 : vector<1x128xf32>
    %c136_31 = arith.constant 136 : index
    %c0_32 = arith.constant 0 : index
    %140 = vector.load %arg1[%c136_31, %c0_32] : memref<264x512xf32, #tpu.memory_space<vmem>>, vector<128x512xf32>
    %cst_33 = arith.constant dense<0.000000e+00> : vector<1x512xf32>
    %141 = tpu.matmul %139, %140, %cst_33 {dimension_numbers = #tpu.dot_dimension_numbers<[1], [0], [0], [1], [0, 0, 1, 1], [], []>} : vector<1x128xf32>, vector<128x512xf32>, vector<1x512xf32> -> vector<1x512xf32>
    %142 = arith.addf %141, %1 : vector<1x512xf32>
    %143 = arith.addf %142, %120 : vector<1x512xf32>
    %144 = vector.extract_strided_slice %143 {offsets = [0, 0], sizes = [1, 384], strides = [1, 1]} : vector<1x512xf32> to vector<1x384xf32>
    %145 = arith.negf %144 : vector<1x384xf32>
    %146 = math.exp %145 : vector<1x384xf32>
    %cst_34 = arith.constant 1.000000e+00 : f32
    %147 = vector.broadcast %cst_34 : f32 to vector<1x384xf32>
    %148 = arith.addf %147, %146 : vector<1x384xf32>
    %149 = arith.divf %147, %148 : vector<1x384xf32>
    %150 = vector.extract_strided_slice %149 {offsets = [0, 0], sizes = [1, 128], strides = [1, 1]} : vector<1x384xf32> to vector<1x128xf32>
    %151 = vector.extract_strided_slice %149 {offsets = [0, 128], sizes = [1, 128], strides = [1, 1]} : vector<1x384xf32> to vector<1x128xf32>
    %152 = vector.extract_strided_slice %149 {offsets = [0, 256], sizes = [1, 128], strides = [1, 1]} : vector<1x384xf32> to vector<1x128xf32>
    %153 = vector.extract_strided_slice %143 {offsets = [0, 384], sizes = [1, 128], strides = [1, 1]} : vector<1x512xf32> to vector<1x128xf32>
    %154 = math.tanh %153 : vector<1x128xf32>
    %155 = arith.mulf %151, %116 : vector<1x128xf32>
    %156 = arith.mulf %150, %154 : vector<1x128xf32>
    %157 = arith.addf %155, %156 : vector<1x128xf32>
    %158 = math.tanh %157 : vector<1x128xf32>
    %159 = arith.mulf %152, %158 : vector<1x128xf32>
    %c136_35 = arith.constant 136 : index
    %c0_36 = arith.constant 0 : index
    %160 = vector.load %arg1[%c136_35, %c0_36] : memref<264x512xf32, #tpu.memory_space<vmem>>, vector<128x512xf32>
    %cst_37 = arith.constant dense<0.000000e+00> : vector<1x512xf32>
    %161 = tpu.matmul %159, %160, %cst_37 {dimension_numbers = #tpu.dot_dimension_numbers<[1], [0], [0], [1], [0, 0, 1, 1], [], []>} : vector<1x128xf32>, vector<128x512xf32>, vector<1x512xf32> -> vector<1x512xf32>
    %c8_38 = arith.constant 8 : index
    %c0_39 = arith.constant 0 : index
    %162 = vector.load %arg1[%c8_38, %c0_39] : memref<264x512xf32, #tpu.memory_space<vmem>>, vector<128x512xf32>
    %cst_40 = arith.constant dense<0.000000e+00> : vector<1x512xf32>
    %163 = tpu.matmul %139, %162, %cst_40 {dimension_numbers = #tpu.dot_dimension_numbers<[1], [0], [0], [1], [0, 0, 1, 1], [], []>} : vector<1x128xf32>, vector<128x512xf32>, vector<1x512xf32> -> vector<1x512xf32>
    %164 = arith.addf %35, %163 : vector<1x512xf32>
    %165 = vector.extract_strided_slice %164 {offsets = [0, 0], sizes = [1, 384], strides = [1, 1]} : vector<1x512xf32> to vector<1x384xf32>
    %166 = arith.negf %165 : vector<1x384xf32>
    %167 = math.exp %166 : vector<1x384xf32>
    %cst_41 = arith.constant 1.000000e+00 : f32
    %168 = vector.broadcast %cst_41 : f32 to vector<1x384xf32>
    %169 = arith.addf %168, %167 : vector<1x384xf32>
    %170 = arith.divf %168, %169 : vector<1x384xf32>
    %171 = vector.extract_strided_slice %170 {offsets = [0, 0], sizes = [1, 128], strides = [1, 1]} : vector<1x384xf32> to vector<1x128xf32>
    %172 = vector.extract_strided_slice %170 {offsets = [0, 128], sizes = [1, 128], strides = [1, 1]} : vector<1x384xf32> to vector<1x128xf32>
    %173 = vector.extract_strided_slice %170 {offsets = [0, 256], sizes = [1, 128], strides = [1, 1]} : vector<1x384xf32> to vector<1x128xf32>
    %174 = vector.extract_strided_slice %164 {offsets = [0, 384], sizes = [1, 128], strides = [1, 1]} : vector<1x512xf32> to vector<1x128xf32>
    %175 = math.tanh %174 : vector<1x128xf32>
    %176 = arith.mulf %172, %137 : vector<1x128xf32>
    %177 = arith.mulf %171, %175 : vector<1x128xf32>
    %178 = arith.addf %176, %177 : vector<1x128xf32>
    %179 = math.tanh %178 : vector<1x128xf32>
    %180 = arith.mulf %173, %179 : vector<1x128xf32>
    %c136_42 = arith.constant 136 : index
    %c0_43 = arith.constant 0 : index
    %181 = vector.load %arg1[%c136_42, %c0_43] : memref<264x512xf32, #tpu.memory_space<vmem>>, vector<128x512xf32>
    %cst_44 = arith.constant dense<0.000000e+00> : vector<1x512xf32>
    %182 = tpu.matmul %180, %181, %cst_44 {dimension_numbers = #tpu.dot_dimension_numbers<[1], [0], [0], [1], [0, 0, 1, 1], [], []>} : vector<1x128xf32>, vector<128x512xf32>, vector<1x512xf32> -> vector<1x512xf32>
    %183 = arith.addf %182, %1 : vector<1x512xf32>
    %184 = arith.addf %183, %161 : vector<1x512xf32>
    %185 = vector.extract_strided_slice %184 {offsets = [0, 0], sizes = [1, 384], strides = [1, 1]} : vector<1x512xf32> to vector<1x384xf32>
    %186 = arith.negf %185 : vector<1x384xf32>
    %187 = math.exp %186 : vector<1x384xf32>
    %cst_45 = arith.constant 1.000000e+00 : f32
    %188 = vector.broadcast %cst_45 : f32 to vector<1x384xf32>
    %189 = arith.addf %188, %187 : vector<1x384xf32>
    %190 = arith.divf %188, %189 : vector<1x384xf32>
    %191 = vector.extract_strided_slice %190 {offsets = [0, 0], sizes = [1, 128], strides = [1, 1]} : vector<1x384xf32> to vector<1x128xf32>
    %192 = vector.extract_strided_slice %190 {offsets = [0, 128], sizes = [1, 128], strides = [1, 1]} : vector<1x384xf32> to vector<1x128xf32>
    %193 = vector.extract_strided_slice %190 {offsets = [0, 256], sizes = [1, 128], strides = [1, 1]} : vector<1x384xf32> to vector<1x128xf32>
    %194 = vector.extract_strided_slice %184 {offsets = [0, 384], sizes = [1, 128], strides = [1, 1]} : vector<1x512xf32> to vector<1x128xf32>
    %195 = math.tanh %194 : vector<1x128xf32>
    %196 = arith.mulf %192, %157 : vector<1x128xf32>
    %197 = arith.mulf %191, %195 : vector<1x128xf32>
    %198 = arith.addf %196, %197 : vector<1x128xf32>
    %199 = math.tanh %198 : vector<1x128xf32>
    %200 = arith.mulf %193, %199 : vector<1x128xf32>
    tpu.wait_dma2 semaphore(%arg5 : memref<!tpu.dma_semaphore, #tpu.memory_space<semaphore_mem>>) src(%arg2 : memref<128x512xf32, #tpu.memory_space<any>>) dst(%arg4 : memref<128x512xf32, #tpu.memory_space<vmem>>)
    %c4_46 = arith.constant 4 : index
    %c0_47 = arith.constant 0 : index
    %201 = vector.load %arg1[%c4_46, %c0_47] : memref<264x512xf32, #tpu.memory_space<vmem>>, vector<1x128xf32>
    %c4_48 = arith.constant 4 : index
    %c128 = arith.constant 128 : index
    %202 = vector.load %arg1[%c4_48, %c128] : memref<264x512xf32, #tpu.memory_space<vmem>>, vector<1x128xf32>
    %c4_49 = arith.constant 4 : index
    %c256 = arith.constant 256 : index
    %203 = vector.load %arg1[%c4_49, %c256] : memref<264x512xf32, #tpu.memory_space<vmem>>, vector<1x128xf32>
    %c0_50 = arith.constant 0 : index
    %c0_51 = arith.constant 0 : index
    %204 = vector.load %arg4[%c0_50, %c0_51] : memref<128x512xf32, #tpu.memory_space<vmem>>, vector<128x128xf32>
    %cst_52 = arith.constant dense<0.000000e+00> : vector<1x128xf32>
    %205 = tpu.matmul %200, %204, %cst_52 {dimension_numbers = #tpu.dot_dimension_numbers<[1], [0], [0], [1], [0, 0, 1, 1], [], []>} : vector<1x128xf32>, vector<128x128xf32>, vector<1x128xf32> -> vector<1x128xf32>
    %206 = arith.addf %205, %201 : vector<1x128xf32>
    %c0_53 = arith.constant 0 : index
    %c128_54 = arith.constant 128 : index
    %207 = vector.load %arg4[%c0_53, %c128_54] : memref<128x512xf32, #tpu.memory_space<vmem>>, vector<1x128xf32>
    %208 = vector.broadcast %36 : f32 to vector<1x128xf32>
    %209 = arith.mulf %208, %207 : vector<1x128xf32>
    %210 = arith.addf %206, %209 : vector<1x128xf32>
    %c1_55 = arith.constant 1 : index
    %c128_56 = arith.constant 128 : index
    %211 = vector.load %arg4[%c1_55, %c128_56] : memref<128x512xf32, #tpu.memory_space<vmem>>, vector<1x128xf32>
    %212 = vector.broadcast %37 : f32 to vector<1x128xf32>
    %213 = arith.mulf %212, %211 : vector<1x128xf32>
    %214 = arith.addf %210, %213 : vector<1x128xf32>
    %c2_57 = arith.constant 2 : index
    %c128_58 = arith.constant 128 : index
    %215 = vector.load %arg4[%c2_57, %c128_58] : memref<128x512xf32, #tpu.memory_space<vmem>>, vector<1x128xf32>
    %216 = vector.broadcast %38 : f32 to vector<1x128xf32>
    %217 = arith.mulf %216, %215 : vector<1x128xf32>
    %218 = arith.addf %214, %217 : vector<1x128xf32>
    %c3_59 = arith.constant 3 : index
    %c128_60 = arith.constant 128 : index
    %219 = vector.load %arg4[%c3_59, %c128_60] : memref<128x512xf32, #tpu.memory_space<vmem>>, vector<1x128xf32>
    %220 = vector.broadcast %39 : f32 to vector<1x128xf32>
    %221 = arith.mulf %220, %219 : vector<1x128xf32>
    %222 = arith.addf %218, %221 : vector<1x128xf32>
    %c4_61 = arith.constant 4 : index
    %c128_62 = arith.constant 128 : index
    %223 = vector.load %arg4[%c4_61, %c128_62] : memref<128x512xf32, #tpu.memory_space<vmem>>, vector<1x128xf32>
    %224 = vector.broadcast %40 : f32 to vector<1x128xf32>
    %225 = arith.mulf %224, %223 : vector<1x128xf32>
    %226 = arith.addf %222, %225 : vector<1x128xf32>
    %cst_63 = arith.constant 0.000000e+00 : f32
    %227 = vector.broadcast %cst_63 : f32 to vector<1x128xf32>
    %228 = arith.maximumf %226, %227 : vector<1x128xf32>
    %c0_64 = arith.constant 0 : index
    %c256_65 = arith.constant 256 : index
    %229 = vector.load %arg4[%c0_64, %c256_65] : memref<128x512xf32, #tpu.memory_space<vmem>>, vector<128x128xf32>
    %cst_66 = arith.constant dense<0.000000e+00> : vector<1x128xf32>
    %230 = tpu.matmul %228, %229, %cst_66 {dimension_numbers = #tpu.dot_dimension_numbers<[1], [0], [0], [1], [0, 0, 1, 1], [], []>} : vector<1x128xf32>, vector<128x128xf32>, vector<1x128xf32> -> vector<1x128xf32>
    %231 = arith.addf %230, %202 : vector<1x128xf32>
    %cst_67 = arith.constant 0.000000e+00 : f32
    %232 = vector.broadcast %cst_67 : f32 to vector<1x128xf32>
    %233 = arith.maximumf %231, %232 : vector<1x128xf32>
    %c0_68 = arith.constant 0 : index
    %c384 = arith.constant 384 : index
    %234 = vector.load %arg4[%c0_68, %c384] : memref<128x512xf32, #tpu.memory_space<vmem>>, vector<128x128xf32>
    %cst_69 = arith.constant dense<0.000000e+00> : vector<1x128xf32>
    %235 = tpu.matmul %233, %234, %cst_69 {dimension_numbers = #tpu.dot_dimension_numbers<[1], [0], [0], [1], [0, 0, 1, 1], [], []>} : vector<1x128xf32>, vector<128x128xf32>, vector<1x128xf32> -> vector<1x128xf32>
    %236 = arith.addf %235, %203 : vector<1x128xf32>
    %237 = tpu.iota {dimensions = array<i32: 1>} : vector<1x128xi32>
    %c4_i32 = arith.constant 4 : i32
    %238 = vector.broadcast %c4_i32 : i32 to vector<1x128xi32>
    %239 = arith.cmpi slt, %237, %238 : vector<1x128xi32>
    %cst_70 = arith.constant -1.000000e+30 : f32
    %240 = vector.broadcast %cst_70 : f32 to vector<1x128xf32>
    %241 = arith.select %239, %236, %240 : vector<1x128xi1>, vector<1x128xf32>
    %cst_71 = arith.constant dense<0xFF800000> : vector<1xf32>
    %242 = vector.multi_reduction <maximumf>, %241, %cst_71 [1] : vector<1x128xf32> to vector<1xf32>
    %243 = vector.shape_cast %242 : vector<1xf32> to vector<1x1xf32>
    %244 = vector.broadcast %243 : vector<1x1xf32> to vector<1x128xf32>
    %245 = arith.subf %241, %244 : vector<1x128xf32>
    %246 = math.exp %245 : vector<1x128xf32>
    %cst_72 = arith.constant dense<0.000000e+00> : vector<1xf32>
    %247 = vector.multi_reduction <add>, %246, %cst_72 [1] : vector<1x128xf32> to vector<1xf32>
    %248 = vector.shape_cast %247 : vector<1xf32> to vector<1x1xf32>
    %249 = math.log %248 : vector<1x1xf32>
    %250 = vector.broadcast %249 : vector<1x1xf32> to vector<1x128xf32>
    %251 = arith.subf %245, %250 : vector<1x128xf32>
    %c0_73 = arith.constant 0 : index
    %c0_74 = arith.constant 0 : index
    %252 = vector.load %arg3[%c0_73, %c0_74] : memref<1x128xf32, #tpu.memory_space<vmem>>, vector<1x128xf32>
    tpu.vector_store %arg3[%c0_73, %c0_74], %251 {strides = array<i32>} : memref<1x128xf32, #tpu.memory_space<vmem>>, vector<1x128xf32>,
    return
  }
}

</mosaic_0001>

<bundles_post_ra>
// kernel: tpu_custom_call.1
= control target key start
LH: loop header
LB: loop body
LE: loop exit
PB: predicated region body
PF: predicated region fallthrough
CT: control target
= control target key end

     0   :  { %8 = vsyncpa [#allocation7], 0  ;;  %s4007_s0 = inlined_call_operand.hbm [shape: f32[16], index: 0, kind: input, shape index: {}]   ;;  %s4008_s1 = inlined_call_operand.hbm [shape: f32[264,512], index: 1, kind: input, shape index: {}]   ;;  %s4009_s2 = inlined_call_operand.hbm [shape: f32[128,512], index: 2, kind: input, shape index: {}]   ;;  %s4010_s3 = inlined_call_operand.hbm [shape: f32[1,128], index: 3, kind: output, shape index: {}]  }
   0x1   :  { %9 = vsyncpa [#allocation5], 0 }
   0x2   :  { %10 = vsyncpa [#allocation6], 0  ;;  %s2768_s12 = smov [#allocation4]   ;;  %s2769_s15 = smov [#allocation8]  }
   0x3   :  { %18 = dma.hbm_to_smem %s4007_s0, 16, %s2768_s12, [#allocation7]  }
   0x4   :  { %s24_s16 = sshll.u32 %s2769_s15, 4  ;;  %s25_s16 = int_to_ptr.vmem [resolvable:$true] %s24_s16 }
   0x5   :  { %s2708_s17 = scalar_lea.vmem %s25_s16, 16896  ;;  %p2713_p1 = scmp.lt.s32.totalorder %s25_s16, %s25_s16 }
   0x6   :  { %p2709_p0 = scmp.ne.s32.totalorder %s25_s16, %s2708_s17  ;;  %p2714_p2 = scmp.lt.s32.totalorder %s2708_s17, %s2708_s17 }
   0x8   :  { %p2715_p3 = por %p2714_p2, %p2713_p1 }
   0xa   :  { %p2716_p4 = pnand %p2715_p3, %p2709_p0 }
   0xc   :  { %2719 = shalt.err (!%p2716_p4)
}
   0xd   :  { %s2770_s18 = smov 512   ;;  %s2771_s19 = smov 32  }
   0xe   :  { %30 = dma.hbm_to_vmem [thread:$0]  %s4008_s1, 16896, %s25_s16, [#allocation5], %s2770_s18, %s2770_s18, %s2771_s19  }
   0xf   :  { %2760 = dma.done.wait [#allocation7], 16  }
  0x10   :  { %2761 = vsyncadd [#allocation7], 4294967280 }
  0x11   :  { %2762 = dma.done.wait [#allocation5], 16896  }
  0x12   :  { %2763 = vsyncadd [#allocation5], 4294950400 }
  0x13   :  { %37 = sfence }
  0x14   :  { %s2803_s0 = sld [smem:[#allocation4 + $0x8]]  ;;  %v2805_v0 = vld [vmem:[#allocation8 + $0x408] sm:$0xff]  ;;  %v2807_v1 = vld [vmem:[#allocation8 + $0x400] sm:$0xff]  ;;  %v4011_v4 = vmov 0.0   ;;  %v2836_v9 = vld [vmem:[#allocation8 + $0x418] sm:$0xff]  ;;  %s2774_s6 = smov [#allocation2]  }
  0x15   :  { %4184 = vst [vmem:[#allocation18_spill] sm:$0xff] %v2805_v0  ;;  %v2809_v2 = vld [vmem:[#allocation8 + $0x3e8] sm:$0xff]  ;;  %s2811_s22 = sld [smem:[#allocation4 + $0x9]]  ;;  %198 = vmatprep.subr.mxu0 %v2805_v0  ;;  %v2814_v3 = vld [vmem:[#allocation8 + $0x3e0] sm:$0xff]  ;;  %262 = vmatprep.mubr.f32.mxu0 %v4011_v4  ;;  %v2842_v11 = vld [vmem:[#allocation8 + $0x410] sm:$0xff]  ;;  %s45_s7 = sshll.u32 %s2774_s6, 4  ;;  %s46_s7 = int_to_ptr.vmem [resolvable:$true] %s45_s7 }
  0x16   :  { %s2817_s1 = sld [smem:[#allocation4 + $0xa]]  ;;  %199 = vmatpush1.msra.mxu0 %v2807_v1  ;;  %v2820_v5 = vld [vmem:[#allocation8 + $0x3c8] sm:$0xff]  ;;  %333 = vmatprep.mubr.f32.mxu1 %v4011_v4  ;;  %v2826_v6 = vld [vmem:[#allocation8 + $0x3c0] sm:$0xff]  ;;  %v2850_v13 = vld [vmem:[#allocation8 + $0x3f8] sm:$0xff]  ;;  %s2728_s8 = scalar_lea.vmem %s46_s7, 8192 }
  0x17   :  { %s2823_s23 = sld [smem:[#allocation4 + $0xb]]  ;;  %200 = vmatprep.subr.mxu0 %v2809_v2  ;;  %v2831_v7 = vld [vmem:[#allocation8 + $0x3a8] sm:$0xff]  ;;  %v2834_v8 = vld [vmem:[#allocation8 + $0x3a0] sm:$0xff]  ;;  %269 = vmatprep.subr.mxu1 %v2836_v9  ;;  %v2852_v14 = vld [vmem:[#allocation8 + $0x3f0] sm:$0xff]  ;;  %p2729_p5 = scmp.ne.s32.totalorder %s46_s7, %s2728_s8 }
  0x18   :  { %s2828_s24 = sld [smem:[#allocation4 + $0xc]]  ;;  %201 = vmatpush1.msra.mxu0 %v2814_v3  ;;  %v2839_v10 = vld [vmem:[#allocation8 + $0x388] sm:$0xff]  ;;  %v2847_v12 = vld [vmem:[#allocation8 + $0x380] sm:$0xff]  ;;  %270 = vmatpush1.msra.mxu1 %v2842_v11  ;;  %v2860_v16 = vld [vmem:[#allocation8 + $0x3d8] sm:$0xff]  ;;  %p2733_p6 = scmp.lt.s32.totalorder %s46_s7, %s46_s7 }
  0x19   :  { %202 = vmatprep.subr.mxu0 %v2820_v5  ;;  %s2844_s25 = sld [smem:[#allocation4]]  ;;  %v2857_v15 = vld [vmem:[#allocation8 + $0x368] sm:$0xff]  ;;  %271 = vmatprep.subr.mxu1 %v2850_v13  ;;  %v2863_v17 = vld [vmem:[#allocation8 + $0x360] sm:$0xff]  ;;  %v2866_v18 = vld [vmem:[#allocation8 + $0x3d0] sm:$0xff]  ;;  %p2734_p7 = scmp.lt.s32.totalorder %s2728_s8, %s2728_s8 }
  0x1a   :  { %203 = vmatpush1.msra.mxu0 %v2826_v6  ;;  %s2854_s26 = sld [smem:[#allocation4 + $0x1]]  ;;  %272 = vmatpush1.msra.mxu1 %v2852_v14  ;;  %v2868_v19 = vld [vmem:[#allocation8 + $0x3b8] sm:$0xff]  ;;  %v2871_v20 = vld [vmem:[#allocation8 + $0x348] sm:$0xff]  ;;  %v2874_v21 = vld [vmem:[#allocation8 + $0x3b0] sm:$0xff] }
  0x1b   :  { %204 = vmatprep.subr.mxu0 %v2831_v7  ;;  %273 = vmatprep.subr.mxu1 %v2860_v16  ;;  %v2877_v22 = vld [vmem:[#allocation8 + $0x340] sm:$0xff]  ;;  %v2880_v23 = vld [vmem:[#allocation8 + $0x398] sm:$0xff]  ;;  %v2883_v24 = vld [vmem:[#allocation8 + $0x328] sm:$0xff]  ;;  %s2268_s27 = sld [smem:[#allocation4 + $0x2]]  ;;  %p2735_p8 = por %p2734_p7, %p2733_p6 }
  0x1c   :  { %205 = vmatpush1.msra.mxu0 %v2834_v8  ;;  %274 = vmatpush1.msra.mxu1 %v2866_v18  ;;  %v2886_v25 = vld [vmem:[#allocation8 + $0x390] sm:$0xff]  ;;  %v2889_v26 = vld [vmem:[#allocation8 + $0x320] sm:$0xff]  ;;  %v2892_v27 = vld [vmem:[#allocation8 + $0x378] sm:$0xff]  ;;  %s2269_s28 = sld [smem:[#allocation4 + $0x3]] }
  0x1d   :  { %206 = vmatprep.subr.mxu0 %v2839_v10  ;;  %275 = vmatprep.subr.mxu1 %v2868_v19  ;;  %v2895_v28 = vld [vmem:[#allocation8 + $0x308] sm:$0xff]  ;;  %v2898_v29 = vld [vmem:[#allocation8 + $0x370] sm:$0xff]  ;;  %v2902_v31 = vld [vmem:[#allocation8 + $0x300] sm:$0xff]  ;;  %s2270_s29 = sld [smem:[#allocation4 + $0x4]]  ;;  %p2736_p9 = pnand %p2735_p8, %p2729_p5 }
  0x1e   :  { %207 = vmatpush1.msra.mxu0 %v2847_v12  ;;  %276 = vmatpush1.msra.mxu1 %v2874_v21  ;;  %v2905_v32 = vld [vmem:[#allocation8 + $0x358] sm:$0xff]  ;;  %v2909_v34 = vld [vmem:[#allocation8 + $0x2e8] sm:$0xff]  ;;  %v2912_v35 = vld [vmem:[#allocation8 + $0x350] sm:$0xff]  ;;  %s2271_s30 = sld [smem:[#allocation4 + $0x5]] }
  0x1f   :  { %208 = vmatprep.subr.mxu0 %v2857_v15  ;;  %277 = vmatprep.subr.mxu1 %v2880_v23  ;;  %v57_v30 = vstv %s2844_s25  ;;  %v2914_v36 = vld [vmem:[#allocation8] ss:$8 sm:$0xf]  ;;  %v2922_v39 = vld [vmem:[#allocation8 + $0x1] ss:$8 sm:$0xf] }
  0x20   :  { %209 = vmatpush1.msra.mxu0 %v2863_v17  ;;  %278 = vmatpush1.msra.mxu1 %v2886_v25  ;;  %v60_v33 = vstv %s2854_s26  ;;  %4185 = vst [vmem:[#allocation19_spill] sm:$0xff] %v2914_v36  ;;  %v2917_v37 = vld [vmem:[#allocation8 + $0x2e0] sm:$0xff]  ;;  %v2920_v38 = vld [vmem:[#allocation8 + $0x338] sm:$0xff]  ;;  %4186 = vst [vmem:[#allocation20_spill] sm:$0xff] %v2922_v39  ;;  %v58_v40 = vmul.f32 %v57_v30, %v2914_v36  ;;  %s2272_s4 = sld [smem:[#allocation4 + $0x6]] }
  0x21   :  { %210 = vmatprep.subr.mxu0 %v2871_v20  ;;  %279 = vmatprep.subr.mxu1 %v2892_v27  ;;  %v2926_v41 = vld [vmem:[#allocation8 + $0x2c8] sm:$0xff]  ;;  %v2929_v42 = vld [vmem:[#allocation8 + $0x330] sm:$0xff]  ;;  %v61_v43 = vmul.f32 %v60_v33, %v2922_v39  ;;  %v2933_v44 = vld [vmem:[#allocation8 + $0x2c0] sm:$0xff]  ;;  %s2273_s5 = sld [smem:[#allocation4 + $0x7]] }
  0x22   :  { %211 = vmatpush1.msra.mxu0 %v2877_v22  ;;  %280 = vmatpush1.msra.mxu1 %v2898_v29  ;;  %v2936_v45 = vld [vmem:[#allocation8 + $0x2] ss:$8 sm:$0xf] }
  0x23   :  { %212 = vmatprep.subr.mxu0 %v2883_v24  ;;  %281 = vmatprep.subr.mxu1 %v2905_v32  ;;  %4187 = vst [vmem:[#allocation21_spill] sm:$0xff] %v2936_v45  ;;  %v2938_v46 = vld [vmem:[#allocation8 + $0x318] sm:$0xff]  ;;  %v2941_v47 = vld [vmem:[#allocation8 + $0x2a8] sm:$0xff]  ;;  %v62_v48 = vadd.f32 %v61_v43, %v58_v40  ;;  %v2944_v49 = vld [vmem:[#allocation8 + $0x310] sm:$0xff] }
  0x24   :  { %213 = vmatpush1.msra.mxu0 %v2889_v26  ;;  %282 = vmatpush1.msra.mxu1 %v2912_v35  ;;  %v2947_v50 = vld [vmem:[#allocation8 + $0x2a0] sm:$0xff]  ;;  %v2950_v51 = vld [vmem:[#allocation8 + $0x2f8] sm:$0xff]  ;;  %v2953_v52 = vld [vmem:[#allocation8 + $0x288] sm:$0xff] }
  0x25   :  { %214 = vmatprep.subr.mxu0 %v2895_v28  ;;  %283 = vmatprep.subr.mxu1 %v2920_v38  ;;  %4188 = vst [vmem:[#allocation22_spill] sm:$0xff] %v2947_v50  ;;  %4189 = vst [vmem:[#allocation23_spill] sm:$0xff] %v2953_v52  ;;  %v63_v53 = vadd.f32 %v62_v48, %v2936_v45  ;;  %v2957_v54 = vld [vmem:[#allocation8 + $0x2f0] sm:$0xff]  ;;  %v2960_v55 = vld [vmem:[#allocation8 + $0x280] sm:$0xff] }
  0x26   :  { %215 = vmatpush1.msra.mxu0 %v2902_v31  ;;  %284 = vmatpush1.msra.mxu1 %v2929_v42  ;;  %4190 = vst [vmem:[#allocation24_spill] sm:$0xff] %v2960_v55  ;;  %v2963_v56 = vld [vmem:[#allocation8 + $0x2d8] sm:$0xff]  ;;  %v2966_v57 = vld [vmem:[#allocation8 + $0x268] sm:$0xff]  ;;  %v2969_v59 = vld [vmem:[#allocation8 + $0x2d0] sm:$0xff] }
  0x27   :  { %216 = vmatprep.subr.mxu0 %v2909_v34  ;;  %285 = vmatprep.subr.mxu1 %v2938_v46  ;;  %4191 = vst [vmem:[#allocation25_spill] sm:$0xff] %v2966_v57  ;;  %v2279_v58 = vmul.f32 -1.442695, %v63_v53  ;;  %v2972_v60 = vld [vmem:[#allocation8 + $0x260] sm:$0xff]  ;;  %v2975_v61 = vld [vmem:[#allocation8 + $0x2b8] sm:$0xff]  ;;  %v2978_v62 = vld [vmem:[#allocation8 + $0x248] sm:$0xff] }
  0x28   :  { %217 = vmatpush1.msra.mxu0 %v2917_v37  ;;  %286 = vmatpush1.msra.mxu1 %v2944_v49  ;;  %4192 = vst [vmem:[#allocation26_spill] sm:$0xff] %v2972_v60  ;;  %4193 = vst [vmem:[#allocation27_spill] sm:$0xff] %v2975_v61  ;;  %v2981_v63 = vld [vmem:[#allocation8 + $0x2b0] sm:$0xff]  ;;  %v2984_v30 = vld [vmem:[#allocation8 + $0x240] sm:$0xff] }
  0x29   :  { %218 = vmatprep.subr.mxu0 %v2926_v41  ;;  %287 = vmatprep.subr.mxu1 %v2950_v51  ;;  %4194 = vst [vmem:[#allocation28_spill] sm:$0xff] %v2978_v62  ;;  %2461 = vpow2.f32 %v2279_v58  ;;  %4195 = vst [vmem:[#allocation29_spill] sm:$0xff] %v2981_v63  ;;  %v2987_v33 = vld [vmem:[#allocation8 + $0x298] sm:$0xff]  ;;  %v2990_v40 = vld [vmem:[#allocation8 + $0x228] sm:$0xff] }
  0x2a   :  { %219 = vmatpush1.msra.mxu0 %v2933_v44  ;;  %288 = vmatpush1.msra.mxu1 %v2957_v54  ;;  %4196 = vst [vmem:[#allocation30_spill] sm:$0xff] %v2984_v30  ;;  %4197 = vst [vmem:[#allocation31_spill] sm:$0xff] %v2987_v33  ;;  %v2993_v43 = vld [vmem:[#allocation8 + $0x290] sm:$0xff]  ;;  %v2996_v48 = vld [vmem:[#allocation8 + $0x220] sm:$0xff] }
  0x2b   :  { %220 = vmatprep.subr.mxu0 %v2941_v47  ;;  %289 = vmatprep.subr.mxu1 %v2963_v56  ;;  %4198 = vst [vmem:[#allocation32_spill] sm:$0xff] %v2990_v40  ;;  %4199 = vst [vmem:[#allocation33_spill] sm:$0xff] %v2993_v43  ;;  %v2999_v58 = vld [vmem:[#allocation8 + $0x278] sm:$0xff]  ;;  %v3003_v4 = vld [vmem:[#allocation8 + $0x270] sm:$0xff] }
  0x2c   :  { %221 = vmatpush1.msra.mxu0 %v2947_v50  ;;  %290 = vmatpush1.msra.mxu1 %v2969_v59  ;;  %4200 = vst [vmem:[#allocation34_spill] sm:$0xff] %v2996_v48  ;;  %4201 = vst [vmem:[#allocation35_spill] sm:$0xff] %v2999_v58  ;;  %v3007_v45 = vld [vmem:[#allocation8 + $0x258] sm:$0xff]  ;;  %v3011_v39 = vld [vmem:[#allocation8 + $0x250] sm:$0xff] }
  0x2d   :  { %222 = vmatprep.subr.mxu0 %v2953_v52  ;;  %291 = vmatprep.subr.mxu1 %v2975_v61  ;;  %4202 = vst [vmem:[#allocation36_spill] sm:$0xff] %v3003_v4  ;;  %4203 = vst [vmem:[#allocation37_spill] sm:$0xff] %v3007_v45  ;;  %v3014_v36 = vld [vmem:[#allocation8 + $0x238] sm:$0xff] }
  0x2e   :  { %223 = vmatpush1.msra.mxu0 %v2960_v55  ;;  %292 = vmatpush1.msra.mxu1 %v2981_v63  ;;  %4204 = vst [vmem:[#allocation38_spill] sm:$0xff] %v3011_v39  ;;  %4205 = vst [vmem:[#allocation39_spill] sm:$0xff] %v3014_v36 }
  0x2f   :  { %224 = vmatprep.subr.mxu0 %v2966_v57  ;;  %293 = vmatprep.subr.mxu1 %v2987_v33 }
  0x30   :  { %225 = vmatpush1.msra.mxu0 %v2972_v60  ;;  %294 = vmatpush1.msra.mxu1 %v2993_v43 }
  0x31   :  { %226 = vmatprep.subr.mxu0 %v2978_v62  ;;  %295 = vmatprep.subr.mxu1 %v2999_v58 }
  0x32   :  { %227 = vmatpush1.msra.mxu0 %v2984_v30  ;;  %296 = vmatpush1.msra.mxu1 %v3003_v4  ;;  %v3018_v30 = vld [vmem:[#allocation8 + $0x230] sm:$0xff] }
  0x33   :  { %228 = vmatprep.subr.mxu0 %v2990_v40  ;;  %297 = vmatprep.subr.mxu1 %v3007_v45  ;;  %4206 = vst [vmem:[#allocation40_spill] sm:$0xff] %v3018_v30  ;;  %v100_v40 = vrot.slane %v63_v53, 3 }
  0x34   :  { %229 = vmatpush1.msra.mxu0 %v2996_v48  ;;  %298 = vmatpush1.msra.mxu1 %v3011_v39 }
  0x35   :  { %364 = vmatprep.subr.mxu0 %v2805_v0  ;;  %299 = vmatprep.subr.mxu1 %v3014_v36  ;;  %2463 = vtanh.f32 %v100_v40  ;;  %v4214_v40 = vld [vmem:[#allocation30_spill] sm:$0xff] }
  0x36   :  { %300 = vmatpush1.msra.mxu1 %v3018_v30  ;;  %v2462_v48 = vpop.eup %2461 }
  0x37   :  { %435 = vmatprep.subr.mxu1 %v2836_v9  ;;  %v96_v62 = vadd.f32 1.0, %v2462_v48  ;;  %v4215_v48 = vld [vmem:[#allocation38_spill] sm:$0xff] }
  0x39   :  { %2465 = vrcp.f32 %v96_v62  ;;  %v4213_v62 = vld [vmem:[#allocation37_spill] sm:$0xff] }
  0x42   :  { %v2464_v4 = vpop.eup %2463 }
  0x46   :  { %v2466_v60 = vpop.eup %2465 }
  0x47   :  { %v104_v0 = vrot.slane %v2466_v60, 1  ;;  %v107_v58 = vmul.f32 %v2466_v60, %v2464_v4  ;;  %v110_v53 = vrot.slane %v2466_v60, 2  ;;  %v4209_v4 = vld [vmem:[#allocation35_spill] sm:$0xff]  ;;  %v4212_v60 = vld [vmem:[#allocation28_spill] sm:$0xff] }
  0x49   :  { %v106_v45 = vmul.f32 0.0, %v104_v0  ;;  %v4208_v0 = vld [vmem:[#allocation25_spill] sm:$0xff] }
  0x4b   :  { %v3024_v57 = vadd.f32 %v107_v58, %v106_v45  ;;  %v4211_v45 = vld [vmem:[#allocation36_spill] sm:$0xff] }
  0x4c   :  { %v4216_v58 = vld [vmem:[#allocation32_spill] sm:$0xff] }
  0x4d   :  { %4207 = vst [vmem:[#allocation41_spill] sm:$0xff] %v3024_v57  ;;  %2467 = vtanh.f32 %v3024_v57  ;;  %v4218_v57 = vld [vmem:[#allocation34_spill] sm:$0xff] }
  0x5a   :  { %v2468_v39 = vpop.eup %2467 }
  0x5b   :  { %v3027_v36 = vmul.f32 %v2468_v39, %v110_v53  ;;  %v4210_v39 = vld [vmem:[#allocation26_spill] sm:$0xff]  ;;  %v4217_v53 = vld [vmem:[#allocation39_spill] sm:$0xff] }
  0x5d   :  { %263 = vmatmul.mubr.f32.vlgmr.msra.gmra.mxu0 %v3027_v36  ;;  %334 = vmatmul.mubr.f32.vlgmr.msra.gmra.mxu1 %v3027_v36 }
  0x5e   :  { %365 = vmatpush1.msra.mxu0 %v2807_v1  ;;  %436 = vmatpush1.msra.mxu1 %v2842_v11 }
  0x5f   :  { %366 = vmatprep.subr.mxu0 %v2809_v2  ;;  %437 = vmatprep.subr.mxu1 %v2850_v13 }
  0x60   :  { %367 = vmatpush1.msra.mxu0 %v2814_v3  ;;  %438 = vmatpush1.msra.mxu1 %v2852_v14 }
  0x61   :  { %368 = vmatprep.subr.mxu0 %v2820_v5  ;;  %439 = vmatprep.subr.mxu1 %v2860_v16 }
  0x62   :  { %369 = vmatpush1.msra.mxu0 %v2826_v6  ;;  %440 = vmatpush1.msra.mxu1 %v2866_v18 }
  0x63   :  { %370 = vmatprep.subr.mxu0 %v2831_v7  ;;  %441 = vmatprep.subr.mxu1 %v2868_v19 }
  0x64   :  { %371 = vmatpush1.msra.mxu0 %v2834_v8  ;;  %442 = vmatpush1.msra.mxu1 %v2874_v21 }
  0x65   :  { %372 = vmatprep.subr.mxu0 %v2839_v10  ;;  %443 = vmatprep.subr.mxu1 %v2880_v23 }
  0x66   :  { %373 = vmatpush1.msra.mxu0 %v2847_v12  ;;  %444 = vmatpush1.msra.mxu1 %v2886_v25 }
  0x67   :  { %374 = vmatprep.subr.mxu0 %v2857_v15  ;;  %445 = vmatprep.subr.mxu1 %v2892_v27 }
  0x68   :  { %375 = vmatpush1.msra.mxu0 %v2863_v17  ;;  %446 = vmatpush1.msra.mxu1 %v2898_v29 }
  0x69   :  { %376 = vmatprep.subr.mxu0 %v2871_v20  ;;  %447 = vmatprep.subr.mxu1 %v2905_v32 }
  0x6a   :  { %377 = vmatpush1.msra.mxu0 %v2877_v22  ;;  %448 = vmatpush1.msra.mxu1 %v2912_v35 }
  0x6b   :  { %378 = vmatprep.subr.mxu0 %v2883_v24  ;;  %449 = vmatprep.subr.mxu1 %v2920_v38 }
  0x6c   :  { %379 = vmatpush1.msra.mxu0 %v2889_v26  ;;  %450 = vmatpush1.msra.mxu1 %v2929_v42 }
  0x6d   :  { %380 = vmatprep.subr.mxu0 %v2895_v28  ;;  %451 = vmatprep.subr.mxu1 %v2938_v46 }
  0x6e   :  { %381 = vmatpush1.msra.mxu0 %v2902_v31  ;;  %452 = vmatpush1.msra.mxu1 %v2944_v49 }
  0x6f   :  { %382 = vmatprep.subr.mxu0 %v2909_v34  ;;  %453 = vmatprep.subr.mxu1 %v2950_v51 }
  0x70   :  { %383 = vmatpush1.msra.mxu0 %v2917_v37  ;;  %454 = vmatpush1.msra.mxu1 %v2957_v54 }
  0x71   :  { %384 = vmatprep.subr.mxu0 %v2926_v41  ;;  %455 = vmatprep.subr.mxu1 %v2963_v56 }
  0x72   :  { %385 = vmatpush1.msra.mxu0 %v2933_v44  ;;  %456 = vmatpush1.msra.mxu1 %v2969_v59 }
  0x73   :  { %386 = vmatprep.subr.mxu0 %v2941_v47  ;;  %457 = vmatprep.subr.mxu1 %v2975_v61 }
  0x74   :  { %387 = vmatpush1.msra.mxu0 %v2947_v50  ;;  %458 = vmatpush1.msra.mxu1 %v2981_v63 }
  0x75   :  { %388 = vmatprep.subr.mxu0 %v2953_v52  ;;  %459 = vmatprep.subr.mxu1 %v2987_v33 }
  0x76   :  { %389 = vmatpush1.msra.mxu0 %v2960_v55  ;;  %460 = vmatpush1.msra.mxu1 %v2993_v43 }
  0x77   :  { %390 = vmatprep.subr.mxu0 %v4208_v0  ;;  %461 = vmatprep.subr.mxu1 %v4209_v4  ;;  %v4219_v4 = vmov 0.0  }
  0x78   :  { %391 = vmatpush1.msra.mxu0 %v4210_v39  ;;  %462 = vmatpush1.msra.mxu1 %v4211_v45  ;;  %v3095_v45 = vld [vmem:[#allocation8 + $0x208] sm:$0xff] }
  0x79   :  { %392 = vmatprep.subr.mxu0 %v4212_v60  ;;  %463 = vmatprep.subr.mxu1 %v4213_v62  ;;  %4220 = vst [vmem:[#allocation42_spill] sm:$0xff] %v3095_v45  ;;  %v3097_v60 = vld [vmem:[#allocation8 + $0x218] sm:$0xff] }
  0x7a   :  { %393 = vmatpush1.msra.mxu0 %v4214_v40  ;;  %464 = vmatpush1.msra.mxu1 %v4215_v48  ;;  %4221 = vst [vmem:[#allocation43_spill] sm:$0xff] %v3097_v60  ;;  %v4049_v48 = vlaneseq }
  0x7b   :  { %394 = vmatprep.subr.mxu0 %v4216_v58  ;;  %465 = vmatprep.subr.mxu1 %v4217_v53  ;;  %v52_v53 = vld [vmem:[#allocation8 + $0x3] ss:$8 sm:$0xf] }
  0x7c   :  { %395 = vmatpush1.msra.mxu0 %v4218_v57  ;;  %466 = vmatpush1.msra.mxu1 %v3018_v30  ;;  %v3102_v58 = vshrl.u32 %v4049_v48, 7 }
  0x7d   :  { %428 = vmatprep.mubr.f32.mxu0 %v4219_v4  ;;  %499 = vmatprep.mubr.f32.mxu1 %v4219_v4 }
  0x7e   :  { %570 = vmatprep.subr.mxu0 %v3095_v45  ;;  %641 = vmatprep.subr.mxu1 %v3097_v60  ;;  %4222 = vst [vmem:[#allocation44_spill] sm:$0xff] %v3102_v58  ;;  %v180_v57 = vsub.s32 0, %v3102_v58  ;;  %v184_v30 = vsub.s32 1, %v3102_v58  ;;  %v188_v55 = vsub.s32 2, %v3102_v58  ;;  %v192_v52 = vsub.s32 3, %v3102_v58 }
  0x80   :  { %v3106_v40 = vrot.slane %v52_v53, %v180_v57  ;;  %v3108_v62 = vrot.slane %v52_v53, %v184_v30  ;;  %v3113_v33 = vrot.slane %v52_v53, %v188_v55  ;;  %v3117_v63 = vrot.slane %v52_v53, %v192_v52 }
  0x82   :  { %4223 = vst [vmem:[#allocation45_spill] sm:$0xff] %v3106_v40  ;;  %4224 = vst [vmem:[#allocation46_spill] sm:$0xff] %v3108_v62 }
  0x83   :  { %4225 = vst [vmem:[#allocation47_spill] sm:$0xff] %v3113_v33  ;;  %4226 = vst [vmem:[#allocation48_spill] sm:$0xff] %v3117_v63 }
 0x11d   :  { %v264_v39 = vpop.f32.mrf.mxu0  ;;  %v335_v57 = vpop.f32.mrf.mxu1 }
 0x11e   :  { %v265_v0 = vadd.f32 %v264_v39, %v3106_v40  ;;  %v336_v30 = vadd.f32 %v335_v57, %v3113_v33 }
 0x11f   :  { %v266_v43 = vpop.f32.mrf.mxu0  ;;  %v337_v50 = vpop.f32.mrf.mxu1 }
 0x120   :  { %v2280_v45 = vmul.f32 -1.442695, %v265_v0  ;;  %v267_v60 = vadd.f32 %v266_v43, %v3108_v62  ;;  %v2282_v39 = vmul.f32 -1.442695, %v336_v30  ;;  %v338_v0 = vadd.f32 %v337_v50, %v3117_v63 }
 0x122   :  { %2469 = vpow2.f32 %v2280_v45  ;;  %v2281_v48 = vmul.f32 -1.442695, %v267_v60 }
 0x124   :  { %2471 = vpow2.f32 %v2281_v48 }
 0x125   :  { %2473 = vpow2.f32 %v2282_v39  ;;  %v3123_v39 = vld [vmem:[#allocation8 + $0x200] sm:$0xff] }
 0x126   :  { %2475 = vtanh.f32 %v338_v0  ;;  %4228 = vst [vmem:[#allocation50_spill] sm:$0xff] %v3123_v39  ;;  %v3125_v0 = vld [vmem:[#allocation8 + $0x210] sm:$0xff] }
 0x127   :  { %4229 = vst [vmem:[#allocation51_spill] sm:$0xff] %v3125_v0 }
 0x12f   :  { %v2470_v40 = vpop.eup %2469 }
 0x130   :  { %v349_v43 = vadd.f32 1.0, %v2470_v40 }
 0x131   :  { %v2472_v62 = vpop.eup %2471 }
 0x132   :  { %2477 = vrcp.f32 %v349_v43  ;;  %v350_v45 = vadd.f32 1.0, %v2472_v62  ;;  %v2474_v55 = vpop.eup %2473  ;;  %v3127_v62 = vld [vmem:[#allocation8 + $0x1e8] sm:$0xff]  ;;  %v3129_v43 = vld [vmem:[#allocation8 + $0x1f8] sm:$0xff] }
 0x133   :  { %v2476_v60 = vpop.eup %2475  ;;  %v351_v61 = vadd.f32 1.0, %v2474_v55  ;;  %4230 = vst [vmem:[#allocation52_spill] sm:$0xff] %v3127_v62  ;;  %4231 = vst [vmem:[#allocation53_spill] sm:$0xff] %v3129_v43  ;;  %v3139_v55 = vld [vmem:[#allocation8 + $0x1d8] sm:$0xff] }
 0x134   :  { %2479 = vrcp.f32 %v350_v45  ;;  %v3133_v45 = vld [vmem:[#allocation8 + $0x1f0] sm:$0xff]  ;;  %4235 = vst [vmem:[#allocation57_spill] sm:$0xff] %v3139_v55 }
 0x135   :  { %2481 = vrcp.f32 %v351_v61  ;;  %4233 = vst [vmem:[#allocation55_spill] sm:$0xff] %v3133_v45  ;;  %v3137_v61 = vld [vmem:[#allocation8 + $0x1c8] sm:$0xff] }
 0x136   :  { %4234 = vst [vmem:[#allocation56_spill] sm:$0xff] %v3137_v61 }
 0x13f   :  { %v2478_v48 = vpop.eup %2477 }
 0x140   :  { %v360_v52 = vmul.f32 %v2478_v48, %v2476_v60  ;;  %v3143_v60 = vld [vmem:[#allocation8 + $0x1c0] sm:$0xff]  ;;  %v3145_v48 = vld [vmem:[#allocation8 + $0x1d0] sm:$0xff] }
 0x141   :  { %v2480_v58 = vpop.eup %2479  ;;  %4236 = vst [vmem:[#allocation58_spill] sm:$0xff] %v3143_v60  ;;  %4237 = vst [vmem:[#allocation59_spill] sm:$0xff] %v3145_v48 }
 0x142   :  { %v359_v57 = vmul.f32 0.0, %v2480_v58  ;;  %v2482_v50 = vpop.eup %2481  ;;  %v3131_v58 = vld [vmem:[#allocation8 + $0x1e0] sm:$0xff] }
 0x143   :  { %4232 = vst [vmem:[#allocation54_spill] sm:$0xff] %v3131_v58 }
 0x144   :  { %v3120_v53 = vadd.f32 %v360_v52, %v359_v57  ;;  %v3149_v57 = vld [vmem:[#allocation8 + $0x1a8] sm:$0xff]  ;;  %v3151_v52 = vld [vmem:[#allocation8 + $0x1b8] sm:$0xff] }
 0x145   :  { %4238 = vst [vmem:[#allocation60_spill] sm:$0xff] %v3149_v57  ;;  %4239 = vst [vmem:[#allocation61_spill] sm:$0xff] %v3151_v52 }
 0x146   :  { %4227 = vst [vmem:[#allocation49_spill] sm:$0xff] %v3120_v53  ;;  %2483 = vtanh.f32 %v3120_v53  ;;  %v68_v53 = vstv %s2269_s28 }
 0x153   :  { %v2484_v40 = vpop.eup %2483 }
 0x154   :  { %v363_v30 = vmul.f32 %v2484_v40, %v2482_v50  ;;  %v3155_v50 = vld [vmem:[#allocation8 + $0x1a0] sm:$0xff]  ;;  %v3157_v40 = vld [vmem:[#allocation8 + $0x1b0] sm:$0xff] }
 0x155   :  { %4240 = vst [vmem:[#allocation62_spill] sm:$0xff] %v3155_v50  ;;  %4241 = vst [vmem:[#allocation63_spill] sm:$0xff] %v3157_v40 }
 0x156   :  { %429 = vmatmul.mubr.f32.vlgmr.msra.gmra.mxu0 %v363_v30  ;;  %500 = vmatmul.mubr.f32.vlgmr.msra.gmra.mxu1 %v363_v30  ;;  %v3161_v30 = vld [vmem:[#allocation8 + $0x188] sm:$0xff] }
 0x157   :  { %571 = vmatpush1.msra.mxu0 %v3123_v39  ;;  %642 = vmatpush1.msra.mxu1 %v3125_v0  ;;  %4242 = vst [vmem:[#allocation64_spill] sm:$0xff] %v3161_v30  ;;  %v65_v39 = vstv %s2268_s27 }
 0x158   :  { %572 = vmatprep.subr.mxu0 %v3127_v62  ;;  %643 = vmatprep.subr.mxu1 %v3129_v43 }
 0x159   :  { %573 = vmatpush1.msra.mxu0 %v3131_v58  ;;  %644 = vmatpush1.msra.mxu1 %v3133_v45  ;;  %v3163_v58 = vld [vmem:[#allocation8 + $0x198] sm:$0xff]  ;;  %v3167_v45 = vld [vmem:[#allocation8 + $0x180] sm:$0xff] }
 0x15a   :  { %574 = vmatprep.subr.mxu0 %v3137_v61  ;;  %645 = vmatprep.subr.mxu1 %v3139_v55  ;;  %4243 = vst [vmem:[#allocation65_spill] sm:$0xff] %v3163_v58  ;;  %4244 = vst [vmem:[#allocation66_spill] sm:$0xff] %v3167_v45  ;;  %v3169_v61 = vld [vmem:[#allocation8 + $0x190] sm:$0xff]  ;;  %v3173_v55 = vld [vmem:[#allocation8 + $0x168] sm:$0xff] }
 0x15b   :  { %575 = vmatpush1.msra.mxu0 %v3143_v60  ;;  %646 = vmatpush1.msra.mxu1 %v3145_v48  ;;  %4245 = vst [vmem:[#allocation67_spill] sm:$0xff] %v3169_v61  ;;  %4246 = vst [vmem:[#allocation68_spill] sm:$0xff] %v3173_v55  ;;  %v3175_v60 = vld [vmem:[#allocation8 + $0x178] sm:$0xff]  ;;  %v3179_v48 = vld [vmem:[#allocation8 + $0x160] sm:$0xff] }
 0x15c   :  { %576 = vmatprep.subr.mxu0 %v3149_v57  ;;  %647 = vmatprep.subr.mxu1 %v3151_v52  ;;  %4247 = vst [vmem:[#allocation69_spill] sm:$0xff] %v3175_v60  ;;  %4248 = vst [vmem:[#allocation70_spill] sm:$0xff] %v3179_v48  ;;  %v3181_v57 = vld [vmem:[#allocation8 + $0x170] sm:$0xff]  ;;  %v3185_v52 = vld [vmem:[#allocation8 + $0x148] sm:$0xff] }
 0x15d   :  { %577 = vmatpush1.msra.mxu0 %v3155_v50  ;;  %648 = vmatpush1.msra.mxu1 %v3157_v40  ;;  %4249 = vst [vmem:[#allocation71_spill] sm:$0xff] %v3181_v57  ;;  %4250 = vst [vmem:[#allocation72_spill] sm:$0xff] %v3185_v52  ;;  %v3187_v50 = vld [vmem:[#allocation8 + $0x158] sm:$0xff]  ;;  %v3191_v40 = vld [vmem:[#allocation8 + $0x140] sm:$0xff] }
 0x15e   :  { %578 = vmatprep.subr.mxu0 %v3161_v30  ;;  %649 = vmatprep.subr.mxu1 %v3163_v58  ;;  %4251 = vst [vmem:[#allocation73_spill] sm:$0xff] %v3187_v50  ;;  %4252 = vst [vmem:[#allocation74_spill] sm:$0xff] %v3191_v40  ;;  %v3193_v30 = vld [vmem:[#allocation8 + $0x150] sm:$0xff]  ;;  %v3197_v58 = vld [vmem:[#allocation8 + $0x128] sm:$0xff] }
 0x15f   :  { %579 = vmatpush1.msra.mxu0 %v3167_v45  ;;  %650 = vmatpush1.msra.mxu1 %v3169_v61  ;;  %4253 = vst [vmem:[#allocation75_spill] sm:$0xff] %v3193_v30  ;;  %4254 = vst [vmem:[#allocation76_spill] sm:$0xff] %v3197_v58  ;;  %v3199_v45 = vld [vmem:[#allocation8 + $0x138] sm:$0xff]  ;;  %v3203_v61 = vld [vmem:[#allocation8 + $0x120] sm:$0xff] }
 0x160   :  { %580 = vmatprep.subr.mxu0 %v3173_v55  ;;  %651 = vmatprep.subr.mxu1 %v3175_v60  ;;  %4255 = vst [vmem:[#allocation77_spill] sm:$0xff] %v3199_v45  ;;  %4256 = vst [vmem:[#allocation78_spill] sm:$0xff] %v3203_v61  ;;  %v3205_v55 = vld [vmem:[#allocation8 + $0x130] sm:$0xff]  ;;  %v3209_v60 = vld [vmem:[#allocation8 + $0x108] sm:$0xff] }
 0x161   :  { %581 = vmatpush1.msra.mxu0 %v3179_v48  ;;  %652 = vmatpush1.msra.mxu1 %v3181_v57  ;;  %4257 = vst [vmem:[#allocation79_spill] sm:$0xff] %v3205_v55  ;;  %4258 = vst [vmem:[#allocation80_spill] sm:$0xff] %v3209_v60  ;;  %v3211_v48 = vld [vmem:[#allocation8 + $0x118] sm:$0xff]  ;;  %v3215_v57 = vld [vmem:[#allocation8 + $0x100] sm:$0xff] }
 0x162   :  { %582 = vmatprep.subr.mxu0 %v3185_v52  ;;  %653 = vmatprep.subr.mxu1 %v3187_v50  ;;  %4259 = vst [vmem:[#allocation81_spill] sm:$0xff] %v3211_v48  ;;  %4260 = vst [vmem:[#allocation82_spill] sm:$0xff] %v3215_v57  ;;  %v3217_v52 = vld [vmem:[#allocation8 + $0x110] sm:$0xff]  ;;  %v3221_v50 = vld [vmem:[#allocation8 + $0xe8] sm:$0xff] }
 0x163   :  { %583 = vmatpush1.msra.mxu0 %v3191_v40  ;;  %654 = vmatpush1.msra.mxu1 %v3193_v30  ;;  %4261 = vst [vmem:[#allocation83_spill] sm:$0xff] %v3217_v52  ;;  %4262 = vst [vmem:[#allocation84_spill] sm:$0xff] %v3221_v50  ;;  %v3223_v40 = vld [vmem:[#allocation8 + $0xf8] sm:$0xff]  ;;  %v3227_v30 = vld [vmem:[#allocation8 + $0xe0] sm:$0xff] }
 0x164   :  { %584 = vmatprep.subr.mxu0 %v3197_v58  ;;  %655 = vmatprep.subr.mxu1 %v3199_v45  ;;  %4263 = vst [vmem:[#allocation85_spill] sm:$0xff] %v3223_v40  ;;  %4264 = vst [vmem:[#allocation86_spill] sm:$0xff] %v3227_v30  ;;  %v3229_v58 = vld [vmem:[#allocation8 + $0xf0] sm:$0xff]  ;;  %v3233_v45 = vld [vmem:[#allocation8 + $0xc8] sm:$0xff] }
 0x165   :  { %585 = vmatpush1.msra.mxu0 %v3203_v61  ;;  %656 = vmatpush1.msra.mxu1 %v3205_v55  ;;  %4265 = vst [vmem:[#allocation87_spill] sm:$0xff] %v3229_v58  ;;  %4266 = vst [vmem:[#allocation88_spill] sm:$0xff] %v3233_v45  ;;  %v3235_v61 = vld [vmem:[#allocation8 + $0xd8] sm:$0xff]  ;;  %v3239_v55 = vld [vmem:[#allocation8 + $0xc0] sm:$0xff] }
 0x166   :  { %586 = vmatprep.subr.mxu0 %v3209_v60  ;;  %657 = vmatprep.subr.mxu1 %v3211_v48  ;;  %4267 = vst [vmem:[#allocation89_spill] sm:$0xff] %v3235_v61  ;;  %4268 = vst [vmem:[#allocation90_spill] sm:$0xff] %v3239_v55  ;;  %v3241_v60 = vld [vmem:[#allocation8 + $0xd0] sm:$0xff]  ;;  %v3245_v48 = vld [vmem:[#allocation8 + $0xa8] sm:$0xff] }
 0x167   :  { %587 = vmatpush1.msra.mxu0 %v3215_v57  ;;  %658 = vmatpush1.msra.mxu1 %v3217_v52  ;;  %4269 = vst [vmem:[#allocation91_spill] sm:$0xff] %v3241_v60  ;;  %4270 = vst [vmem:[#allocation92_spill] sm:$0xff] %v3245_v48  ;;  %v3247_v57 = vld [vmem:[#allocation8 + $0xb8] sm:$0xff]  ;;  %v3251_v52 = vld [vmem:[#allocation8 + $0xa0] sm:$0xff] }
 0x168   :  { %588 = vmatprep.subr.mxu0 %v3221_v50  ;;  %659 = vmatprep.subr.mxu1 %v3223_v40  ;;  %4271 = vst [vmem:[#allocation93_spill] sm:$0xff] %v3247_v57  ;;  %4272 = vst [vmem:[#allocation94_spill] sm:$0xff] %v3251_v52  ;;  %v3253_v50 = vld [vmem:[#allocation8 + $0xb0] sm:$0xff]  ;;  %v3257_v40 = vld [vmem:[#allocation8 + $0x88] sm:$0xff] }
 0x169   :  { %589 = vmatpush1.msra.mxu0 %v3227_v30  ;;  %660 = vmatpush1.msra.mxu1 %v3229_v58  ;;  %4273 = vst [vmem:[#allocation95_spill] sm:$0xff] %v3253_v50  ;;  %4274 = vst [vmem:[#allocation96_spill] sm:$0xff] %v3257_v40  ;;  %v3259_v30 = vld [vmem:[#allocation8 + $0x98] sm:$0xff]  ;;  %v3263_v58 = vld [vmem:[#allocation8 + $0x80] sm:$0xff] }
 0x16a   :  { %590 = vmatprep.subr.mxu0 %v3233_v45  ;;  %661 = vmatprep.subr.mxu1 %v3235_v61  ;;  %4275 = vst [vmem:[#allocation97_spill] sm:$0xff] %v3259_v30  ;;  %4276 = vst [vmem:[#allocation98_spill] sm:$0xff] %v3263_v58  ;;  %v3265_v45 = vld [vmem:[#allocation8 + $0x90] sm:$0xff]  ;;  %v3269_v61 = vld [vmem:[#allocation8 + $0x68] sm:$0xff] }
 0x16b   :  { %591 = vmatpush1.msra.mxu0 %v3239_v55  ;;  %662 = vmatpush1.msra.mxu1 %v3241_v60  ;;  %4277 = vst [vmem:[#allocation99_spill] sm:$0xff] %v3265_v45  ;;  %4278 = vst [vmem:[#allocation100_spill] sm:$0xff] %v3269_v61  ;;  %v3271_v55 = vld [vmem:[#allocation8 + $0x78] sm:$0xff]  ;;  %v3275_v60 = vld [vmem:[#allocation8 + $0x60] sm:$0xff] }
 0x16c   :  { %592 = vmatprep.subr.mxu0 %v3245_v48  ;;  %663 = vmatprep.subr.mxu1 %v3247_v57  ;;  %4279 = vst [vmem:[#allocation101_spill] sm:$0xff] %v3271_v55  ;;  %4280 = vst [vmem:[#allocation102_spill] sm:$0xff] %v3275_v60  ;;  %v3277_v48 = vld [vmem:[#allocation8 + $0x70] sm:$0xff]  ;;  %v3281_v57 = vld [vmem:[#allocation8 + $0x48] sm:$0xff] }
 0x16d   :  { %593 = vmatpush1.msra.mxu0 %v3251_v52  ;;  %664 = vmatpush1.msra.mxu1 %v3253_v50  ;;  %4281 = vst [vmem:[#allocation103_spill] sm:$0xff] %v3277_v48  ;;  %4282 = vst [vmem:[#allocation104_spill] sm:$0xff] %v3281_v57  ;;  %v3283_v52 = vld [vmem:[#allocation8 + $0x58] sm:$0xff]  ;;  %v3287_v50 = vld [vmem:[#allocation8 + $0x40] sm:$0xff] }
 0x16e   :  { %594 = vmatprep.subr.mxu0 %v3257_v40  ;;  %665 = vmatprep.subr.mxu1 %v3259_v30  ;;  %4283 = vst [vmem:[#allocation105_spill] sm:$0xff] %v3283_v52  ;;  %4284 = vst [vmem:[#allocation106_spill] sm:$0xff] %v3287_v50  ;;  %v3289_v40 = vld [vmem:[#allocation8 + $0x50] sm:$0xff]  ;;  %v3293_v30 = vld [vmem:[#allocation8 + $0x28] sm:$0xff] }
 0x16f   :  { %595 = vmatpush1.msra.mxu0 %v3263_v58  ;;  %666 = vmatpush1.msra.mxu1 %v3265_v45  ;;  %4285 = vst [vmem:[#allocation107_spill] sm:$0xff] %v3289_v40  ;;  %4286 = vst [vmem:[#allocation108_spill] sm:$0xff] %v3293_v30  ;;  %v3295_v58 = vld [vmem:[#allocation8 + $0x38] sm:$0xff]  ;;  %v3299_v45 = vld [vmem:[#allocation8 + $0x20] sm:$0xff] }
 0x170   :  { %596 = vmatprep.subr.mxu0 %v3269_v61  ;;  %667 = vmatprep.subr.mxu1 %v3271_v55  ;;  %4287 = vst [vmem:[#allocation109_spill] sm:$0xff] %v3295_v58  ;;  %4288 = vst [vmem:[#allocation110_spill] sm:$0xff] %v3299_v45  ;;  %v3303_v55 = vld [vmem:[#allocation8 + $0x30] sm:$0xff]  ;;  %v2773_v61 = vmov 1966171168  }
 0x171   :  { %597 = vmatpush1.msra.mxu0 %v3275_v60  ;;  %668 = vmatpush1.msra.mxu1 %v3277_v48  ;;  %4289 = vst [vmem:[#allocation111_spill] sm:$0xff] %v3303_v55  ;;  %v4308_v48 = vld [vmem:[#allocation34_spill] sm:$0xff]  ;;  %v4309_v60 = vld [vmem:[#allocation40_spill] sm:$0xff]  ;;  %v719_v43 = vunpack.c.l.s4 %v2773_v61 }
 0x172   :  { %598 = vmatprep.subr.mxu0 %v3281_v57  ;;  %669 = vmatprep.subr.mxu1 %v3283_v52  ;;  %v4306_v52 = vld [vmem:[#allocation32_spill] sm:$0xff]  ;;  %v4307_v57 = vld [vmem:[#allocation39_spill] sm:$0xff] }
 0x173   :  { %599 = vmatpush1.msra.mxu0 %v3287_v50  ;;  %670 = vmatpush1.msra.mxu1 %v3289_v40  ;;  %v4290_v50 = vld [vmem:[#allocation18_spill] sm:$0xff]  ;;  %v720_v63 = vunpack.c.0.s8 %v719_v43 }
 0x174   :  { %600 = vmatprep.subr.mxu0 %v3293_v30  ;;  %671 = vmatprep.subr.mxu1 %v3295_v58  ;;  %v4303_v58 = vld [vmem:[#allocation37_spill] sm:$0xff]  ;;  %v4304_v30 = vld [vmem:[#allocation30_spill] sm:$0xff] }
 0x175   :  { %601 = vmatpush1.msra.mxu0 %v3299_v45  ;;  %634 = vmatprep.mubr.f32.mxu0 %v4219_v4  ;;  %v4302_v45 = vld [vmem:[#allocation28_spill] sm:$0xff]  ;;  %v4305_v40 = vld [vmem:[#allocation38_spill] sm:$0xff] }
 0x176   :  { %672 = vmatpush1.msra.mxu1 %v3303_v55  ;;  %705 = vmatprep.mubr.f32.mxu1 %v4219_v4  ;;  %v4301_v55 = vld [vmem:[#allocation36_spill] sm:$0xff] }
 0x177   :  { %635 = vmatmul.mubr.f32.vlgmr.msra.gmra.mxu0 %v3027_v36  ;;  %706 = vmatmul.mubr.f32.vlgmr.msra.gmra.mxu1 %v3027_v36  ;;  %v4300_v36 = vld [vmem:[#allocation26_spill] sm:$0xff] }
 0x178   :  { %762 = vmatprep.subr.mxu0 %v4290_v50  ;;  %833 = vmatprep.subr.mxu1 %v2836_v9 }
 0x179   :  { %763 = vmatpush1.msra.mxu0 %v2807_v1  ;;  %834 = vmatpush1.msra.mxu1 %v2842_v11  ;;  %v4291_v1 = vld [vmem:[#allocation27_spill] sm:$0xff] }
 0x17a   :  { %764 = vmatprep.subr.mxu0 %v2809_v2  ;;  %835 = vmatprep.subr.mxu1 %v2850_v13  ;;  %v4292_v2 = vld [vmem:[#allocation22_spill] sm:$0xff] }
 0x17b   :  { %765 = vmatpush1.msra.mxu0 %v2814_v3  ;;  %836 = vmatpush1.msra.mxu1 %v2852_v14  ;;  %v4293_v3 = vld [vmem:[#allocation29_spill] sm:$0xff] }
 0x17c   :  { %766 = vmatprep.subr.mxu0 %v2820_v5  ;;  %837 = vmatprep.subr.mxu1 %v2860_v16  ;;  %v4294_v5 = vld [vmem:[#allocation23_spill] sm:$0xff] }
 0x17d   :  { %767 = vmatpush1.msra.mxu0 %v2826_v6  ;;  %838 = vmatpush1.msra.mxu1 %v2866_v18  ;;  %v4295_v6 = vld [vmem:[#allocation31_spill] sm:$0xff] }
 0x17e   :  { %768 = vmatprep.subr.mxu0 %v2831_v7  ;;  %839 = vmatprep.subr.mxu1 %v2868_v19  ;;  %v4296_v7 = vld [vmem:[#allocation24_spill] sm:$0xff] }
 0x17f   :  { %769 = vmatpush1.msra.mxu0 %v2834_v8  ;;  %840 = vmatpush1.msra.mxu1 %v2874_v21  ;;  %v4297_v8 = vld [vmem:[#allocation33_spill] sm:$0xff] }
 0x180   :  { %770 = vmatprep.subr.mxu0 %v2839_v10  ;;  %841 = vmatprep.subr.mxu1 %v2880_v23  ;;  %v4298_v10 = vld [vmem:[#allocation25_spill] sm:$0xff] }
 0x181   :  { %771 = vmatpush1.msra.mxu0 %v2847_v12  ;;  %842 = vmatpush1.msra.mxu1 %v2886_v25  ;;  %v4299_v12 = vld [vmem:[#allocation35_spill] sm:$0xff] }
 0x182   :  { %772 = vmatprep.subr.mxu0 %v2857_v15  ;;  %843 = vmatprep.subr.mxu1 %v2892_v27 }
 0x183   :  { %773 = vmatpush1.msra.mxu0 %v2863_v17  ;;  %844 = vmatpush1.msra.mxu1 %v2898_v29 }
 0x184   :  { %774 = vmatprep.subr.mxu0 %v2871_v20  ;;  %845 = vmatprep.subr.mxu1 %v2905_v32 }
 0x185   :  { %775 = vmatpush1.msra.mxu0 %v2877_v22  ;;  %846 = vmatpush1.msra.mxu1 %v2912_v35 }
 0x186   :  { %776 = vmatprep.subr.mxu0 %v2883_v24  ;;  %847 = vmatprep.subr.mxu1 %v2920_v38 }
 0x187   :  { %777 = vmatpush1.msra.mxu0 %v2889_v26  ;;  %848 = vmatpush1.msra.mxu1 %v2929_v42 }
 0x188   :  { %778 = vmatprep.subr.mxu0 %v2895_v28  ;;  %849 = vmatprep.subr.mxu1 %v2938_v46 }
 0x189   :  { %779 = vmatpush1.msra.mxu0 %v2902_v31  ;;  %850 = vmatpush1.msra.mxu1 %v2944_v49 }
 0x18a   :  { %780 = vmatprep.subr.mxu0 %v2909_v34  ;;  %851 = vmatprep.subr.mxu1 %v2950_v51 }
 0x18b   :  { %781 = vmatpush1.msra.mxu0 %v2917_v37  ;;  %852 = vmatpush1.msra.mxu1 %v2957_v54 }
 0x18c   :  { %782 = vmatprep.subr.mxu0 %v2926_v41  ;;  %853 = vmatprep.subr.mxu1 %v2963_v56 }
 0x18d   :  { %783 = vmatpush1.msra.mxu0 %v2933_v44  ;;  %854 = vmatpush1.msra.mxu1 %v2969_v59 }
 0x18e   :  { %784 = vmatprep.subr.mxu0 %v2941_v47  ;;  %855 = vmatprep.subr.mxu1 %v4291_v1 }
 0x18f   :  { %785 = vmatpush1.msra.mxu0 %v4292_v2  ;;  %856 = vmatpush1.msra.mxu1 %v4293_v3 }
 0x190   :  { %786 = vmatprep.subr.mxu0 %v4294_v5  ;;  %857 = vmatprep.subr.mxu1 %v4295_v6 }
 0x191   :  { %787 = vmatpush1.msra.mxu0 %v4296_v7  ;;  %858 = vmatpush1.msra.mxu1 %v4297_v8 }
 0x192   :  { %788 = vmatprep.subr.mxu0 %v4298_v10  ;;  %859 = vmatprep.subr.mxu1 %v4299_v12 }
 0x193   :  { %789 = vmatpush1.msra.mxu0 %v4300_v36  ;;  %860 = vmatpush1.msra.mxu1 %v4301_v55  ;;  %v4318_v55 = vld [vmem:[#allocation21_spill] sm:$0xff] }
 0x194   :  { %790 = vmatprep.subr.mxu0 %v4302_v45  ;;  %861 = vmatprep.subr.mxu1 %v4303_v58 }
 0x195   :  { %791 = vmatpush1.msra.mxu0 %v4304_v30  ;;  %862 = vmatpush1.msra.mxu1 %v4305_v40  ;;  %v4316_v40 = vld [vmem:[#allocation44_spill] sm:$0xff] }
 0x196   :  { %792 = vmatprep.subr.mxu0 %v4306_v52  ;;  %863 = vmatprep.subr.mxu1 %v4307_v57  ;;  %v3392_v30 = vsub.s32 %v720_v63, %v4316_v40 }
 0x197   :  { %793 = vmatpush1.msra.mxu0 %v4308_v48  ;;  %826 = vmatprep.mubr.f32.mxu0 %v4219_v4 }
 0x198   :  { %864 = vmatpush1.msra.mxu1 %v4309_v60  ;;  %897 = vmatprep.mubr.f32.mxu1 %v4219_v4  ;;  %v4314_v4 = vld [vmem:[#allocation19_spill] sm:$0xff]  ;;  %4317 = vst [vmem:[#allocation23_spill] sm:$0xff] %v3392_v30 }
 0x199   :  { %932 = vmatprep.subr.mxu0 %v4290_v50  ;;  %1003 = vmatprep.subr.mxu1 %v2836_v9  ;;  %v66_v48 = vmul.f32 %v65_v39, %v4314_v4  ;;  %v4315_v50 = vld [vmem:[#allocation20_spill] sm:$0xff] }
 0x19a   :  { %v69_v57 = vmul.f32 %v68_v53, %v4315_v50 }
 0x216   :  { %v3381_v62 = vpop.f32.mrf.mxu0  ;;  %v3383_v0 = vpop.f32.mrf.mxu1 }
 0x217   :  { %4310 = vst [vmem:[#allocation18_spill] sm:$0xff] %v3381_v62  ;;  %4311 = vst [vmem:[#allocation27_spill] sm:$0xff] %v3383_v0  ;;  %v70_v0 = vadd.f32 %v69_v57, %v66_v48 }
 0x218   :  { %v3385_v33 = vpop.f32.mrf.mxu0  ;;  %v3387_v60 = vpop.f32.mrf.mxu1 }
 0x219   :  { %4312 = vst [vmem:[#allocation22_spill] sm:$0xff] %v3385_v33  ;;  %4313 = vst [vmem:[#allocation29_spill] sm:$0xff] %v3387_v60  ;;  %v71_v60 = vadd.f32 %v70_v0, %v4318_v55 }
 0x237   :  { %v636_v9 = vpop.f32.mrf.mxu0  ;;  %v707_v52 = vpop.f32.mrf.mxu1 }
 0x239   :  { %v638_v61 = vpop.f32.mrf.mxu0  ;;  %v709_v62 = vpop.f32.mrf.mxu1 }
 0x23a   :  { %v716_v58 = vcombine.low %v636_v9, %v638_v61  ;;  %v717_v45 = vcombine.low %v707_v52, %v709_v62  ;;  %v3414_v61 = vld [vmem:[#allocation8 + $0x3e0] sm:$0xff] }
 0x23c   :  { %v724_v43 = vrot.slane %v716_v58, %v3392_v30  ;;  %v731_v33 = vrot.slane %v717_v45, %v3392_v30  ;;  %v4319_v58 = vld [vmem:[#allocation41_spill] sm:$0xff] }
 0x23e   :  { %v732_v36 = vcombine.low %v724_v43, %v731_v33  ;;  %v3418_v43 = vld [vmem:[#allocation8 + $0x3c8] sm:$0xff] }
 0x240   :  { %v739_v4 = vrot.slane %v732_v36, %v3392_v30  ;;  %v3410_v36 = vld [vmem:[#allocation8 + $0x3e8] sm:$0xff] }
 0x242   :  { %v741_v53 = vadd.f32 %v739_v4, %v71_v60  ;;  %v3406_v60 = vld [vmem:[#allocation8 + $0x400] sm:$0xff] }
 0x243   :  { %v3422_v4 = vld [vmem:[#allocation8 + $0x3c0] sm:$0xff] }
 0x244   :  { %v2283_v39 = vmul.f32 -1.442695, %v741_v53  ;;  %v749_v40 = vrot.slane %v741_v53, 3 }
 0x246   :  { %2485 = vpow2.f32 %v2283_v39 }
 0x253   :  { %v2486_v50 = vpop.eup %2485 }
 0x254   :  { %v745_v63 = vadd.f32 1.0, %v2486_v50 }
 0x256   :  { %2487 = vrcp.f32 %v745_v63 }
 0x257   :  { %2489 = vtanh.f32 %v749_v40 }
 0x263   :  { %v2488_v9 = vpop.eup %2487 }
 0x264   :  { %v753_v48 = vrot.slane %v2488_v9, 1  ;;  %v2490_v62 = vpop.eup %2489  ;;  %v759_v33 = vrot.slane %v2488_v9, 2 }
 0x265   :  { %v756_v57 = vmul.f32 %v2490_v62, %v2488_v9 }
 0x266   :  { %v755_v52 = vmul.f32 %v753_v48, %v4319_v58  ;;  %v4341_v48 = vld [vmem:[#allocation49_spill] sm:$0xff] }
 0x268   :  { %v3399_v45 = vadd.f32 %v756_v57, %v755_v52 }
 0x26a   :  { %2491 = vtanh.f32 %v3399_v45 }
 0x277   :  { %v2492_v0 = vpop.eup %2491 }
 0x278   :  { %v3402_v55 = vmul.f32 %v2492_v0, %v759_v33 }
 0x27a   :  { %827 = vmatmul.mubr.f32.vlgmr.msra.gmra.mxu0 %v3402_v55  ;;  %898 = vmatmul.mubr.f32.vlgmr.msra.gmra.mxu1 %v3402_v55 }
 0x27b   :  { %933 = vmatpush1.msra.mxu0 %v3406_v60  ;;  %1004 = vmatpush1.msra.mxu1 %v2842_v11  ;;  %v3426_v11 = vld [vmem:[#allocation8 + $0x3a8] sm:$0xff] }
 0x27c   :  { %934 = vmatprep.subr.mxu0 %v3410_v36  ;;  %1005 = vmatprep.subr.mxu1 %v2850_v13  ;;  %v3430_v13 = vld [vmem:[#allocation8 + $0x3a0] sm:$0xff] }
 0x27d   :  { %935 = vmatpush1.msra.mxu0 %v3414_v61  ;;  %1006 = vmatpush1.msra.mxu1 %v2852_v14  ;;  %v3434_v14 = vld [vmem:[#allocation8 + $0x388] sm:$0xff] }
 0x27e   :  { %936 = vmatprep.subr.mxu0 %v3418_v43  ;;  %1007 = vmatprep.subr.mxu1 %v2860_v16  ;;  %v3438_v16 = vld [vmem:[#allocation8 + $0x380] sm:$0xff] }
 0x27f   :  { %937 = vmatpush1.msra.mxu0 %v3422_v4  ;;  %1008 = vmatpush1.msra.mxu1 %v2866_v18  ;;  %v4322_v18 = vld [vmem:[#allocation28_spill] sm:$0xff] }
 0x280   :  { %938 = vmatprep.subr.mxu0 %v3426_v11  ;;  %1009 = vmatprep.subr.mxu1 %v2868_v19  ;;  %v4323_v19 = vld [vmem:[#allocation37_spill] sm:$0xff] }
 0x281   :  { %939 = vmatpush1.msra.mxu0 %v3430_v13  ;;  %1010 = vmatpush1.msra.mxu1 %v2874_v21  ;;  %v4325_v21 = vld [vmem:[#allocation38_spill] sm:$0xff] }
 0x282   :  { %940 = vmatprep.subr.mxu0 %v3434_v14  ;;  %1011 = vmatprep.subr.mxu1 %v2880_v23  ;;  %v4327_v23 = vld [vmem:[#allocation39_spill] sm:$0xff] }
 0x283   :  { %941 = vmatpush1.msra.mxu0 %v3438_v16  ;;  %1012 = vmatpush1.msra.mxu1 %v2886_v25  ;;  %v4329_v25 = vld [vmem:[#allocation40_spill] sm:$0xff] }
 0x284   :  { %942 = vmatprep.subr.mxu0 %v2857_v15  ;;  %1013 = vmatprep.subr.mxu1 %v2892_v27  ;;  %v4320_v15 = vld [vmem:[#allocation26_spill] sm:$0xff] }
 0x285   :  { %943 = vmatpush1.msra.mxu0 %v2863_v17  ;;  %1014 = vmatpush1.msra.mxu1 %v2898_v29  ;;  %v4321_v17 = vld [vmem:[#allocation36_spill] sm:$0xff]  ;;  %v4331_v27 = vld [vmem:[#allocation42_spill] sm:$0xff] }
 0x286   :  { %944 = vmatprep.subr.mxu0 %v2871_v20  ;;  %1015 = vmatprep.subr.mxu1 %v2905_v32  ;;  %v4324_v20 = vld [vmem:[#allocation30_spill] sm:$0xff] }
 0x287   :  { %945 = vmatpush1.msra.mxu0 %v2877_v22  ;;  %1016 = vmatpush1.msra.mxu1 %v2912_v35  ;;  %v4326_v22 = vld [vmem:[#allocation32_spill] sm:$0xff]  ;;  %v4334_v35 = vld [vmem:[#allocation18_spill] sm:$0xff] }
 0x288   :  { %946 = vmatprep.subr.mxu0 %v2883_v24  ;;  %1017 = vmatprep.subr.mxu1 %v2920_v38  ;;  %v4328_v24 = vld [vmem:[#allocation34_spill] sm:$0xff] }
 0x289   :  { %947 = vmatpush1.msra.mxu0 %v2889_v26  ;;  %1018 = vmatpush1.msra.mxu1 %v2929_v42  ;;  %v4330_v26 = vmov 0.0   ;;  %v4335_v38 = vld [vmem:[#allocation46_spill] sm:$0xff] }
 0x28a   :  { %948 = vmatprep.subr.mxu0 %v2895_v28  ;;  %1019 = vmatprep.subr.mxu1 %v2938_v46  ;;  %v4332_v28 = vld [vmem:[#allocation43_spill] sm:$0xff] }
 0x28b   :  { %949 = vmatpush1.msra.mxu0 %v2902_v31  ;;  %1020 = vmatpush1.msra.mxu1 %v2944_v49  ;;  %v4333_v31 = vld [vmem:[#allocation45_spill] sm:$0xff] }
 0x28c   :  { %950 = vmatprep.subr.mxu0 %v2909_v34  ;;  %1021 = vmatprep.subr.mxu1 %v2950_v51  ;;  %v4337_v51 = vld [vmem:[#allocation47_spill] sm:$0xff] }
 0x28d   :  { %951 = vmatpush1.msra.mxu0 %v2917_v37  ;;  %1022 = vmatpush1.msra.mxu1 %v2957_v54 }
 0x28e   :  { %952 = vmatprep.subr.mxu0 %v2926_v41  ;;  %1023 = vmatprep.subr.mxu1 %v2963_v56 }
 0x28f   :  { %953 = vmatpush1.msra.mxu0 %v2933_v44  ;;  %1024 = vmatpush1.msra.mxu1 %v2969_v59  ;;  %v4336_v44 = vld [vmem:[#allocation22_spill] sm:$0xff]  ;;  %v4338_v59 = vld [vmem:[#allocation27_spill] sm:$0xff] }
 0x290   :  { %954 = vmatprep.subr.mxu0 %v2941_v47  ;;  %1025 = vmatprep.subr.mxu1 %v4291_v1 }
 0x291   :  { %955 = vmatpush1.msra.mxu0 %v4292_v2  ;;  %1026 = vmatpush1.msra.mxu1 %v4293_v3  ;;  %v4339_v2 = vld [vmem:[#allocation48_spill] sm:$0xff] }
 0x292   :  { %956 = vmatprep.subr.mxu0 %v4294_v5  ;;  %1027 = vmatprep.subr.mxu1 %v4295_v6 }
 0x293   :  { %957 = vmatpush1.msra.mxu0 %v4296_v7  ;;  %1028 = vmatpush1.msra.mxu1 %v4297_v8  ;;  %v4340_v7 = vld [vmem:[#allocation29_spill] sm:$0xff] }
 0x294   :  { %958 = vmatprep.subr.mxu0 %v4298_v10  ;;  %1029 = vmatprep.subr.mxu1 %v4299_v12 }
 0x295   :  { %959 = vmatpush1.msra.mxu0 %v4320_v15  ;;  %1030 = vmatpush1.msra.mxu1 %v4321_v17  ;;  %v4343_v15 = vld [vmem:[#allocation50_spill] sm:$0xff]  ;;  %v4344_v17 = vld [vmem:[#allocation51_spill] sm:$0xff] }
 0x296   :  { %960 = vmatprep.subr.mxu0 %v4322_v18  ;;  %1031 = vmatprep.subr.mxu1 %v4323_v19  ;;  %v4345_v18 = vld [vmem:[#allocation52_spill] sm:$0xff]  ;;  %v4346_v19 = vld [vmem:[#allocation53_spill] sm:$0xff] }
 0x297   :  { %961 = vmatpush1.msra.mxu0 %v4324_v20  ;;  %1032 = vmatpush1.msra.mxu1 %v4325_v21  ;;  %v4347_v20 = vld [vmem:[#allocation54_spill] sm:$0xff]  ;;  %v4348_v21 = vld [vmem:[#allocation55_spill] sm:$0xff] }
 0x298   :  { %962 = vmatprep.subr.mxu0 %v4326_v22  ;;  %1033 = vmatprep.subr.mxu1 %v4327_v23  ;;  %v4349_v22 = vld [vmem:[#allocation56_spill] sm:$0xff]  ;;  %v4350_v23 = vld [vmem:[#allocation57_spill] sm:$0xff] }
 0x299   :  { %963 = vmatpush1.msra.mxu0 %v4328_v24  ;;  %1034 = vmatpush1.msra.mxu1 %v4329_v25  ;;  %v4351_v24 = vld [vmem:[#allocation58_spill] sm:$0xff]  ;;  %v4352_v25 = vld [vmem:[#allocation59_spill] sm:$0xff] }
 0x29a   :  { %996 = vmatprep.mubr.f32.mxu0 %v4330_v26  ;;  %1067 = vmatprep.mubr.f32.mxu1 %v4330_v26 }
 0x29b   :  { %1074 = vmatprep.subr.mxu0 %v4331_v27  ;;  %1145 = vmatprep.subr.mxu1 %v4332_v28  ;;  %v4353_v27 = vld [vmem:[#allocation60_spill] sm:$0xff]  ;;  %v4354_v28 = vld [vmem:[#allocation61_spill] sm:$0xff] }
 0x33a   :  { %v828_v29 = vpop.f32.mrf.mxu0  ;;  %v899_v47 = vpop.f32.mrf.mxu1 }
 0x33b   :  { %v829_v32 = vadd.f32 %v828_v29, %v4333_v31  ;;  %v900_v54 = vadd.f32 %v899_v47, %v4337_v51  ;;  %v4355_v29 = vld [vmem:[#allocation62_spill] sm:$0xff]  ;;  %v4364_v47 = vld [vmem:[#allocation71_spill] sm:$0xff] }
 0x33c   :  { %v830_v34 = vpop.f32.mrf.mxu0  ;;  %v901_v56 = vpop.f32.mrf.mxu1  ;;  %v3724_v51 = vld [vmem:[#allocation8 + $0x240] sm:$0xff]  ;;  %v3730_v31 = vld [vmem:[#allocation8 + $0x228] sm:$0xff] }
 0x33d   :  { %v904_v37 = vadd.f32 %v829_v32, %v4334_v35  ;;  %v831_v41 = vadd.f32 %v830_v34, %v4335_v38  ;;  %v906_v1 = vadd.f32 %v900_v54, %v4338_v59  ;;  %v902_v3 = vadd.f32 %v901_v56, %v4339_v2  ;;  %v4356_v32 = vld [vmem:[#allocation63_spill] sm:$0xff]  ;;  %v4357_v34 = vld [vmem:[#allocation64_spill] sm:$0xff]  ;;  %v4358_v35 = vld [vmem:[#allocation65_spill] sm:$0xff]  ;;  %4422 = vst [vmem:[#allocation34_spill] sm:$0xff] %v3724_v51 }
 0x33e   :  { %v4366_v54 = vld [vmem:[#allocation73_spill] sm:$0xff]  ;;  %v4367_v56 = vld [vmem:[#allocation74_spill] sm:$0xff]  ;;  %v4368_v59 = vld [vmem:[#allocation75_spill] sm:$0xff]  ;;  %4424 = vst [vmem:[#allocation42_spill] sm:$0xff] %v3730_v31 }
 0x33f   :  { %v2284_v42 = vmul.f32 -1.442695, %v904_v37  ;;  %v905_v46 = vadd.f32 %v831_v41, %v4336_v44  ;;  %v2286_v5 = vmul.f32 -1.442695, %v906_v1  ;;  %v907_v8 = vadd.f32 %v902_v3, %v4340_v7  ;;  %v4359_v37 = vld [vmem:[#allocation66_spill] sm:$0xff]  ;;  %v4360_v41 = vld [vmem:[#allocation67_spill] sm:$0xff] }
 0x340   :  { %v4362_v44 = vld [vmem:[#allocation69_spill] sm:$0xff]  ;;  %v4369_v1 = vld [vmem:[#allocation76_spill] sm:$0xff] }
 0x341   :  { %2493 = vpow2.f32 %v2284_v42  ;;  %v2285_v49 = vmul.f32 -1.442695, %v905_v46  ;;  %v4361_v42 = vld [vmem:[#allocation68_spill] sm:$0xff]  ;;  %v4363_v46 = vld [vmem:[#allocation70_spill] sm:$0xff]  ;;  %v4370_v3 = vld [vmem:[#allocation77_spill] sm:$0xff] }
 0x342   :  { %v4373_v7 = vld [vmem:[#allocation80_spill] sm:$0xff] }
 0x343   :  { %2495 = vpow2.f32 %v2285_v49  ;;  %v4365_v49 = vld [vmem:[#allocation72_spill] sm:$0xff] }
 0x344   :  { %2497 = vpow2.f32 %v2286_v5  ;;  %v4371_v5 = vld [vmem:[#allocation78_spill] sm:$0xff]  ;;  %v3721_v2 = vld [vmem:[#allocation8 + $0x258] sm:$0xff]  ;;  %v3727_v38 = vld [vmem:[#allocation8 + $0x250] sm:$0xff] }
 0x345   :  { %4421 = vst [vmem:[#allocation39_spill] sm:$0xff] %v3721_v2  ;;  %4423 = vst [vmem:[#allocation40_spill] sm:$0xff] %v3727_v38 }
 0x34e   :  { %v2494_v6 = vpop.eup %2493 }
 0x34f   :  { %v917_v10 = vadd.f32 1.0, %v2494_v6  ;;  %v4372_v6 = vld [vmem:[#allocation79_spill] sm:$0xff] }
 0x350   :  { %v2496_v12 = vpop.eup %2495 }
 0x351   :  { %2499 = vrcp.f32 %v917_v10  ;;  %v918_v53 = vadd.f32 1.0, %v2496_v12  ;;  %v2498_v39 = vpop.eup %2497  ;;  %v4375_v10 = vld [vmem:[#allocation82_spill] sm:$0xff]  ;;  %v4376_v12 = vld [vmem:[#allocation83_spill] sm:$0xff] }
 0x352   :  { %2501 = vtanh.f32 %v907_v8  ;;  %v919_v9 = vadd.f32 1.0, %v2498_v39  ;;  %v4374_v8 = vld [vmem:[#allocation81_spill] sm:$0xff] }
 0x353   :  { %2503 = vrcp.f32 %v918_v53  ;;  %v4377_v53 = vld [vmem:[#allocation84_spill] sm:$0xff]  ;;  %v4378_v39 = vld [vmem:[#allocation85_spill] sm:$0xff] }
 0x354   :  { %2505 = vrcp.f32 %v919_v9  ;;  %v4382_v9 = vld [vmem:[#allocation89_spill] sm:$0xff] }
 0x35e   :  { %v2500_v50 = vpop.eup %2499 }
 0x35f   :  { %v2502_v63 = vpop.eup %2501 }
 0x360   :  { %v2504_v40 = vpop.eup %2503  ;;  %v928_v57 = vmul.f32 %v2502_v63, %v2500_v50  ;;  %v4379_v50 = vld [vmem:[#allocation86_spill] sm:$0xff]  ;;  %v4380_v63 = vld [vmem:[#allocation87_spill] sm:$0xff] }
 0x361   :  { %v927_v62 = vmul.f32 %v2504_v40, %v4341_v48  ;;  %v2506_v52 = vpop.eup %2505  ;;  %v4381_v40 = vld [vmem:[#allocation88_spill] sm:$0xff]  ;;  %v4383_v48 = vld [vmem:[#allocation90_spill] sm:$0xff] }
 0x363   :  { %v3499_v58 = vadd.f32 %v928_v57, %v927_v62  ;;  %v4384_v62 = vld [vmem:[#allocation91_spill] sm:$0xff]  ;;  %v4385_v57 = vld [vmem:[#allocation92_spill] sm:$0xff] }
 0x365   :  { %4342 = vst [vmem:[#allocation31_spill] sm:$0xff] %v3499_v58  ;;  %2507 = vtanh.f32 %v3499_v58  ;;  %v3718_v58 = vld [vmem:[#allocation8 + $0x248] sm:$0xff] }
 0x366   :  { %4420 = vst [vmem:[#allocation32_spill] sm:$0xff] %v3718_v58 }
 0x372   :  { %v2508_v33 = vpop.eup %2507 }
 0x373   :  { %v931_v0 = vmul.f32 %v2508_v33, %v2506_v52  ;;  %v4386_v52 = vld [vmem:[#allocation93_spill] sm:$0xff]  ;;  %v4387_v33 = vld [vmem:[#allocation94_spill] sm:$0xff] }
 0x375   :  { %997 = vmatmul.mubr.f32.vlgmr.msra.gmra.mxu0 %v931_v0  ;;  %1068 = vmatmul.mubr.f32.vlgmr.msra.gmra.mxu1 %v931_v0  ;;  %v4388_v0 = vld [vmem:[#allocation95_spill] sm:$0xff] }
 0x376   :  { %1075 = vmatpush1.msra.mxu0 %v4343_v15  ;;  %1146 = vmatpush1.msra.mxu1 %v4344_v17  ;;  %v4389_v15 = vld [vmem:[#allocation96_spill] sm:$0xff]  ;;  %v4390_v17 = vld [vmem:[#allocation97_spill] sm:$0xff] }
 0x377   :  { %1076 = vmatprep.subr.mxu0 %v4345_v18  ;;  %1147 = vmatprep.subr.mxu1 %v4346_v19  ;;  %v4391_v18 = vld [vmem:[#allocation98_spill] sm:$0xff]  ;;  %v4392_v19 = vld [vmem:[#allocation99_spill] sm:$0xff] }
 0x378   :  { %1077 = vmatpush1.msra.mxu0 %v4347_v20  ;;  %1148 = vmatpush1.msra.mxu1 %v4348_v21  ;;  %v4393_v20 = vld [vmem:[#allocation100_spill] sm:$0xff]  ;;  %v4394_v21 = vld [vmem:[#allocation101_spill] sm:$0xff] }
 0x379   :  { %1078 = vmatprep.subr.mxu0 %v4349_v22  ;;  %1149 = vmatprep.subr.mxu1 %v4350_v23  ;;  %v4395_v22 = vld [vmem:[#allocation102_spill] sm:$0xff]  ;;  %v4396_v23 = vld [vmem:[#allocation103_spill] sm:$0xff] }
 0x37a   :  { %1079 = vmatpush1.msra.mxu0 %v4351_v24  ;;  %1150 = vmatpush1.msra.mxu1 %v4352_v25  ;;  %v4397_v24 = vld [vmem:[#allocation104_spill] sm:$0xff]  ;;  %v4398_v25 = vld [vmem:[#allocation105_spill] sm:$0xff] }
 0x37b   :  { %1080 = vmatprep.subr.mxu0 %v4353_v27  ;;  %1151 = vmatprep.subr.mxu1 %v4354_v28  ;;  %v4399_v27 = vld [vmem:[#allocation106_spill] sm:$0xff]  ;;  %v4400_v28 = vld [vmem:[#allocation107_spill] sm:$0xff] }
 0x37c   :  { %1081 = vmatpush1.msra.mxu0 %v4355_v29  ;;  %1152 = vmatpush1.msra.mxu1 %v4356_v32  ;;  %v4401_v29 = vld [vmem:[#allocation108_spill] sm:$0xff]  ;;  %v4402_v32 = vld [vmem:[#allocation109_spill] sm:$0xff] }
 0x37d   :  { %1082 = vmatprep.subr.mxu0 %v4357_v34  ;;  %1153 = vmatprep.subr.mxu1 %v4358_v35  ;;  %v4403_v34 = vld [vmem:[#allocation110_spill] sm:$0xff]  ;;  %v4404_v35 = vld [vmem:[#allocation111_spill] sm:$0xff] }
 0x37e   :  { %1083 = vmatpush1.msra.mxu0 %v4359_v37  ;;  %1154 = vmatpush1.msra.mxu1 %v4360_v41  ;;  %v3568_v37 = vld [vmem:[#allocation8 + $0x408] sm:$0xff]  ;;  %v3571_v41 = vld [vmem:[#allocation8 + $0x418] sm:$0xff] }
 0x37f   :  { %1084 = vmatprep.subr.mxu0 %v4361_v42  ;;  %1155 = vmatprep.subr.mxu1 %v4362_v44  ;;  %4405 = vst [vmem:[#allocation24_spill] sm:$0xff] %v3568_v37  ;;  %4406 = vst [vmem:[#allocation33_spill] sm:$0xff] %v3571_v41  ;;  %v3575_v42 = vld [vmem:[#allocation8 + $0x410] sm:$0xff]  ;;  %v3579_v44 = vld [vmem:[#allocation8 + $0x3f8] sm:$0xff] }
 0x380   :  { %1085 = vmatpush1.msra.mxu0 %v4363_v46  ;;  %1156 = vmatpush1.msra.mxu1 %v4364_v47  ;;  %v3587_v46 = vld [vmem:[#allocation8 + $0x3d8] sm:$0xff]  ;;  %v3591_v47 = vld [vmem:[#allocation8 + $0x3d0] sm:$0xff] }
 0x381   :  { %1086 = vmatprep.subr.mxu0 %v4365_v49  ;;  %1157 = vmatprep.subr.mxu1 %v4366_v54  ;;  %v3595_v49 = vld [vmem:[#allocation8 + $0x3b8] sm:$0xff]  ;;  %v3599_v54 = vld [vmem:[#allocation8 + $0x3b0] sm:$0xff] }
 0x382   :  { %1087 = vmatpush1.msra.mxu0 %v4367_v56  ;;  %1158 = vmatpush1.msra.mxu1 %v4368_v59  ;;  %v3603_v56 = vld [vmem:[#allocation8 + $0x398] sm:$0xff]  ;;  %v3607_v59 = vld [vmem:[#allocation8 + $0x390] sm:$0xff] }
 0x383   :  { %1088 = vmatprep.subr.mxu0 %v4369_v1  ;;  %1159 = vmatprep.subr.mxu1 %v4370_v3  ;;  %v3610_v1 = vld [vmem:[#allocation8 + $0x368] sm:$0xff]  ;;  %v3613_v3 = vld [vmem:[#allocation8 + $0x378] sm:$0xff] }
 0x384   :  { %1089 = vmatpush1.msra.mxu0 %v4371_v5  ;;  %1160 = vmatpush1.msra.mxu1 %v4372_v6  ;;  %v3616_v5 = vld [vmem:[#allocation8 + $0x360] sm:$0xff]  ;;  %v3619_v6 = vld [vmem:[#allocation8 + $0x370] sm:$0xff] }
 0x385   :  { %1090 = vmatprep.subr.mxu0 %v4373_v7  ;;  %1161 = vmatprep.subr.mxu1 %v4374_v8  ;;  %v3622_v7 = vld [vmem:[#allocation8 + $0x348] sm:$0xff]  ;;  %v3625_v8 = vld [vmem:[#allocation8 + $0x358] sm:$0xff] }
 0x386   :  { %1091 = vmatpush1.msra.mxu0 %v4375_v10  ;;  %1162 = vmatpush1.msra.mxu1 %v4376_v12  ;;  %v3628_v10 = vld [vmem:[#allocation8 + $0x340] sm:$0xff]  ;;  %v3631_v12 = vld [vmem:[#allocation8 + $0x350] sm:$0xff] }
 0x387   :  { %1092 = vmatprep.subr.mxu0 %v4377_v53  ;;  %1163 = vmatprep.subr.mxu1 %v4378_v39  ;;  %v3634_v53 = vld [vmem:[#allocation8 + $0x328] sm:$0xff]  ;;  %v3637_v39 = vld [vmem:[#allocation8 + $0x338] sm:$0xff] }
 0x388   :  { %1093 = vmatpush1.msra.mxu0 %v4379_v50  ;;  %1164 = vmatpush1.msra.mxu1 %v4380_v63  ;;  %v3640_v50 = vld [vmem:[#allocation8 + $0x320] sm:$0xff]  ;;  %v3643_v63 = vld [vmem:[#allocation8 + $0x330] sm:$0xff] }
 0x389   :  { %1094 = vmatprep.subr.mxu0 %v4381_v40  ;;  %1165 = vmatprep.subr.mxu1 %v4382_v9  ;;  %v3646_v40 = vld [vmem:[#allocation8 + $0x308] sm:$0xff]  ;;  %v3649_v9 = vld [vmem:[#allocation8 + $0x318] sm:$0xff] }
 0x38a   :  { %1095 = vmatpush1.msra.mxu0 %v4383_v48  ;;  %1166 = vmatpush1.msra.mxu1 %v4384_v62  ;;  %v3652_v48 = vld [vmem:[#allocation8 + $0x300] sm:$0xff]  ;;  %v3655_v62 = vld [vmem:[#allocation8 + $0x310] sm:$0xff] }
 0x38b   :  { %1096 = vmatprep.subr.mxu0 %v4385_v57  ;;  %1167 = vmatprep.subr.mxu1 %v4386_v52  ;;  %v3658_v57 = vld [vmem:[#allocation8 + $0x2e8] sm:$0xff]  ;;  %v3661_v52 = vld [vmem:[#allocation8 + $0x2f8] sm:$0xff] }
 0x38c   :  { %1097 = vmatpush1.msra.mxu0 %v4387_v33  ;;  %1168 = vmatpush1.msra.mxu1 %v4388_v0  ;;  %v3664_v33 = vld [vmem:[#allocation8 + $0x2e0] sm:$0xff]  ;;  %v3667_v0 = vld [vmem:[#allocation8 + $0x2f0] sm:$0xff] }
 0x38d   :  { %1098 = vmatprep.subr.mxu0 %v4389_v15  ;;  %1169 = vmatprep.subr.mxu1 %v4390_v17  ;;  %v3670_v15 = vld [vmem:[#allocation8 + $0x2c8] sm:$0xff]  ;;  %v3673_v17 = vld [vmem:[#allocation8 + $0x2d8] sm:$0xff] }
 0x38e   :  { %1099 = vmatpush1.msra.mxu0 %v4391_v18  ;;  %1170 = vmatpush1.msra.mxu1 %v4392_v19  ;;  %v3676_v18 = vld [vmem:[#allocation8 + $0x2c0] sm:$0xff]  ;;  %v3679_v19 = vld [vmem:[#allocation8 + $0x2d0] sm:$0xff] }
 0x38f   :  { %1100 = vmatprep.subr.mxu0 %v4393_v20  ;;  %1171 = vmatprep.subr.mxu1 %v4394_v21  ;;  %4407 = vst [vmem:[#allocation25_spill] sm:$0xff] %v3679_v19  ;;  %v3682_v20 = vld [vmem:[#allocation8 + $0x2a8] sm:$0xff]  ;;  %v3685_v21 = vld [vmem:[#allocation8 + $0x2b8] sm:$0xff] }
 0x390   :  { %1101 = vmatpush1.msra.mxu0 %v4395_v22  ;;  %1172 = vmatpush1.msra.mxu1 %v4396_v23  ;;  %4408 = vst [vmem:[#allocation35_spill] sm:$0xff] %v3682_v20  ;;  %4409 = vst [vmem:[#allocation19_spill] sm:$0xff] %v3685_v21  ;;  %v3688_v22 = vld [vmem:[#allocation8 + $0x2a0] sm:$0xff]  ;;  %v3691_v23 = vld [vmem:[#allocation8 + $0x2b0] sm:$0xff] }
 0x391   :  { %1102 = vmatprep.subr.mxu0 %v4397_v24  ;;  %1173 = vmatprep.subr.mxu1 %v4398_v25  ;;  %4410 = vst [vmem:[#allocation20_spill] sm:$0xff] %v3688_v22  ;;  %4411 = vst [vmem:[#allocation44_spill] sm:$0xff] %v3691_v23  ;;  %v3694_v24 = vld [vmem:[#allocation8 + $0x288] sm:$0xff]  ;;  %v3697_v25 = vld [vmem:[#allocation8 + $0x298] sm:$0xff] }
 0x392   :  { %1103 = vmatpush1.msra.mxu0 %v4399_v27  ;;  %1174 = vmatpush1.msra.mxu1 %v4400_v28  ;;  %4412 = vst [vmem:[#allocation21_spill] sm:$0xff] %v3694_v24  ;;  %4413 = vst [vmem:[#allocation41_spill] sm:$0xff] %v3697_v25  ;;  %v3700_v27 = vld [vmem:[#allocation8 + $0x280] sm:$0xff]  ;;  %v3703_v28 = vld [vmem:[#allocation8 + $0x290] sm:$0xff] }
 0x393   :  { %1104 = vmatprep.subr.mxu0 %v4401_v29  ;;  %1175 = vmatprep.subr.mxu1 %v4402_v32  ;;  %4414 = vst [vmem:[#allocation26_spill] sm:$0xff] %v3700_v27  ;;  %4415 = vst [vmem:[#allocation36_spill] sm:$0xff] %v3703_v28  ;;  %v3706_v29 = vld [vmem:[#allocation8 + $0x268] sm:$0xff]  ;;  %v3709_v32 = vld [vmem:[#allocation8 + $0x278] sm:$0xff] }
 0x394   :  { %1105 = vmatpush1.msra.mxu0 %v4403_v34  ;;  %1138 = vmatprep.mubr.f32.mxu0 %v4330_v26  ;;  %4416 = vst [vmem:[#allocation28_spill] sm:$0xff] %v3706_v29  ;;  %4417 = vst [vmem:[#allocation37_spill] sm:$0xff] %v3709_v32  ;;  %v3712_v34 = vld [vmem:[#allocation8 + $0x260] sm:$0xff] }
 0x395   :  { %1176 = vmatpush1.msra.mxu1 %v4404_v35  ;;  %1209 = vmatprep.mubr.f32.mxu1 %v4330_v26  ;;  %4418 = vst [vmem:[#allocation30_spill] sm:$0xff] %v3712_v34  ;;  %v3715_v35 = vld [vmem:[#allocation8 + $0x270] sm:$0xff] }
 0x396   :  { %1139 = vmatmul.mubr.f32.vlgmr.msra.gmra.mxu0 %v3402_v55  ;;  %1210 = vmatmul.mubr.f32.vlgmr.msra.gmra.mxu1 %v3402_v55  ;;  %v3583_v55 = vld [vmem:[#allocation8 + $0x3f0] sm:$0xff]  ;;  %4419 = vst [vmem:[#allocation38_spill] sm:$0xff] %v3715_v35 }
 0x397   :  { %1266 = vmatprep.subr.mxu0 %v3568_v37  ;;  %1337 = vmatprep.subr.mxu1 %v3571_v41 }
 0x398   :  { %1267 = vmatpush1.msra.mxu0 %v3406_v60  ;;  %1338 = vmatpush1.msra.mxu1 %v3575_v42 }
 0x399   :  { %1268 = vmatprep.subr.mxu0 %v3410_v36  ;;  %1339 = vmatprep.subr.mxu1 %v3579_v44 }
 0x39a   :  { %1269 = vmatpush1.msra.mxu0 %v3414_v61  ;;  %1340 = vmatpush1.msra.mxu1 %v3583_v55 }
 0x39b   :  { %1270 = vmatprep.subr.mxu0 %v3418_v43  ;;  %1341 = vmatprep.subr.mxu1 %v3587_v46 }
 0x39c   :  { %1271 = vmatpush1.msra.mxu0 %v3422_v4  ;;  %1342 = vmatpush1.msra.mxu1 %v3591_v47 }
 0x39d   :  { %1272 = vmatprep.subr.mxu0 %v3426_v11  ;;  %1343 = vmatprep.subr.mxu1 %v3595_v49 }
 0x39e   :  { %1273 = vmatpush1.msra.mxu0 %v3430_v13  ;;  %1344 = vmatpush1.msra.mxu1 %v3599_v54 }
 0x39f   :  { %1274 = vmatprep.subr.mxu0 %v3434_v14  ;;  %1345 = vmatprep.subr.mxu1 %v3603_v56 }
 0x3a0   :  { %1275 = vmatpush1.msra.mxu0 %v3438_v16  ;;  %1346 = vmatpush1.msra.mxu1 %v3607_v59 }
 0x3a1   :  { %1276 = vmatprep.subr.mxu0 %v3610_v1  ;;  %1347 = vmatprep.subr.mxu1 %v3613_v3 }
 0x3a2   :  { %1277 = vmatpush1.msra.mxu0 %v3616_v5  ;;  %1348 = vmatpush1.msra.mxu1 %v3619_v6 }
 0x3a3   :  { %1278 = vmatprep.subr.mxu0 %v3622_v7  ;;  %1349 = vmatprep.subr.mxu1 %v3625_v8 }
 0x3a4   :  { %1279 = vmatpush1.msra.mxu0 %v3628_v10  ;;  %1350 = vmatpush1.msra.mxu1 %v3631_v12 }
 0x3a5   :  { %1280 = vmatprep.subr.mxu0 %v3634_v53  ;;  %1351 = vmatprep.subr.mxu1 %v3637_v39 }
 0x3a6   :  { %1281 = vmatpush1.msra.mxu0 %v3640_v50  ;;  %1352 = vmatpush1.msra.mxu1 %v3643_v63 }
 0x3a7   :  { %1282 = vmatprep.subr.mxu0 %v3646_v40  ;;  %1353 = vmatprep.subr.mxu1 %v3649_v9 }
 0x3a8   :  { %1283 = vmatpush1.msra.mxu0 %v3652_v48  ;;  %1354 = vmatpush1.msra.mxu1 %v3655_v62 }
 0x3a9   :  { %1284 = vmatprep.subr.mxu0 %v3658_v57  ;;  %1355 = vmatprep.subr.mxu1 %v3661_v52 }
 0x3aa   :  { %1285 = vmatpush1.msra.mxu0 %v3664_v33  ;;  %1356 = vmatpush1.msra.mxu1 %v3667_v0 }
 0x3ab   :  { %1286 = vmatprep.subr.mxu0 %v3670_v15  ;;  %1357 = vmatprep.subr.mxu1 %v3673_v17 }
 0x3ac   :  { %1287 = vmatpush1.msra.mxu0 %v3676_v18  ;;  %1358 = vmatpush1.msra.mxu1 %v3679_v19 }
 0x3ad   :  { %1288 = vmatprep.subr.mxu0 %v3682_v20  ;;  %1359 = vmatprep.subr.mxu1 %v3685_v21 }
 0x3ae   :  { %1289 = vmatpush1.msra.mxu0 %v3688_v22  ;;  %1360 = vmatpush1.msra.mxu1 %v3691_v23 }
 0x3af   :  { %1290 = vmatprep.subr.mxu0 %v3694_v24  ;;  %1361 = vmatprep.subr.mxu1 %v3697_v25 }
 0x3b0   :  { %1291 = vmatpush1.msra.mxu0 %v3700_v27  ;;  %1362 = vmatpush1.msra.mxu1 %v3703_v28 }
 0x3b1   :  { %1292 = vmatprep.subr.mxu0 %v3706_v29  ;;  %1363 = vmatprep.subr.mxu1 %v3709_v32  ;;  %v3754_v32 = vld [vmem:[#allocation8] ss:$8 sm:$0xf] }
 0x3b2   :  { %1293 = vmatpush1.msra.mxu0 %v3712_v34  ;;  %1364 = vmatpush1.msra.mxu1 %v3715_v35  ;;  %v3733_v35 = vld [vmem:[#allocation8 + $0x238] sm:$0xff]  ;;  %4432 = vst [vmem:[#allocation51_spill] sm:$0xff] %v3754_v32 }
 0x3b3   :  { %1294 = vmatprep.subr.mxu0 %v3718_v58  ;;  %1365 = vmatprep.subr.mxu1 %v3721_v2  ;;  %4425 = vst [vmem:[#allocation43_spill] sm:$0xff] %v3733_v35  ;;  %v3736_v58 = vld [vmem:[#allocation8 + $0x220] sm:$0xff]  ;;  %v3740_v2 = vld [vmem:[#allocation8 + $0x230] sm:$0xff] }
 0x3b4   :  { %1295 = vmatpush1.msra.mxu0 %v3724_v51  ;;  %1366 = vmatpush1.msra.mxu1 %v3727_v38  ;;  %4426 = vst [vmem:[#allocation18_spill] sm:$0xff] %v3736_v58  ;;  %4427 = vst [vmem:[#allocation22_spill] sm:$0xff] %v3740_v2  ;;  %v73_v38 = vstv %s2270_s29 }
 0x3b5   :  { %1296 = vmatprep.subr.mxu0 %v3730_v31  ;;  %1367 = vmatprep.subr.mxu1 %v3733_v35 }
 0x3b6   :  { %1297 = vmatpush1.msra.mxu0 %v3736_v58  ;;  %1330 = vmatprep.mubr.f32.mxu0 %v4330_v26  ;;  %v76_v58 = vstv %s2271_s30 }
 0x3b7   :  { %1368 = vmatpush1.msra.mxu1 %v3740_v2  ;;  %1401 = vmatprep.mubr.f32.mxu1 %v4330_v26  ;;  %v74_v26 = vmul.f32 %v3754_v32, %v73_v38  ;;  %v3757_v2 = vld [vmem:[#allocation8 + $0x1] ss:$8 sm:$0xf] }
 0x3b8   :  { %1436 = vmatprep.subr.mxu0 %v3568_v37  ;;  %1507 = vmatprep.subr.mxu1 %v3571_v41  ;;  %4433 = vst [vmem:[#allocation52_spill] sm:$0xff] %v3757_v2  ;;  %v77_v41 = vmul.f32 %v3757_v2, %v76_v58 }
 0x435   :  { %v3746_v31 = vpop.f32.mrf.mxu0  ;;  %v3748_v35 = vpop.f32.mrf.mxu1 }
 0x436   :  { %4428 = vst [vmem:[#allocation27_spill] sm:$0xff] %v3746_v31  ;;  %4429 = vst [vmem:[#allocation29_spill] sm:$0xff] %v3748_v35  ;;  %v78_v35 = vadd.f32 %v77_v41, %v74_v26 }
 0x437   :  { %v3750_v51 = vpop.f32.mrf.mxu0  ;;  %v3752_v34 = vpop.f32.mrf.mxu1 }
 0x438   :  { %4430 = vst [vmem:[#allocation49_spill] sm:$0xff] %v3750_v51  ;;  %4431 = vst [vmem:[#allocation50_spill] sm:$0xff] %v3752_v34  ;;  %v3762_v34 = vld [vmem:[#allocation8 + $0x2] ss:$8 sm:$0xf] }
 0x439   :  { %4434 = vst [vmem:[#allocation53_spill] sm:$0xff] %v3762_v34  ;;  %v79_v23 = vadd.f32 %v3762_v34, %v78_v35  ;;  %v4444_v35 = vld [vmem:[#allocation28_spill] sm:$0xff]  ;;  %v4455_v34 = vld [vmem:[#allocation22_spill] sm:$0xff] }
 0x456   :  { %v1140_v37 = vpop.f32.mrf.mxu0  ;;  %v1211_v29 = vpop.f32.mrf.mxu1 }
 0x458   :  { %v1142_v28 = vpop.f32.mrf.mxu0  ;;  %v1213_v31 = vpop.f32.mrf.mxu1 }
 0x459   :  { %v1220_v27 = vcombine.low %v1140_v37, %v1142_v28  ;;  %v1221_v25 = vcombine.low %v1211_v29, %v1213_v31  ;;  %v4441_v28 = vld [vmem:[#allocation41_spill] sm:$0xff]  ;;  %v4442_v29 = vld [vmem:[#allocation26_spill] sm:$0xff] }
 0x45b   :  { %v1228_v24 = vrot.slane %v1220_v27, %v3392_v30  ;;  %v1235_v51 = vrot.slane %v1221_v25, %v3392_v30 }
 0x45d   :  { %v1236_v38 = vcombine.low %v1228_v24, %v1235_v51 }
 0x45f   :  { %v1243_v32 = vrot.slane %v1236_v38, %v3392_v30  ;;  %v4445_v38 = vld [vmem:[#allocation37_spill] sm:$0xff]  ;;  %v4456_v30 = vmov 0.0  }
 0x461   :  { %v1245_v22 = vadd.f32 %v1243_v32, %v79_v23  ;;  %v4443_v32 = vld [vmem:[#allocation36_spill] sm:$0xff] }
 0x463   :  { %v2287_v58 = vmul.f32 -1.442695, %v1245_v22  ;;  %v1253_v20 = vrot.slane %v1245_v22, 3  ;;  %v4440_v22 = vld [vmem:[#allocation21_spill] sm:$0xff] }
 0x465   :  { %2509 = vpow2.f32 %v2287_v58  ;;  %v4446_v58 = vld [vmem:[#allocation30_spill] sm:$0xff] }
 0x472   :  { %v2510_v2 = vpop.eup %2509 }
 0x473   :  { %v1249_v21 = vadd.f32 1.0, %v2510_v2  ;;  %v4437_v2 = vld [vmem:[#allocation19_spill] sm:$0xff] }
 0x475   :  { %2511 = vrcp.f32 %v1249_v21  ;;  %v4439_v21 = vld [vmem:[#allocation44_spill] sm:$0xff] }
 0x476   :  { %2513 = vtanh.f32 %v1253_v20  ;;  %v4438_v20 = vld [vmem:[#allocation20_spill] sm:$0xff] }
 0x482   :  { %v2512_v26 = vpop.eup %2511 }
 0x483   :  { %v1257_v31 = vrot.slane %v2512_v26, 1  ;;  %v2514_v37 = vpop.eup %2513  ;;  %v1263_v51 = vrot.slane %v2512_v26, 2 }
 0x484   :  { %v1260_v41 = vmul.f32 %v2514_v37, %v2512_v26  ;;  %v4447_v26 = vld [vmem:[#allocation38_spill] sm:$0xff]  ;;  %v4449_v37 = vld [vmem:[#allocation39_spill] sm:$0xff] }
 0x485   :  { %v1259_v25 = vmul.f32 %v1257_v31, %v3399_v45  ;;  %v4436_v45 = vld [vmem:[#allocation35_spill] sm:$0xff]  ;;  %v4448_v31 = vld [vmem:[#allocation32_spill] sm:$0xff] }
 0x487   :  { %v3767_v27 = vadd.f32 %v1260_v41, %v1259_v25  ;;  %v4450_v41 = vld [vmem:[#allocation34_spill] sm:$0xff]  ;;  %v4451_v25 = vld [vmem:[#allocation40_spill] sm:$0xff] }
 0x489   :  { %4435 = vst [vmem:[#allocation54_spill] sm:$0xff] %v3767_v27  ;;  %2515 = vtanh.f32 %v3767_v27  ;;  %v4454_v27 = vld [vmem:[#allocation18_spill] sm:$0xff] }
 0x496   :  { %v2516_v24 = vpop.eup %2515 }
 0x497   :  { %v3770_v23 = vmul.f32 %v2516_v24, %v1263_v51  ;;  %v4452_v51 = vld [vmem:[#allocation42_spill] sm:$0xff]  ;;  %v4453_v24 = vld [vmem:[#allocation43_spill] sm:$0xff] }
 0x499   :  { %1331 = vmatmul.mubr.f32.vlgmr.msra.gmra.mxu0 %v3770_v23  ;;  %1402 = vmatmul.mubr.f32.vlgmr.msra.gmra.mxu1 %v3770_v23 }
 0x49a   :  { %1437 = vmatpush1.msra.mxu0 %v3406_v60  ;;  %1508 = vmatpush1.msra.mxu1 %v3575_v42 }
 0x49b   :  { %1438 = vmatprep.subr.mxu0 %v3410_v36  ;;  %1509 = vmatprep.subr.mxu1 %v3579_v44 }
 0x49c   :  { %1439 = vmatpush1.msra.mxu0 %v3414_v61  ;;  %1510 = vmatpush1.msra.mxu1 %v3583_v55 }
 0x49d   :  { %1440 = vmatprep.subr.mxu0 %v3418_v43  ;;  %1511 = vmatprep.subr.mxu1 %v3587_v46 }
 0x49e   :  { %1441 = vmatpush1.msra.mxu0 %v3422_v4  ;;  %1512 = vmatpush1.msra.mxu1 %v3591_v47 }
 0x49f   :  { %1442 = vmatprep.subr.mxu0 %v3426_v11  ;;  %1513 = vmatprep.subr.mxu1 %v3595_v49 }
 0x4a0   :  { %1443 = vmatpush1.msra.mxu0 %v3430_v13  ;;  %1514 = vmatpush1.msra.mxu1 %v3599_v54 }
 0x4a1   :  { %1444 = vmatprep.subr.mxu0 %v3434_v14  ;;  %1515 = vmatprep.subr.mxu1 %v3603_v56 }
 0x4a2   :  { %1445 = vmatpush1.msra.mxu0 %v3438_v16  ;;  %1516 = vmatpush1.msra.mxu1 %v3607_v59 }
 0x4a3   :  { %1446 = vmatprep.subr.mxu0 %v3610_v1  ;;  %1517 = vmatprep.subr.mxu1 %v3613_v3 }
 0x4a4   :  { %1447 = vmatpush1.msra.mxu0 %v3616_v5  ;;  %1518 = vmatpush1.msra.mxu1 %v3619_v6 }
 0x4a5   :  { %1448 = vmatprep.subr.mxu0 %v3622_v7  ;;  %1519 = vmatprep.subr.mxu1 %v3625_v8 }
 0x4a6   :  { %1449 = vmatpush1.msra.mxu0 %v3628_v10  ;;  %1520 = vmatpush1.msra.mxu1 %v3631_v12 }
 0x4a7   :  { %1450 = vmatprep.subr.mxu0 %v3634_v53  ;;  %1521 = vmatprep.subr.mxu1 %v3637_v39 }
 0x4a8   :  { %1451 = vmatpush1.msra.mxu0 %v3640_v50  ;;  %1522 = vmatpush1.msra.mxu1 %v3643_v63 }
 0x4a9   :  { %1452 = vmatprep.subr.mxu0 %v3646_v40  ;;  %1523 = vmatprep.subr.mxu1 %v3649_v9 }
 0x4aa   :  { %1453 = vmatpush1.msra.mxu0 %v3652_v48  ;;  %1524 = vmatpush1.msra.mxu1 %v3655_v62 }
 0x4ab   :  { %1454 = vmatprep.subr.mxu0 %v3658_v57  ;;  %1525 = vmatprep.subr.mxu1 %v3661_v52 }
 0x4ac   :  { %1455 = vmatpush1.msra.mxu0 %v3664_v33  ;;  %1526 = vmatpush1.msra.mxu1 %v3667_v0 }
 0x4ad   :  { %1456 = vmatprep.subr.mxu0 %v3670_v15  ;;  %1527 = vmatprep.subr.mxu1 %v3673_v17 }
 0x4ae   :  { %1457 = vmatpush1.msra.mxu0 %v3676_v18  ;;  %1528 = vmatpush1.msra.mxu1 %v3679_v19  ;;  %v4464_v19 = vld [vmem:[#allocation50_spill] sm:$0xff] }
 0x4af   :  { %1458 = vmatprep.subr.mxu0 %v4436_v45  ;;  %1529 = vmatprep.subr.mxu1 %v4437_v2  ;;  %v4463_v2 = vld [vmem:[#allocation48_spill] sm:$0xff] }
 0x4b0   :  { %1459 = vmatpush1.msra.mxu0 %v4438_v20  ;;  %1530 = vmatpush1.msra.mxu1 %v4439_v21  ;;  %v4462_v20 = vld [vmem:[#allocation29_spill] sm:$0xff] }
 0x4b1   :  { %1460 = vmatprep.subr.mxu0 %v4440_v22  ;;  %1531 = vmatprep.subr.mxu1 %v4441_v28  ;;  %v4461_v22 = vld [vmem:[#allocation47_spill] sm:$0xff] }
 0x4b2   :  { %1461 = vmatpush1.msra.mxu0 %v4442_v29  ;;  %1532 = vmatpush1.msra.mxu1 %v4443_v32 }
 0x4b3   :  { %1462 = vmatprep.subr.mxu0 %v4444_v35  ;;  %1533 = vmatprep.subr.mxu1 %v4445_v38  ;;  %v4458_v38 = vld [vmem:[#allocation27_spill] sm:$0xff]  ;;  %v4459_v35 = vld [vmem:[#allocation46_spill] sm:$0xff] }
 0x4b4   :  { %1463 = vmatpush1.msra.mxu0 %v4446_v58  ;;  %1534 = vmatpush1.msra.mxu1 %v4447_v26  ;;  %v2624_v26 = vld [vmem:[#allocation8 + $0x208] sm:$0xff] }
 0x4b5   :  { %1464 = vmatprep.subr.mxu0 %v4448_v31  ;;  %1535 = vmatprep.subr.mxu1 %v4449_v37  ;;  %v2625_v31 = vld [vmem:[#allocation8 + $0x218] sm:$0xff] }
 0x4b6   :  { %1465 = vmatpush1.msra.mxu0 %v4450_v41  ;;  %1536 = vmatpush1.msra.mxu1 %v4451_v25  ;;  %v4457_v41 = vld [vmem:[#allocation45_spill] sm:$0xff] }
 0x4b7   :  { %1466 = vmatprep.subr.mxu0 %v4452_v51  ;;  %1537 = vmatprep.subr.mxu1 %v4453_v24 }
 0x4b8   :  { %1467 = vmatpush1.msra.mxu0 %v4454_v27  ;;  %1538 = vmatpush1.msra.mxu1 %v4455_v34  ;;  %v4460_v27 = vld [vmem:[#allocation49_spill] sm:$0xff] }
 0x4b9   :  { %1500 = vmatprep.mubr.f32.mxu0 %v4456_v30  ;;  %1571 = vmatprep.mubr.f32.mxu1 %v4456_v30 }
 0x4ba   :  { %1578 = vmatprep.subr.mxu0 %v2624_v26  ;;  %1649 = vmatprep.subr.mxu1 %v2625_v31 }
 0x559   :  { %v1332_v37 = vpop.f32.mrf.mxu0  ;;  %v1403_v34 = vpop.f32.mrf.mxu1 }
 0x55a   :  { %v1333_v58 = vadd.f32 %v1332_v37, %v4457_v41  ;;  %v1404_v21 = vadd.f32 %v1403_v34, %v4461_v22 }
 0x55b   :  { %v1334_v25 = vpop.f32.mrf.mxu0  ;;  %v1405_v26 = vpop.f32.mrf.mxu1 }
 0x55c   :  { %v1408_v51 = vadd.f32 %v1333_v58, %v4458_v38  ;;  %v1335_v24 = vadd.f32 %v1334_v25, %v4459_v35  ;;  %v1410_v31 = vadd.f32 %v1404_v21, %v4462_v20  ;;  %v1406_v45 = vadd.f32 %v1405_v26, %v4463_v2 }
 0x55e   :  { %v2288_v32 = vmul.f32 -1.442695, %v1408_v51  ;;  %v1409_v29 = vadd.f32 %v1335_v24, %v4460_v27  ;;  %v2290_v37 = vmul.f32 -1.442695, %v1410_v31  ;;  %v1411_v38 = vadd.f32 %v1406_v45, %v4464_v19  ;;  %v4465_v24 = vld [vmem:[#allocation31_spill] sm:$0xff]  ;;  %v2626_v31 = vld [vmem:[#allocation8 + $0x200] sm:$0xff] }
 0x560   :  { %2517 = vpow2.f32 %v2288_v32  ;;  %v2289_v28 = vmul.f32 -1.442695, %v1409_v29 }
 0x562   :  { %2519 = vpow2.f32 %v2289_v28 }
 0x563   :  { %2521 = vpow2.f32 %v2290_v37  ;;  %v2627_v37 = vld [vmem:[#allocation8 + $0x210] sm:$0xff] }
 0x56d   :  { %v2518_v41 = vpop.eup %2517 }
 0x56e   :  { %v1421_v58 = vadd.f32 1.0, %v2518_v41 }
 0x56f   :  { %v2520_v25 = vpop.eup %2519 }
 0x570   :  { %2523 = vrcp.f32 %v1421_v58  ;;  %v1422_v27 = vadd.f32 1.0, %v2520_v25  ;;  %v2522_v29 = vpop.eup %2521  ;;  %v2629_v58 = vld [vmem:[#allocation8 + $0x1f8] sm:$0xff]  ;;  %v2630_v25 = vld [vmem:[#allocation8 + $0x1e0] sm:$0xff] }
 0x571   :  { %2525 = vtanh.f32 %v1411_v38  ;;  %v1423_v51 = vadd.f32 1.0, %v2522_v29  ;;  %v2628_v38 = vld [vmem:[#allocation8 + $0x1e8] sm:$0xff] }
 0x572   :  { %2527 = vrcp.f32 %v1422_v27  ;;  %v2631_v27 = vld [vmem:[#allocation8 + $0x1f0] sm:$0xff]  ;;  %v2632_v29 = vld [vmem:[#allocation8 + $0x1c8] sm:$0xff] }
 0x573   :  { %2529 = vrcp.f32 %v1423_v51  ;;  %v2636_v51 = vld [vmem:[#allocation8 + $0x1a8] sm:$0xff] }
 0x57d   :  { %v2524_v28 = vpop.eup %2523 }
 0x57e   :  { %v2526_v32 = vpop.eup %2525 }
 0x57f   :  { %v2528_v34 = vpop.eup %2527  ;;  %v1432_v21 = vmul.f32 %v2526_v32, %v2524_v28  ;;  %v2633_v28 = vld [vmem:[#allocation8 + $0x1d8] sm:$0xff]  ;;  %v2634_v32 = vld [vmem:[#allocation8 + $0x1c0] sm:$0xff] }
 0x580   :  { %v1431_v20 = vmul.f32 %v2528_v34, %v4465_v24  ;;  %v2530_v19 = vpop.eup %2529  ;;  %v2635_v34 = vld [vmem:[#allocation8 + $0x1d0] sm:$0xff]  ;;  %v2637_v24 = vld [vmem:[#allocation8 + $0x1b8] sm:$0xff] }
 0x582   :  { %v3847_v26 = vadd.f32 %v1432_v21, %v1431_v20  ;;  %v2638_v20 = vld [vmem:[#allocation8 + $0x1a0] sm:$0xff]  ;;  %v2639_v21 = vld [vmem:[#allocation8 + $0x1b0] sm:$0xff] }
 0x584   :  { %2531 = vtanh.f32 %v3847_v26 }
 0x591   :  { %v2532_v45 = vpop.eup %2531 }
 0x592   :  { %v1435_v41 = vmul.f32 %v2532_v45, %v2530_v19  ;;  %v2640_v19 = vld [vmem:[#allocation8 + $0x188] sm:$0xff]  ;;  %v2641_v45 = vld [vmem:[#allocation8 + $0x198] sm:$0xff] }
 0x594   :  { %1501 = vmatmul.mubr.f32.vlgmr.msra.gmra.mxu0 %v1435_v41  ;;  %1572 = vmatmul.mubr.f32.vlgmr.msra.gmra.mxu1 %v1435_v41  ;;  %v2642_v41 = vld [vmem:[#allocation8 + $0x180] sm:$0xff] }
 0x595   :  { %1579 = vmatpush1.msra.mxu0 %v2626_v31  ;;  %1650 = vmatpush1.msra.mxu1 %v2627_v37  ;;  %v2643_v31 = vld [vmem:[#allocation8 + $0x190] sm:$0xff]  ;;  %v2644_v37 = vld [vmem:[#allocation8 + $0x168] sm:$0xff] }
 0x596   :  { %1580 = vmatprep.subr.mxu0 %v2628_v38  ;;  %1651 = vmatprep.subr.mxu1 %v2629_v58  ;;  %v2645_v38 = vld [vmem:[#allocation8 + $0x178] sm:$0xff]  ;;  %v2646_v58 = vld [vmem:[#allocation8 + $0x160] sm:$0xff] }
 0x597   :  { %1581 = vmatpush1.msra.mxu0 %v2630_v25  ;;  %1652 = vmatpush1.msra.mxu1 %v2631_v27  ;;  %v2647_v25 = vld [vmem:[#allocation8 + $0x170] sm:$0xff]  ;;  %v2648_v27 = vld [vmem:[#allocation8 + $0x148] sm:$0xff] }
 0x598   :  { %1582 = vmatprep.subr.mxu0 %v2632_v29  ;;  %1653 = vmatprep.subr.mxu1 %v2633_v28  ;;  %v2649_v29 = vld [vmem:[#allocation8 + $0x158] sm:$0xff]  ;;  %v2650_v28 = vld [vmem:[#allocation8 + $0x140] sm:$0xff] }
 0x599   :  { %1583 = vmatpush1.msra.mxu0 %v2634_v32  ;;  %1654 = vmatpush1.msra.mxu1 %v2635_v34  ;;  %v2651_v32 = vld [vmem:[#allocation8 + $0x150] sm:$0xff]  ;;  %v2652_v34 = vld [vmem:[#allocation8 + $0x128] sm:$0xff] }
 0x59a   :  { %1584 = vmatprep.subr.mxu0 %v2636_v51  ;;  %1655 = vmatprep.subr.mxu1 %v2637_v24  ;;  %v2653_v51 = vld [vmem:[#allocation8 + $0x138] sm:$0xff]  ;;  %v2654_v24 = vld [vmem:[#allocation8 + $0x120] sm:$0xff] }
 0x59b   :  { %1585 = vmatpush1.msra.mxu0 %v2638_v20  ;;  %1656 = vmatpush1.msra.mxu1 %v2639_v21  ;;  %v2655_v20 = vld [vmem:[#allocation8 + $0x130] sm:$0xff]  ;;  %v2656_v21 = vld [vmem:[#allocation8 + $0x108] sm:$0xff] }
 0x59c   :  { %1586 = vmatprep.subr.mxu0 %v2640_v19  ;;  %1657 = vmatprep.subr.mxu1 %v2641_v45  ;;  %v2657_v19 = vld [vmem:[#allocation8 + $0x118] sm:$0xff]  ;;  %v2658_v45 = vld [vmem:[#allocation8 + $0x100] sm:$0xff] }
 0x59d   :  { %1587 = vmatpush1.msra.mxu0 %v2642_v41  ;;  %1658 = vmatpush1.msra.mxu1 %v2643_v31  ;;  %v2659_v41 = vld [vmem:[#allocation8 + $0x110] sm:$0xff]  ;;  %v2660_v31 = vld [vmem:[#allocation8 + $0xe8] sm:$0xff] }
 0x59e   :  { %1588 = vmatprep.subr.mxu0 %v2644_v37  ;;  %1659 = vmatprep.subr.mxu1 %v2645_v38  ;;  %v2661_v37 = vld [vmem:[#allocation8 + $0xf8] sm:$0xff]  ;;  %v2662_v38 = vld [vmem:[#allocation8 + $0xe0] sm:$0xff] }
 0x59f   :  { %1589 = vmatpush1.msra.mxu0 %v2646_v58  ;;  %1660 = vmatpush1.msra.mxu1 %v2647_v25  ;;  %v2663_v58 = vld [vmem:[#allocation8 + $0xf0] sm:$0xff]  ;;  %v2664_v25 = vld [vmem:[#allocation8 + $0xc8] sm:$0xff] }
 0x5a0   :  { %1590 = vmatprep.subr.mxu0 %v2648_v27  ;;  %1661 = vmatprep.subr.mxu1 %v2649_v29  ;;  %v2665_v27 = vld [vmem:[#allocation8 + $0xd8] sm:$0xff]  ;;  %v2666_v29 = vld [vmem:[#allocation8 + $0xc0] sm:$0xff] }
 0x5a1   :  { %1591 = vmatpush1.msra.mxu0 %v2650_v28  ;;  %1662 = vmatpush1.msra.mxu1 %v2651_v32  ;;  %v2667_v28 = vld [vmem:[#allocation8 + $0xd0] sm:$0xff]  ;;  %v2668_v32 = vld [vmem:[#allocation8 + $0xa8] sm:$0xff] }
 0x5a2   :  { %1592 = vmatprep.subr.mxu0 %v2652_v34  ;;  %1663 = vmatprep.subr.mxu1 %v2653_v51  ;;  %v2669_v34 = vld [vmem:[#allocation8 + $0xb8] sm:$0xff]  ;;  %v2670_v51 = vld [vmem:[#allocation8 + $0xa0] sm:$0xff] }
 0x5a3   :  { %1593 = vmatpush1.msra.mxu0 %v2654_v24  ;;  %1664 = vmatpush1.msra.mxu1 %v2655_v20  ;;  %v2671_v24 = vld [vmem:[#allocation8 + $0xb0] sm:$0xff]  ;;  %v2672_v20 = vld [vmem:[#allocation8 + $0x88] sm:$0xff] }
 0x5a4   :  { %1594 = vmatprep.subr.mxu0 %v2656_v21  ;;  %1665 = vmatprep.subr.mxu1 %v2657_v19  ;;  %v2673_v21 = vld [vmem:[#allocation8 + $0x98] sm:$0xff]  ;;  %v2674_v19 = vld [vmem:[#allocation8 + $0x80] sm:$0xff] }
 0x5a5   :  { %1595 = vmatpush1.msra.mxu0 %v2658_v45  ;;  %1666 = vmatpush1.msra.mxu1 %v2659_v41  ;;  %v2675_v45 = vld [vmem:[#allocation8 + $0x90] sm:$0xff]  ;;  %v2676_v41 = vld [vmem:[#allocation8 + $0x68] sm:$0xff] }
 0x5a6   :  { %1596 = vmatprep.subr.mxu0 %v2660_v31  ;;  %1667 = vmatprep.subr.mxu1 %v2661_v37  ;;  %v2677_v31 = vld [vmem:[#allocation8 + $0x78] sm:$0xff]  ;;  %v2678_v37 = vld [vmem:[#allocation8 + $0x60] sm:$0xff] }
 0x5a7   :  { %1597 = vmatpush1.msra.mxu0 %v2662_v38  ;;  %1668 = vmatpush1.msra.mxu1 %v2663_v58  ;;  %v2679_v38 = vld [vmem:[#allocation8 + $0x70] sm:$0xff]  ;;  %v2680_v58 = vld [vmem:[#allocation8 + $0x48] sm:$0xff] }
 0x5a8   :  { %1598 = vmatprep.subr.mxu0 %v2664_v25  ;;  %1669 = vmatprep.subr.mxu1 %v2665_v27  ;;  %v2681_v25 = vld [vmem:[#allocation8 + $0x58] sm:$0xff]  ;;  %v2682_v27 = vld [vmem:[#allocation8 + $0x40] sm:$0xff] }
 0x5a9   :  { %1599 = vmatpush1.msra.mxu0 %v2666_v29  ;;  %1670 = vmatpush1.msra.mxu1 %v2667_v28  ;;  %v2683_v29 = vld [vmem:[#allocation8 + $0x50] sm:$0xff]  ;;  %v2684_v28 = vld [vmem:[#allocation8 + $0x28] sm:$0xff] }
 0x5aa   :  { %1600 = vmatprep.subr.mxu0 %v2668_v32  ;;  %1671 = vmatprep.subr.mxu1 %v2669_v34  ;;  %v2685_v32 = vld [vmem:[#allocation8 + $0x38] sm:$0xff]  ;;  %v2686_v34 = vld [vmem:[#allocation8 + $0x20] sm:$0xff] }
 0x5ab   :  { %1601 = vmatpush1.msra.mxu0 %v2670_v51  ;;  %1672 = vmatpush1.msra.mxu1 %v2671_v24  ;;  %v2687_v51 = vld [vmem:[#allocation8 + $0x30] sm:$0xff] }
 0x5ac   :  { %1602 = vmatprep.subr.mxu0 %v2672_v20  ;;  %1673 = vmatprep.subr.mxu1 %v2673_v21  ;;  %v4466_v24 = vld [vmem:[#allocation24_spill] sm:$0xff]  ;;  %v4467_v20 = vld [vmem:[#allocation33_spill] sm:$0xff] }
 0x5ad   :  { %1603 = vmatpush1.msra.mxu0 %v2674_v19  ;;  %1674 = vmatpush1.msra.mxu1 %v2675_v45 }
 0x5ae   :  { %1604 = vmatprep.subr.mxu0 %v2676_v41  ;;  %1675 = vmatprep.subr.mxu1 %v2677_v31 }
 0x5af   :  { %1605 = vmatpush1.msra.mxu0 %v2678_v37  ;;  %1676 = vmatpush1.msra.mxu1 %v2679_v38 }
 0x5b0   :  { %1606 = vmatprep.subr.mxu0 %v2680_v58  ;;  %1677 = vmatprep.subr.mxu1 %v2681_v25 }
 0x5b1   :  { %1607 = vmatpush1.msra.mxu0 %v2682_v27  ;;  %1678 = vmatpush1.msra.mxu1 %v2683_v29 }
 0x5b2   :  { %1608 = vmatprep.subr.mxu0 %v2684_v28  ;;  %1679 = vmatprep.subr.mxu1 %v2685_v32  ;;  %v4493_v28 = vld [vmem:[#allocation54_spill] sm:$0xff] }
 0x5b3   :  { %1609 = vmatpush1.msra.mxu0 %v2686_v34  ;;  %1642 = vmatprep.mubr.f32.mxu0 %v4456_v30 }
 0x5b4   :  { %1680 = vmatpush1.msra.mxu1 %v2687_v51  ;;  %1713 = vmatprep.mubr.f32.mxu1 %v4456_v30 }
 0x5b5   :  { %1643 = vmatmul.mubr.f32.vlgmr.msra.gmra.mxu0 %v3770_v23  ;;  %1714 = vmatmul.mubr.f32.vlgmr.msra.gmra.mxu1 %v3770_v23  ;;  %v4492_v23 = vld [vmem:[#allocation53_spill] sm:$0xff] }
 0x5b6   :  { %1770 = vmatprep.subr.mxu0 %v4466_v24  ;;  %1841 = vmatprep.subr.mxu1 %v4467_v20 }
 0x5b7   :  { %1771 = vmatpush1.msra.mxu0 %v3406_v60  ;;  %1842 = vmatpush1.msra.mxu1 %v3575_v42  ;;  %v4468_v60 = vld [vmem:[#allocation25_spill] sm:$0xff]  ;;  %v4477_v42 = vld [vmem:[#allocation28_spill] sm:$0xff] }
 0x5b8   :  { %1772 = vmatprep.subr.mxu0 %v3410_v36  ;;  %1843 = vmatprep.subr.mxu1 %v3579_v44  ;;  %v4469_v36 = vld [vmem:[#allocation35_spill] sm:$0xff]  ;;  %v4478_v44 = vld [vmem:[#allocation37_spill] sm:$0xff] }
 0x5b9   :  { %1773 = vmatpush1.msra.mxu0 %v3414_v61  ;;  %1844 = vmatpush1.msra.mxu1 %v3583_v55  ;;  %v4470_v61 = vld [vmem:[#allocation19_spill] sm:$0xff]  ;;  %v4479_v55 = vld [vmem:[#allocation30_spill] sm:$0xff] }
 0x5ba   :  { %1774 = vmatprep.subr.mxu0 %v3418_v43  ;;  %1845 = vmatprep.subr.mxu1 %v3587_v46  ;;  %v4471_v43 = vld [vmem:[#allocation20_spill] sm:$0xff]  ;;  %v4480_v46 = vld [vmem:[#allocation38_spill] sm:$0xff] }
 0x5bb   :  { %1775 = vmatpush1.msra.mxu0 %v3422_v4  ;;  %1846 = vmatpush1.msra.mxu1 %v3591_v47  ;;  %v4472_v4 = vld [vmem:[#allocation44_spill] sm:$0xff] }
 0x5bc   :  { %1776 = vmatprep.subr.mxu0 %v3426_v11  ;;  %1847 = vmatprep.subr.mxu1 %v3595_v49  ;;  %v4473_v11 = vld [vmem:[#allocation21_spill] sm:$0xff]  ;;  %v4481_v47 = vld [vmem:[#allocation32_spill] sm:$0xff]  ;;  %v4482_v49 = vld [vmem:[#allocation39_spill] sm:$0xff] }
 0x5bd   :  { %1777 = vmatpush1.msra.mxu0 %v3430_v13  ;;  %1848 = vmatpush1.msra.mxu1 %v3599_v54  ;;  %v4474_v13 = vld [vmem:[#allocation41_spill] sm:$0xff]  ;;  %v4483_v54 = vld [vmem:[#allocation34_spill] sm:$0xff] }
 0x5be   :  { %1778 = vmatprep.subr.mxu0 %v3434_v14  ;;  %1849 = vmatprep.subr.mxu1 %v3603_v56  ;;  %v4475_v14 = vld [vmem:[#allocation26_spill] sm:$0xff]  ;;  %v4484_v56 = vld [vmem:[#allocation40_spill] sm:$0xff] }
 0x5bf   :  { %1779 = vmatpush1.msra.mxu0 %v3438_v16  ;;  %1850 = vmatpush1.msra.mxu1 %v3607_v59  ;;  %v4476_v16 = vld [vmem:[#allocation36_spill] sm:$0xff]  ;;  %v4485_v59 = vld [vmem:[#allocation42_spill] sm:$0xff] }
 0x5c0   :  { %1780 = vmatprep.subr.mxu0 %v3610_v1  ;;  %1851 = vmatprep.subr.mxu1 %v3613_v3  ;;  %v4486_v1 = vld [vmem:[#allocation43_spill] sm:$0xff]  ;;  %v4487_v3 = vld [vmem:[#allocation18_spill] sm:$0xff] }
 0x5c1   :  { %1781 = vmatpush1.msra.mxu0 %v3616_v5  ;;  %1852 = vmatpush1.msra.mxu1 %v3619_v6  ;;  %v4488_v5 = vld [vmem:[#allocation22_spill] sm:$0xff] }
 0x5c2   :  { %1782 = vmatprep.subr.mxu0 %v3622_v7  ;;  %1853 = vmatprep.subr.mxu1 %v3625_v8  ;;  %v81_v8 = vstv %s2272_s4 }
 0x5c3   :  { %1783 = vmatpush1.msra.mxu0 %v3628_v10  ;;  %1854 = vmatpush1.msra.mxu1 %v3631_v12  ;;  %v84_v10 = vstv %s2273_s5 }
 0x5c4   :  { %1784 = vmatprep.subr.mxu0 %v3634_v53  ;;  %1855 = vmatprep.subr.mxu1 %v3637_v39  ;;  %v4489_v39 = vld [vmem:[#allocation51_spill] sm:$0xff] }
 0x5c5   :  { %1785 = vmatpush1.msra.mxu0 %v3640_v50  ;;  %1856 = vmatpush1.msra.mxu1 %v3643_v63  ;;  %v82_v50 = vmul.f32 %v4489_v39, %v81_v8  ;;  %v4490_v63 = vld [vmem:[#allocation52_spill] sm:$0xff] }
 0x5c6   :  { %1786 = vmatprep.subr.mxu0 %v3646_v40  ;;  %1857 = vmatprep.subr.mxu1 %v3649_v9  ;;  %v85_v40 = vmul.f32 %v4490_v63, %v84_v10 }
 0x5c7   :  { %1787 = vmatpush1.msra.mxu0 %v3652_v48  ;;  %1858 = vmatpush1.msra.mxu1 %v3655_v62 }
 0x5c8   :  { %1788 = vmatprep.subr.mxu0 %v3658_v57  ;;  %1859 = vmatprep.subr.mxu1 %v3661_v52 }
 0x5c9   :  { %1789 = vmatpush1.msra.mxu0 %v3664_v33  ;;  %1860 = vmatpush1.msra.mxu1 %v3667_v0  ;;  %v86_v33 = vadd.f32 %v85_v40, %v82_v50 }
 0x5ca   :  { %1790 = vmatprep.subr.mxu0 %v3670_v15  ;;  %1861 = vmatprep.subr.mxu1 %v3673_v17  ;;  %v4491_v15 = vld [vmem:[#allocation23_spill] sm:$0xff] }
 0x5cb   :  { %1791 = vmatpush1.msra.mxu0 %v3676_v18  ;;  %1862 = vmatpush1.msra.mxu1 %v4468_v60  ;;  %v87_v21 = vadd.f32 %v4492_v23, %v86_v33 }
 0x5cc   :  { %1792 = vmatprep.subr.mxu0 %v4469_v36  ;;  %1863 = vmatprep.subr.mxu1 %v4470_v61 }
 0x5cd   :  { %1793 = vmatpush1.msra.mxu0 %v4471_v43  ;;  %1864 = vmatpush1.msra.mxu1 %v4472_v4 }
 0x5ce   :  { %1794 = vmatprep.subr.mxu0 %v4473_v11  ;;  %1865 = vmatprep.subr.mxu1 %v4474_v13 }
 0x5cf   :  { %1795 = vmatpush1.msra.mxu0 %v4475_v14  ;;  %1866 = vmatpush1.msra.mxu1 %v4476_v16 }
 0x5d0   :  { %1796 = vmatprep.subr.mxu0 %v4477_v42  ;;  %1867 = vmatprep.subr.mxu1 %v4478_v44 }
 0x5d1   :  { %1797 = vmatpush1.msra.mxu0 %v4479_v55  ;;  %1868 = vmatpush1.msra.mxu1 %v4480_v46 }
 0x5d2   :  { %1798 = vmatprep.subr.mxu0 %v4481_v47  ;;  %1869 = vmatprep.subr.mxu1 %v4482_v49 }
 0x5d3   :  { %1799 = vmatpush1.msra.mxu0 %v4483_v54  ;;  %1870 = vmatpush1.msra.mxu1 %v4484_v56 }
 0x5d4   :  { %1800 = vmatprep.subr.mxu0 %v4485_v59  ;;  %1871 = vmatprep.subr.mxu1 %v4486_v1 }
 0x5d5   :  { %1801 = vmatpush1.msra.mxu0 %v4487_v3  ;;  %1834 = vmatprep.mubr.f32.mxu0 %v4456_v30 }
 0x5d6   :  { %1872 = vmatpush1.msra.mxu1 %v4488_v5  ;;  %1905 = vmatprep.mubr.f32.mxu1 %v4456_v30 }
 0x654   :  { %v1502_v6 = vpop.f32.mrf.mxu0  ;;  %v3920_v7 = vpop.f32.mrf.mxu1 }
 0x656   :  { %v1504_v12 = vpop.f32.mrf.mxu0  ;;  %v3922_v53 = vpop.f32.mrf.mxu1 }
 0x675   :  { %v1644_v9 = vpop.f32.mrf.mxu0  ;;  %v1715_v48 = vpop.f32.mrf.mxu1 }
 0x677   :  { %v1646_v62 = vpop.f32.mrf.mxu0  ;;  %v1717_v57 = vpop.f32.mrf.mxu1 }
 0x678   :  { %v1724_v52 = vcombine.low %v1644_v9, %v1646_v62  ;;  %v1725_v0 = vcombine.low %v1715_v48, %v1717_v57 }
 0x67a   :  { %v1732_v17 = vrot.slane %v1724_v52, %v4491_v15  ;;  %v1739_v18 = vrot.slane %v1725_v0, %v4491_v15 }
 0x67c   :  { %v1740_v19 = vcombine.low %v1732_v17, %v1739_v18 }
 0x67e   :  { %v1747_v45 = vrot.slane %v1740_v19, %v4491_v15 }
 0x680   :  { %v1749_v41 = vadd.f32 %v1747_v45, %v87_v21 }
 0x682   :  { %v2291_v31 = vmul.f32 -1.442695, %v1749_v41  ;;  %v1757_v58 = vrot.slane %v1749_v41, 3 }
 0x684   :  { %2533 = vpow2.f32 %v2291_v31 }
 0x691   :  { %v2534_v37 = vpop.eup %2533 }
 0x692   :  { %v1753_v38 = vadd.f32 1.0, %v2534_v37 }
 0x694   :  { %2535 = vrcp.f32 %v1753_v38 }
 0x695   :  { %2537 = vtanh.f32 %v1757_v58 }
 0x6a1   :  { %v2536_v25 = vpop.eup %2535 }
 0x6a2   :  { %v1761_v27 = vrot.slane %v2536_v25, 1  ;;  %v2538_v29 = vpop.eup %2537  ;;  %v1767_v24 = vrot.slane %v2536_v25, 2 }
 0x6a3   :  { %v1764_v34 = vmul.f32 %v2538_v29, %v2536_v25 }
 0x6a4   :  { %v1763_v32 = vmul.f32 %v1761_v27, %v4493_v28 }
 0x6a6   :  { %v1765_v51 = vadd.f32 %v1764_v34, %v1763_v32 }
 0x6a8   :  { %2539 = vtanh.f32 %v1765_v51 }
 0x6b5   :  { %v2540_v20 = vpop.eup %2539 }
 0x6b6   :  { %v1769_v60 = vmul.f32 %v2540_v20, %v1767_v24 }
 0x6b8   :  { %1835 = vmatmul.mubr.f32.vlgmr.msra.gmra.mxu0 %v1769_v60  ;;  %1906 = vmatmul.mubr.f32.vlgmr.msra.gmra.mxu1 %v1769_v60 }
 0x6b9   :  { %2739 = shalt.err (!%p2736_p9)  }
 0x6ba   :  { %48 = dma.hbm_to_vmem [thread:$0]  %s4009_s2, 8192, %s46_s7, [#allocation3]  ;;  %v4494_v61 = vld [vmem:[#allocation45_spill] sm:$0xff] }
 0x778   :  { %v1836_v36 = vpop.f32.mrf.mxu0  ;;  %v1907_v42 = vpop.f32.mrf.mxu1 }
 0x779   :  { %v1837_v43 = vadd.f32 %v1836_v36, %v4494_v61  ;;  %v1908_v55 = vadd.f32 %v1907_v42, %v4461_v22 }
 0x77a   :  { %v1838_v4 = vpop.f32.mrf.mxu0  ;;  %v1909_v46 = vpop.f32.mrf.mxu1 }
 0x77b   :  { %v1912_v11 = vadd.f32 %v1837_v43, %v1502_v6  ;;  %v1839_v13 = vadd.f32 %v1838_v4, %v4459_v35  ;;  %v1914_v47 = vadd.f32 %v1908_v55, %v3920_v7  ;;  %v1910_v49 = vadd.f32 %v1909_v46, %v4463_v2 }
 0x77d   :  { %v2292_v14 = vmul.f32 -1.442695, %v1912_v11  ;;  %v1913_v16 = vadd.f32 %v1839_v13, %v1504_v12  ;;  %v2294_v54 = vmul.f32 -1.442695, %v1914_v47  ;;  %v1915_v59 = vadd.f32 %v1910_v49, %v3922_v53 }
 0x77f   :  { %2541 = vpow2.f32 %v2292_v14  ;;  %v2293_v44 = vmul.f32 -1.442695, %v1913_v16 }
 0x781   :  { %2543 = vpow2.f32 %v2293_v44 }
 0x782   :  { %2545 = vpow2.f32 %v2294_v54 }
 0x78c   :  { %v2542_v56 = vpop.eup %2541 }
 0x78d   :  { %v1925_v1 = vadd.f32 1.0, %v2542_v56 }
 0x78e   :  { %v2544_v3 = vpop.eup %2543 }
 0x78f   :  { %2547 = vrcp.f32 %v1925_v1  ;;  %v1926_v35 = vadd.f32 1.0, %v2544_v3  ;;  %v2546_v5 = vpop.eup %2545 }
 0x790   :  { %2549 = vtanh.f32 %v1915_v59  ;;  %v1927_v10 = vadd.f32 1.0, %v2546_v5 }
 0x791   :  { %2551 = vrcp.f32 %v1926_v35 }
 0x792   :  { %2553 = vrcp.f32 %v1927_v10 }
 0x79c   :  { %v2548_v6 = vpop.eup %2547 }
 0x79d   :  { %v2550_v8 = vpop.eup %2549 }
 0x79e   :  { %v2552_v22 = vpop.eup %2551  ;;  %v1936_v12 = vmul.f32 %v2550_v8, %v2548_v6 }
 0x79f   :  { %v1935_v7 = vmul.f32 %v2552_v22, %v3847_v26  ;;  %v2554_v39 = vpop.eup %2553 }
 0x7a1   :  { %v1937_v2 = vadd.f32 %v1936_v12, %v1935_v7 }
 0x7a3   :  { %2555 = vtanh.f32 %v1937_v2 }
 0x7b0   :  { %v2556_v53 = vpop.eup %2555 }
 0x7b1   :  { %v3941_v50 = vmul.f32 %v2556_v53, %v2554_v39 }
 0x7b2   :  { %2764 = dma.done.wait [#allocation3], 8192 }
 0x7b3   :  { %2765 = vsyncadd [#allocation3], 4294959104  ;;  %2347 = vmatprep.subr.mxu0 %v4456_v30  ;;  %2382 = vmatprep.subr.mxu1 %v4456_v30  ;;  %vm2775_vm0 = vmmov 0   ;;  %v1962_v26 = vld [vmem:[#allocation2 + $0x1e0] sm:$0xff]  ;;  %v2069_v48 = vld [vmem:[#allocation2 + $0x1f0] sm:$0xff]  ;;  %v2034_v54 = vstv %s2803_s0  ;;  %v2038_v1 = vstv %s2811_s22  ;;  %v2042_v6 = vstv %s2817_s1  ;;  %s2776_s2 = smov [#allocation9]  }
 0x7b4   :  { %2379 = vmatprep.mubr.msk.f32.mxu0 %vm2775_vm0, %v4456_v30  ;;  %2414 = vmatprep.mubr.msk.f32.mxu1 %vm2775_vm0, %v4456_v30  ;;  %v1961_v63 = vld [vmem:[#allocation2 + $0x1c0] sm:$0xff]  ;;  %v2068_v62 = vld [vmem:[#allocation2 + $0x1d0] sm:$0xff]  ;;  %v2156_v36 = vld [vmem:[#allocation2 + $0x1f8] sm:$0xff]  ;;  %v2046_v12 = vstv %s2823_s23  ;;  %vm2231_vm2 = vcmask 1040384   ;;  %s2251_s11 = sshll.u32 %s2776_s2, 4  ;;  %s2252_s11 = int_to_ptr.vmem [resolvable:$true] %s2251_s11 }
 0x7b5   :  { %2348 = vmatpush3.msra.mxu0 %v1962_v26  ;;  %v1960_v40 = vld [vmem:[#allocation2 + $0x1a0] sm:$0xff]  ;;  %2383 = vmatpush3.msra.mxu1 %v2069_v48  ;;  %v2067_v52 = vld [vmem:[#allocation2 + $0x1b0] sm:$0xff]  ;;  %v2155_v61 = vld [vmem:[#allocation2 + $0x1d8] sm:$0xff]  ;;  %s2740_s12 = scalar_lea.vmem %s2252_s11, 16  ;;  %s2744_s13 = scalar_lea.vmem %s2252_s11, 32 }
 0x7b6   :  { %2349 = vmatprep.subr.mxu0 %v4456_v30  ;;  %v1959_v9 = vld [vmem:[#allocation2 + $0x180] sm:$0xff]  ;;  %2384 = vmatprep.subr.mxu1 %v4456_v30  ;;  %v2066_v0 = vld [vmem:[#allocation2 + $0x190] sm:$0xff]  ;;  %v2154_v43 = vld [vmem:[#allocation2 + $0x1b8] sm:$0xff]  ;;  %p2741_p10 = scmp.ne.s32.totalorder %s2252_s11, %s2740_s12  ;;  %p2745_p11 = scmp.lt.s32.totalorder %s2252_s11, %s2252_s11 }
 0x7b7   :  { %2350 = vmatpush3.msra.mxu0 %v1961_v63  ;;  %v1958_v57 = vld [vmem:[#allocation2 + $0x160] sm:$0xff]  ;;  %2385 = vmatpush3.msra.mxu1 %v2068_v62  ;;  %v2065_v17 = vld [vmem:[#allocation2 + $0x170] sm:$0xff]  ;;  %v2153_v4 = vld [vmem:[#allocation2 + $0x198] sm:$0xff]  ;;  %p2746_p12 = scmp.lt.s32.totalorder %s2744_s13, %s2740_s12 }
 0x7b8   :  { %2351 = vmatprep.subr.mxu0 %v4456_v30  ;;  %v1957_v33 = vld [vmem:[#allocation2 + $0x140] sm:$0xff]  ;;  %2386 = vmatprep.subr.mxu1 %v4456_v30  ;;  %v2064_v23 = vld [vmem:[#allocation2 + $0x150] sm:$0xff]  ;;  %v2152_v11 = vld [vmem:[#allocation2 + $0x178] sm:$0xff] }
 0x7b9   :  { %2352 = vmatpush3.msra.mxu0 %v1960_v40  ;;  %v1956_v15 = vld [vmem:[#allocation2 + $0x120] sm:$0xff]  ;;  %2387 = vmatpush3.msra.mxu1 %v2067_v52  ;;  %v2063_v19 = vld [vmem:[#allocation2 + $0x130] sm:$0xff]  ;;  %v2151_v13 = vld [vmem:[#allocation2 + $0x158] sm:$0xff]  ;;  %p2747_p13 = por %p2746_p12, %p2745_p11 }
 0x7ba   :  { %2353 = vmatprep.subr.mxu0 %v4456_v30  ;;  %2388 = vmatprep.subr.mxu1 %v4456_v30  ;;  %v1955_v18 = vld [vmem:[#allocation2 + $0x100] sm:$0xff]  ;;  %v2062_v41 = vld [vmem:[#allocation2 + $0x110] sm:$0xff]  ;;  %v2150_v14 = vld [vmem:[#allocation2 + $0x138] sm:$0xff] }
 0x7bb   :  { %2354 = vmatpush3.msra.mxu0 %v1959_v9  ;;  %2389 = vmatpush3.msra.mxu1 %v2066_v0  ;;  %v1954_v21 = vld [vmem:[#allocation2 + $0xe0] sm:$0xff]  ;;  %v2061_v29 = vld [vmem:[#allocation2 + $0xf0] sm:$0xff]  ;;  %v2149_v16 = vld [vmem:[#allocation2 + $0x118] sm:$0xff]  ;;  %p2748_p0 = pnand %p2747_p13, %p2741_p10 }
 0x7bc   :  { %2355 = vmatprep.subr.mxu0 %v4456_v30  ;;  %2390 = vmatprep.subr.mxu1 %v4456_v30  ;;  %v1953_v45 = vld [vmem:[#allocation2 + $0xc0] sm:$0xff]  ;;  %v2060_v28 = vld [vmem:[#allocation2 + $0xd0] sm:$0xff]  ;;  %v2148_v42 = vld [vmem:[#allocation2 + $0xf8] sm:$0xff] }
 0x7bd   :  { %2356 = vmatpush3.msra.mxu0 %v1958_v57  ;;  %2391 = vmatpush3.msra.mxu1 %v2065_v17  ;;  %v1952_v31 = vld [vmem:[#allocation2 + $0xa0] sm:$0xff]  ;;  %v2059_v32 = vld [vmem:[#allocation2 + $0xb0] sm:$0xff]  ;;  %v2147_v44 = vld [vmem:[#allocation2 + $0xd8] sm:$0xff] }
 0x7be   :  { %2357 = vmatprep.subr.mxu0 %v4456_v30  ;;  %2392 = vmatprep.subr.mxu1 %v4456_v30  ;;  %v1951_v37 = vld [vmem:[#allocation2 + $0x80] sm:$0xff]  ;;  %v2058_v34 = vld [vmem:[#allocation2 + $0x90] sm:$0xff]  ;;  %v2146_v55 = vld [vmem:[#allocation2 + $0xb8] sm:$0xff] }
 0x7bf   :  { %2358 = vmatpush3.msra.mxu0 %v1957_v33  ;;  %2393 = vmatpush3.msra.mxu1 %v2064_v23  ;;  %v1950_v38 = vld [vmem:[#allocation2 + $0x60] sm:$0xff]  ;;  %v2057_v51 = vld [vmem:[#allocation2 + $0x70] sm:$0xff]  ;;  %v2145_v46 = vld [vmem:[#allocation2 + $0x98] sm:$0xff] }
 0x7c0   :  { %2359 = vmatprep.subr.mxu0 %v4456_v30  ;;  %2394 = vmatprep.subr.mxu1 %v4456_v30  ;;  %v1949_v58 = vld [vmem:[#allocation2 + $0x40] sm:$0xff]  ;;  %v2056_v24 = vld [vmem:[#allocation2 + $0x50] sm:$0xff]  ;;  %v2144_v47 = vld [vmem:[#allocation2 + $0x78] sm:$0xff] }
 0x7c1   :  { %2360 = vmatpush3.msra.mxu0 %v1956_v15  ;;  %2395 = vmatpush3.msra.mxu1 %v2063_v19  ;;  %v1948_v25 = vld [vmem:[#allocation2 + $0x20] sm:$0xff]  ;;  %v2055_v20 = vld [vmem:[#allocation2 + $0x30] sm:$0xff]  ;;  %v2033_v49 = vld [vmem:[#allocation2 + $0x8] ss:$0 sm:$0xff]  ;;  %v4495_v19 = vlaneseq }
 0x7c2   :  { %2361 = vmatprep.subr.mxu0 %v4456_v30  ;;  %2396 = vmatprep.subr.mxu1 %v4456_v30  ;;  %v1947_v27 = vld [vmem:[#allocation2] sm:$0xff]  ;;  %v2054_v60 = vld [vmem:[#allocation2 + $0x10] sm:$0xff]  ;;  %v2037_v59 = vld [vmem:[#allocation2 + $0x9] ss:$0 sm:$0xff]  ;;  %v2035_v3 = vmul.f32 %v2034_v54, %v2033_v49 }
 0x7c3   :  { %2362 = vmatpush3.msra.mxu0 %v1955_v18  ;;  %2397 = vmatpush3.msra.mxu1 %v2062_v41  ;;  %v1944_v56 = vld [vmem:[#allocation8 + $0x4] ss:$0 sm:$0xff]  ;;  %v2041_v5 = vld [vmem:[#allocation2 + $0xa] ss:$0 sm:$0xff]  ;;  %v2039_v22 = vmul.f32 %v2038_v1, %v2037_v59  ;;  %v2045_v7 = vld [vmem:[#allocation2 + $0xb] ss:$0 sm:$0xff] }
 0x7c4   :  { %2363 = vmatprep.subr.mxu0 %v4456_v30  ;;  %2398 = vmatprep.subr.mxu1 %v4456_v30  ;;  %v2043_v39 = vmul.f32 %v2042_v6, %v2041_v5  ;;  %v2049_v53 = vld [vmem:[#allocation2 + $0xc] ss:$0 sm:$0xff]  ;;  %v2047_v63 = vmul.f32 %v2046_v12, %v2045_v7  ;;  %v2143_v52 = vld [vmem:[#allocation2 + $0x58] sm:$0xff]  ;;  %v1946_v41 = vld [vmem:[#allocation8 + $0x14] ss:$0 sm:$0xff] }
 0x7c5   :  { %2364 = vmatpush3.msra.mxu0 %v1954_v21  ;;  %2399 = vmatpush3.msra.mxu1 %v2061_v29  ;;  %v2142_v33 = vld [vmem:[#allocation2 + $0x38] sm:$0xff]  ;;  %v1945_v15 = vld [vmem:[#allocation8 + $0xc] ss:$0 sm:$0xff] }
 0x7c6   :  { %2365 = vmatprep.subr.mxu0 %v4456_v30  ;;  %2400 = vmatprep.subr.mxu1 %v4456_v30  ;;  %v2141_v0 = vld [vmem:[#allocation2 + $0x18] sm:$0xff] }
 0x7c7   :  { %2366 = vmatpush3.msra.mxu0 %v1953_v45  ;;  %2401 = vmatpush3.msra.mxu1 %v2060_v28  ;;  %v2228_v45 = vand.u32 127, %v4495_v19 }
 0x7c8   :  { %2367 = vmatprep.subr.mxu0 %v4456_v30  ;;  %2402 = vmatprep.subr.mxu1 %v4456_v30 }
 0x7c9   :  { %2368 = vmatpush3.msra.mxu0 %v1952_v31  ;;  %2403 = vmatpush3.msra.mxu1 %v2059_v32  ;;  %vm2229_vm1 = vcmp.lt.s32.totalorder %v2228_v45, 4 }
 0x7ca   :  { %2369 = vmatprep.subr.mxu0 %v4456_v30  ;;  %2404 = vmatprep.subr.mxu1 %v4456_v30 }
 0x7cb   :  { %2370 = vmatpush3.msra.mxu0 %v1951_v37  ;;  %2405 = vmatpush3.msra.mxu1 %v2058_v34 }
 0x7cc   :  { %2371 = vmatprep.subr.mxu0 %v4456_v30  ;;  %2406 = vmatprep.subr.mxu1 %v4456_v30 }
 0x7cd   :  { %2372 = vmatpush3.msra.mxu0 %v1950_v38  ;;  %2407 = vmatpush3.msra.mxu1 %v2057_v51 }
 0x7ce   :  { %2373 = vmatprep.subr.mxu0 %v4456_v30  ;;  %2408 = vmatprep.subr.mxu1 %v4456_v30 }
 0x7cf   :  { %2374 = vmatpush3.msra.mxu0 %v1949_v58  ;;  %2409 = vmatpush3.msra.mxu1 %v2056_v24 }
 0x7d0   :  { %2375 = vmatprep.subr.mxu0 %v4456_v30  ;;  %2410 = vmatprep.subr.mxu1 %v4456_v30 }
 0x7d1   :  { %2376 = vmatpush3.msra.mxu0 %v1948_v25  ;;  %2411 = vmatpush3.msra.mxu1 %v2055_v20 }
 0x7d2   :  { %2377 = vmatprep.subr.mxu0 %v4456_v30  ;;  %2412 = vmatprep.subr.mxu1 %v4456_v30 }
 0x7d3   :  { %2378 = vmatpush3.msra.mxu0 %v1947_v27  ;;  %2413 = vmatpush3.msra.mxu1 %v2054_v60 }
 0x7d4   :  { %2380 = vmatmul.mubr.f32.vlgmr.msra.gmra.mxu0 %v3941_v50  ;;  %2417 = vmatprep.subr.mxu0 %v4456_v30  ;;  %v2050_v50 = vstv %s2828_s24 }
 0x7d5   :  { %2449 = vmatprep.mubr.msk.f32.mxu0 %vm2775_vm0, %v4456_v30  ;;  %2418 = vmatpush3.msra.mxu0 %v2156_v36  ;;  %v2051_v9 = vmul.f32 %v2050_v50, %v2049_v53 }
 0x7d6   :  { %2419 = vmatprep.subr.mxu0 %v4456_v30 }
 0x7d7   :  { %2420 = vmatpush3.msra.mxu0 %v2155_v61 }
 0x7d8   :  { %2421 = vmatprep.subr.mxu0 %v4456_v30 }
 0x7d9   :  { %2422 = vmatpush3.msra.mxu0 %v2154_v43 }
 0x7da   :  { %2423 = vmatprep.subr.mxu0 %v4456_v30 }
 0x7db   :  { %2424 = vmatpush3.msra.mxu0 %v2153_v4 }
 0x7dc   :  { %2425 = vmatprep.subr.mxu0 %v4456_v30 }
 0x7dd   :  { %2426 = vmatpush3.msra.mxu0 %v2152_v11 }
 0x7de   :  { %2427 = vmatprep.subr.mxu0 %v4456_v30 }
 0x7df   :  { %2428 = vmatpush3.msra.mxu0 %v2151_v13 }
 0x7e0   :  { %2429 = vmatprep.subr.mxu0 %v4456_v30 }
 0x7e1   :  { %2430 = vmatpush3.msra.mxu0 %v2150_v14 }
 0x7e2   :  { %2431 = vmatprep.subr.mxu0 %v4456_v30 }
 0x7e3   :  { %2432 = vmatpush3.msra.mxu0 %v2149_v16 }
 0x7e4   :  { %2433 = vmatprep.subr.mxu0 %v4456_v30 }
 0x7e5   :  { %2434 = vmatpush3.msra.mxu0 %v2148_v42 }
 0x7e6   :  { %2435 = vmatprep.subr.mxu0 %v4456_v30 }
 0x7e7   :  { %2436 = vmatpush3.msra.mxu0 %v2147_v44 }
 0x7e8   :  { %2437 = vmatprep.subr.mxu0 %v4456_v30 }
 0x7e9   :  { %2438 = vmatpush3.msra.mxu0 %v2146_v55 }
 0x7ea   :  { %2439 = vmatprep.subr.mxu0 %v4456_v30 }
 0x7eb   :  { %2440 = vmatpush3.msra.mxu0 %v2145_v46 }
 0x7ec   :  { %2441 = vmatprep.subr.mxu0 %v4456_v30 }
 0x7ed   :  { %2442 = vmatpush3.msra.mxu0 %v2144_v47 }
 0x7ee   :  { %2443 = vmatprep.subr.mxu0 %v4456_v30 }
 0x7ef   :  { %2444 = vmatpush3.msra.mxu0 %v2143_v52 }
 0x7f0   :  { %2445 = vmatprep.subr.mxu0 %v4456_v30 }
 0x7f1   :  { %2446 = vmatpush3.msra.mxu0 %v2142_v33 }
 0x7f2   :  { %2447 = vmatprep.subr.mxu0 %v4456_v30 }
 0x7f3   :  { %2448 = vmatpush3.msra.mxu0 %v2141_v0 }
 0x894   :  { %v2029_v35 = vpop.f32.mrf.mxu0 }
 0x895   :  { %v2030_v8 = vadd.f32 %v2029_v35, %v1944_v56 }
 0x896   :  { %v2381_v10 = vpop.f32.mrf.mxu0 }
 0x897   :  { %v2036_v2 = vadd.f32 %v2035_v3, %v2030_v8 }
 0x899   :  { %v2040_v26 = vadd.f32 %v2039_v22, %v2036_v2 }
 0x89b   :  { %v2044_v40 = vadd.f32 %v2043_v39, %v2040_v26 }
 0x89d   :  { %v2048_v48 = vadd.f32 %v2047_v63, %v2044_v40 }
 0x89f   :  { %v2052_v62 = vadd.f32 %v2051_v9, %v2048_v48 }
 0x8a1   :  { %v2053_v57 = vmax.f32 %v2052_v62, 0.0 }
 0x8a3   :  { %2415 = vmatmul.mubr.f32.vlgmr.msra.gmra.mxu1 %v2053_v57 }
 0x963   :  { %v2136_v17 = vpop.f32.mrf.mxu1 }
 0x964   :  { %v2137_v18 = vadd.f32 %v2136_v17, %v1945_v15 }
 0x965   :  { %v2416_v23 = vpop.f32.mrf.mxu1 }
 0x966   :  { %v2140_v21 = vmax.f32 %v2137_v18, 0.0 }
 0x968   :  { %2450 = vmatmul.mubr.f32.vlgmr.msra.gmra.mxu0 %v2140_v21 }
 0xa28   :  { %v2223_v31 = vpop.f32.mrf.mxu0 }
 0xa29   :  { %v2224_v37 = vadd.f32 %v2223_v31, %v1946_v41 }
 0xa2a   :  { %v2451_v38 = vpop.f32.mrf.mxu0 }
 0xa2b   :  { %v2230_v58 = vsel %vm2229_vm1, %v2224_v37, -1e+30 }
 0xa2c   :  { %v2232_v25 = vsel %vm2231_vm2, %v2230_v58, -inf }
 0xa2d   :  { %2233 = vmax.xlane.f32.xlu0 %v2232_v25 }
 0xab6   :  { %v2234_v30 = vpop.xlane.xlu0 %2233 }
 0xab7   :  { %v2235_v27 = vsub.f32 %v2230_v58, %v2234_v30 }
 0xab9   :  { %v2236_v29 = vmul.f32 1.442695, %v2235_v27 }
 0xabb   :  { %2688 = vpow2.f32 %v2236_v29 }
 0xac8   :  { %v2689_v28 = vpop.eup %2688 }
 0xac9   :  { %v2238_v32 = vsel %vm2231_vm2, %v2689_v28, 0.0 }
 0xaca   :  { %2239 = vadd.xlane.f32.xlu0 %v2238_v32 }
 0xb53   :  { %v2240_v34 = vpop.xlane.xlu0 %2239 }
 0xb54   :  { %2690 = vlog2.f32 %v2240_v34 }
 0xb61   :  { %v2691_v51 = vpop.eup %2690 }
 0xb62   :  { %v2242_v24 = vmul.f32 0.6931472, %v2691_v51 }
 0xb64   :  { %v2243_v20 = vsub.f32 %v2235_v27, %v2242_v24 }
 0xb66   :  { %2244 = vst [vmem:[#allocation9] sm:$0x1] %v2243_v20 }
 0xb67   :  { %2751 = shalt.err (!%p2748_p0)
}
 0xb68   :  { %2254 = dma.vmem_to_hbm [thread:$0]  %s2252_s11, 16, %s4010_s3, [#allocation6]  }
 0xb69   :  { %2766 = dma.done.wait [#allocation6], 16  }
 0xb6a   :  { %2767 = vsyncadd [#allocation6], 4294967280 }
 0xb6b   :  { %2258 = vsyncpa [#allocation5], 1 }
 0xb6c   :  { %2259 = vsyncpa [#allocation6], 1 }
 0xb6d   :  { %2260 = vsyncpa [#allocation7], 1 }
 0xb6e   :  { %2261 = vsyncmov [#allocation3] }
 0xb71   :  { %s2262_s16 = vpop.sfrf %2261 }
 0xb72   :  { %p2295_p1 = scmp.ne.s32.totalorder %s2262_s16, 0 }
 0xb74   :  { %2266 = shalt.err (%p2295_p1)  }

</bundles_post_ra>
